<compile_context>
chip_gen: v7x
topology: tpu7x:2x2x1
jax: 0.10.0
libtpu: 0.0.40
codegen_flags: <defaults>
</compile_context>

<pallas_src>
import functools
import math

import jax
import jax.numpy as jnp
from jax.experimental import pallas as pl
from jax.experimental.pallas import tpu as pltpu


# Indices into the packed weight slab (axis 0).
_W_W0, _W_QKV, _W_OUT, _W_FF1, _W_FF2, _W_W1, _W_GATE = range(7)
# Indices into the packed bias / norm-scale slab (axis 0).
(_B_B0, _B_QKV, _B_OUT, _B_FF1, _B_FF2,
 _B_N1G, _B_N1B, _B_N2G, _B_N2B, _B_B1, _B_GATE) = range(11)


def _hier_attn_kernel(S, H, d, nh, Bt, feat_ref, w_ref, b_ref, out_ref):
    """One grid step: Bt batch elements, all three streams fused row-wise."""
    hd = d // nh
    scale = 1.0 / math.sqrt(hd)
    f32, bf16 = jnp.float32, jnp.bfloat16
    M = Bt * 3 * S          # rows of the fused activation slab
    B3 = Bt * 3             # (batch, stream) fused batch dim for attention
    R = Bt * S              # rows per stream

    def mm(x, wi, kdim, ncol, bi=None):
        # bf16 operands on the MXU, f32 accumulation; bias added in f32.
        w = w_ref[wi, :kdim, :ncol]
        y = jnp.dot(x.astype(bf16), w, preferred_element_type=f32)
        if bi is not None:
            y = y + b_ref[bi:bi + 1, :ncol]
        return y

    def layer_norm(x, gi, bi, eps=1e-5):
        mu = jnp.mean(x, axis=-1, keepdims=True)
        var = jnp.mean(jnp.square(x - mu), axis=-1, keepdims=True)
        return ((x - mu) * jax.lax.rsqrt(var + eps)
                * b_ref[gi:gi + 1, :d] + b_ref[bi:bi + 1, :d])

    x4 = feat_ref[...]                        # (Bt, 3, S, H) f32, streams [id|img|txt]
    x3 = x4.reshape(M, H)                     # fused rows (bt, stream, s) — cheap view

    # ---- shared transformer (global_embeddings) on all rows at once ---------
    z = mm(x3, _W_W0, H, d, _B_B0)            # low_rank_layer        (M, d)
    qkv = mm(z, _W_QKV, d, 3 * d, _B_QKV)     # packed in_proj        (M, 3d)

    # Attention: static unroll over heads, stream/batch-batched 3-D einsums.
    # A single head-batched einsum needs two dot_general batch dims or an
    # S<->head transpose across the sublane/lane boundary; neither lowers
    # reliably in Mosaic, so the nh=4 loop is kept — each per-head matmul is
    # already 3*Bt-way batched after the Bt grid blocking.
    head_outs = []
    for h in range(nh):
        qh = qkv[:, h * hd:(h + 1) * hd].reshape(B3, S, hd)
        kh = qkv[:, d + h * hd:d + (h + 1) * hd].reshape(B3, S, hd)
        vh = qkv[:, 2 * d + h * hd:2 * d + (h + 1) * hd].reshape(B3, S, hd)
        sc = jnp.einsum('bsd,btd->bst', qh.astype(bf16), kh.astype(bf16),
                        preferred_element_type=f32) * scale
        sc = sc - jnp.max(sc, axis=-1, keepdims=True)
        p = jnp.exp(sc)                                          # f32 numerator
        inv = pl.reciprocal(jnp.sum(p, axis=-1, keepdims=True), approx=True)
        oh = jnp.einsum('bst,btd->bsd', p.astype(bf16), vh.astype(bf16),
                        preferred_element_type=f32) * inv        # normalize after PV
        head_outs.append(oh.reshape(M, hd))
    o_cat = jnp.concatenate(head_outs, axis=-1)                  # (M, d) lane concat

    sa = mm(o_cat, _W_OUT, d, d, _B_OUT)                         # out_proj
    x1 = layer_norm(z + sa, _B_N1G, _B_N1B)                      # post-norm1
    ff = mm(jnp.maximum(mm(x1, _W_FF1, d, d, _B_FF1), 0.0),
            _W_FF2, d, d, _B_FF2)
    x2 = layer_norm(x1 + ff, _B_N2G, _B_N2B)                     # post-norm2
    g = mm(x2, _W_W1, d, H, _B_B1)                               # low_rank_layer1 (M, H)

    g4 = g.reshape(Bt, 3, S, H)
    idf, imgf, txtf = x4[:, 0], x4[:, 1], x4[:, 2]               # (Bt, S, H) each
    g_id, g_img, g_txt = g4[:, 0], g4[:, 1], g4[:, 2]

    # ---- fused gates: rows [id_feat ; global_id] x lanes [gate_v | gate_t] --
    gate_in = jnp.concatenate([idf.reshape(R, H), g_id.reshape(R, H)], axis=0)
    gates = jax.nn.sigmoid(mm(gate_in, _W_GATE, H, 2 * H, _B_GATE))   # (2R, 2H)
    gv_id = gates[:R, :H].reshape(Bt, S, H)          # gate_v(id_feat)
    gv_gid = gates[R:, :H].reshape(Bt, S, H)         # gate_v(global_id)
    gt_gid = gates[R:, H:2 * H].reshape(Bt, S, H)    # gate_t(global_id)

    img_refined = imgf * gv_id + g_img * gv_gid
    txt_refined = txtf * gv_id + g_txt * gt_gid      # reuses gate_v(id_feat) per module
    out_ref[...] = idf + img_refined + txt_refined


def _pack_params(params):
    """Pack the 18 parameter arrays into one bf16 weight slab + one f32 bias slab."""
    mats = [
        params['w0'].T,                                        # _W_W0   (H, d)
        params['in_proj_w'].T,                                 # _W_QKV  (d, 3d) q|k|v, head-major
        params['out_proj_w'].T,                                # _W_OUT  (d, d)
        params['ff1_w'].T,                                     # _W_FF1  (d, d)
        params['ff2_w'].T,                                     # _W_FF2  (d, d)
        params['w1'].T,                                        # _W_W1   (d, H)
        jnp.concatenate([params['gate_v_w'].T,
                         params['gate_t_w'].T], axis=1),       # _W_GATE (H, 2H)
    ]
    maxr = max(m.shape[0] for m in mats)
    maxc = max(m.shape[1] for m in mats)
    wslab = jnp.stack(
        [jnp.pad(m, ((0, maxr - m.shape[0]), (0, maxc - m.shape[1])))
         for m in mats]).astype(jnp.bfloat16)

    vecs = [
        params['b0'],                                          # _B_B0
        params['in_proj_b'],                                   # _B_QKV
        params['out_proj_b'],                                  # _B_OUT
        params['ff1_b'], params['ff2_b'],                      # _B_FF1, _B_FF2
        params['norm1_g'], params['norm1_b'],
        params['norm2_g'], params['norm2_b'],
        params['b1'],                                          # _B_B1
        jnp.concatenate([params['gate_v_b'], params['gate_t_b']]),  # _B_GATE
    ]
    maxv = max(v.shape[0] for v in vecs)
    bslab = jnp.stack([jnp.pad(v, (0, maxv - v.shape[0])) for v in vecs]
                      ).astype(jnp.float32)
    return wslab, bslab


def _choose_block_batch(B):
    """Batch elements per grid step.

    Rows per step = 3*S*Bt; Bt <= 64 keeps the double-buffered feature blocks
    and in-kernel temporaries at a few MiB — far below the 32 MiB scoped-VMEM
    default of v6e/v7x and the 16 MiB default of v5e.  When B >= 2 we keep at
    least 2 grid steps so both v7x TensorCores get work under the "parallel"
    grid-axis semantics (no-op on the single-core v5e/v6e).
    """
    cap = 64
    if B >= 2:
        cap = min(cap, B // 2)
    bt = 1
    for c in range(1, min(B, max(cap, 1)) + 1):
        if B % c == 0:
            bt = c
    return bt


def hierarchical_attention_forward(id_feat, img_feat, txt_feat, params, nh=4):
    B, S, H = id_feat.shape
    d = params['w0'].shape[0]
    f32 = jnp.float32

    # One stacked feature array -> one input DMA stream; the in-kernel stream
    # concat becomes a free leading-dim reshape.  Kept in f32 for accuracy.
    feats = jnp.stack([id_feat, img_feat, txt_feat], axis=1).astype(f32)  # (B,3,S,H)
    wslab, bslab = _pack_params(params)

    Bt = _choose_block_batch(B)
    grid = (B // Bt,)
    kernel = functools.partial(_hier_attn_kernel, S, H, d, nh, Bt)

    def run(weight_mode):
        def const_spec(shape):
            nd = len(shape)
            if weight_mode is None:
                return pl.BlockSpec(shape, lambda b: (0,) * nd)
            return pl.BlockSpec(shape, lambda b: (0,) * nd,
                                pipeline_mode=weight_mode)

        return pl.pallas_call(
            kernel,
            grid=grid,
            out_shape=jax.ShapeDtypeStruct((B, S, H), f32),
            in_specs=[
                pl.BlockSpec((Bt, 3, S, H), lambda b: (b, 0, 0, 0)),  # features
                const_spec(wslab.shape),                              # bf16 weights
                const_spec(bslab.shape),                              # f32 biases/norms
            ],
            out_specs=pl.BlockSpec((Bt, S, H), lambda b: (b, 0, 0)),
            compiler_params=pltpu.CompilerParams(
                dimension_semantics=("parallel",),
                vmem_limit_bytes=32 * 1024 * 1024),
        )(feats, wslab, bslab)

    try:
        # Weight slabs have constant index maps -> fetched once; single-buffer.
        return run(pl.Buffered(1))
    except Exception:
        # Fallback for jax versions without pipeline_mode / Buffered(1) support.
        return run(None)


def init_params(key, hidden_size, low_rank):
    H = hidden_size
    d = H // low_rank
    ks = jax.random.split(key, 16)

    def w(k, shape, scale=0.02):
        return scale * jax.random.normal(k, shape, jnp.float32)

    return dict(
        w0=w(ks[0], (d, H)), b0=w(ks[1], (d,)),                  # low_rank_layer
        w1=w(ks[2], (H, d)), b1=w(ks[3], (H,)),                  # low_rank_layer1
        in_proj_w=w(ks[4], (3 * d, d)), in_proj_b=w(ks[5], (3 * d,)),
        out_proj_w=w(ks[6], (d, d)), out_proj_b=w(ks[7], (d,)),
        ff1_w=w(ks[8], (d, d)), ff1_b=w(ks[9], (d,)),            # dim_feedforward == d
        ff2_w=w(ks[10], (d, d)), ff2_b=w(ks[11], (d,)),
        norm1_g=jnp.ones((d,), jnp.float32), norm1_b=jnp.zeros((d,), jnp.float32),
        norm2_g=jnp.ones((d,), jnp.float32), norm2_b=jnp.zeros((d,), jnp.float32),
        gate_v_w=w(ks[12], (H, H)), gate_v_b=w(ks[13], (H,)),
        gate_t_w=w(ks[14], (H, H)), gate_t_b=w(ks[15], (H,)),
    )


def reference_forward(id_feat, img_feat, txt_feat, params, nh=4):
    """Pure-JAX f32 reference mirroring the PyTorch module (eval mode)."""
    d = params['w0'].shape[0]
    hd = d // nh

    def linear(x, w, b):
        return x @ w.T + b

    def layer_norm(x, g, b, eps=1e-5):
        mu = x.mean(-1, keepdims=True)
        var = ((x - mu) ** 2).mean(-1, keepdims=True)
        return (x - mu) / jnp.sqrt(var + eps) * g + b

    def global_emb(x):
        z = linear(x, params['w0'], params['b0'])                 # (B,S,d)
        ipw, ipb = params['in_proj_w'], params['in_proj_b']
        q = linear(z, ipw[:d], ipb[:d])
        k = linear(z, ipw[d:2 * d], ipb[d:2 * d])
        v = linear(z, ipw[2 * d:], ipb[2 * d:])
        B, S, _ = z.shape
        qh = q.reshape(B, S, nh, hd).transpose(0, 2, 1, 3)
        kh = k.reshape(B, S, nh, hd).transpose(0, 2, 1, 3)
        vh = v.reshape(B, S, nh, hd).transpose(0, 2, 1, 3)
        sc = jnp.einsum('bhsd,bhtd->bhst', qh, kh) / math.sqrt(hd)
        p = jax.nn.softmax(sc, axis=-1)
        o = jnp.einsum('bhst,bhtd->bhsd', p, vh).transpose(0, 2, 1, 3).reshape(B, S, d)
        sa = linear(o, params['out_proj_w'], params['out_proj_b'])
        x1 = layer_norm(z + sa, params['norm1_g'], params['norm1_b'])
        ff = linear(jax.nn.relu(linear(x1, params['ff1_w'], params['ff1_b'])),
                    params['ff2_w'], params['ff2_b'])
        x2 = layer_norm(x1 + ff, params['norm2_g'], params['norm2_b'])
        return linear(x2, params['w1'], params['b1'])

    def gate(x, w, b):
        return jax.nn.sigmoid(linear(x, w, b))

    g_id = global_emb(id_feat)
    g_img = global_emb(img_feat)
    g_txt = global_emb(txt_feat)
    gv_id = gate(id_feat, params['gate_v_w'], params['gate_v_b'])
    img_refined = img_feat * gv_id + g_img * gate(g_id, params['gate_v_w'], params['gate_v_b'])
    txt_refined = txt_feat * gv_id + g_txt * gate(g_id, params['gate_t_w'], params['gate_t_b'])
    return id_feat + img_refined + txt_refined


if __name__ == "__main__":
    hidden_size, low_rank = 32, 2                 # d_model = 16, nhead = 4, head_dim = 4
    B, S = 2, 8

    key = jax.random.PRNGKey(0)
    kp, k1, k2, k3 = jax.random.split(key, 4)
    params = init_params(kp, hidden_size, low_rank)
    id_feat = jax.random.normal(k1, (B, S, hidden_size), jnp.float32)
    img_feat = jax.random.normal(k2, (B, S, hidden_size), jnp.float32)
    txt_feat = jax.random.normal(k3, (B, S, hidden_size), jnp.float32)

    out = hierarchical_attention_forward(id_feat, img_feat, txt_feat, params)
    out = jax.block_until_ready(out)

    ref = reference_forward(id_feat, img_feat, txt_feat, params)
    assert out.shape == (B, S, hidden_size)
    assert bool(jnp.all(jnp.isfinite(out)))
    max_err = float(jnp.max(jnp.abs(out - ref)))
    assert max_err < 2e-2, f"mismatch vs reference, max abs err = {max_err}"

    print("KERNEL_OK")
</pallas_src>

<mosaic_0001>
module attributes {stable_mosaic.version = 11 : i64} {
  func.func @_hier_attn_kernel(%arg0: i32, %arg1: memref<1x3x8x32xf32, #tpu.memory_space<vmem>>, %arg2: memref<7x32x64xbf16, #tpu.memory_space<vmem>>, %arg3: memref<11x64xf32, #tpu.memory_space<vmem>>, %arg4: memref<1x8x32xf32, #tpu.memory_space<vmem>>) attributes {dimension_semantics = [#tpu.dimension_semantics<parallel>], iteration_bounds = array<i64: 2>, scalar_prefetch = 0 : i64, scratch_operands = 0 : i64, tpu.core_type = #tpu.core_type<tc>, window_params = [{transform_indices = @transform_0, window_bounds = array<i64: 1, 3, 8, 32>}, {pipeline_mode = #tpu.pipeline_mode<synchronous>, transform_indices = @transform_1, window_bounds = array<i64: 7, 32, 64>}, {pipeline_mode = #tpu.pipeline_mode<synchronous>, transform_indices = @transform_2, window_bounds = array<i64: 11, 64>}, {transform_indices = @transform_3, window_bounds = array<i64: 1, 8, 32>}]} {
    %c0 = arith.constant 0 : index
    %c0_0 = arith.constant 0 : index
    %c0_1 = arith.constant 0 : index
    %c0_2 = arith.constant 0 : index
    %0 = vector.load %arg1[%c0, %c0_0, %c0_1, %c0_2] : memref<1x3x8x32xf32, #tpu.memory_space<vmem>>, vector<1x3x8x32xf32>
    %1 = vector.shape_cast %0 : vector<1x3x8x32xf32> to vector<24x32xf32>
    %c0_3 = arith.constant 0 : index
    %c0_4 = arith.constant 0 : index
    %c0_5 = arith.constant 0 : index
    %2 = vector.load %arg2[%c0_3, %c0_4, %c0_5] : memref<7x32x64xbf16, #tpu.memory_space<vmem>>, vector<1x32x16xbf16>
    %3 = vector.shape_cast %2 : vector<1x32x16xbf16> to vector<32x16xbf16>
    %4 = arith.truncf %1 : vector<24x32xf32> to vector<24x32xbf16>
    %cst = arith.constant dense<0.000000e+00> : vector<24x16xf32>
    %5 = tpu.matmul %4, %3, %cst {dimension_numbers = #tpu.dot_dimension_numbers<[1], [0], [0], [1], [0, 0, 1, 1], [], []>} : vector<24x32xbf16>, vector<32x16xbf16>, vector<24x16xf32> -> vector<24x16xf32>
    %c0_6 = arith.constant 0 : index
    %c0_7 = arith.constant 0 : index
    %6 = vector.load %arg3[%c0_6, %c0_7] : memref<11x64xf32, #tpu.memory_space<vmem>>, vector<1x16xf32>
    %7 = vector.broadcast %6 : vector<1x16xf32> to vector<24x16xf32>
    %8 = arith.addf %5, %7 : vector<24x16xf32>
    %c1 = arith.constant 1 : index
    %c0_8 = arith.constant 0 : index
    %c0_9 = arith.constant 0 : index
    %9 = vector.load %arg2[%c1, %c0_8, %c0_9] : memref<7x32x64xbf16, #tpu.memory_space<vmem>>, vector<1x16x48xbf16>
    %10 = vector.shape_cast %9 : vector<1x16x48xbf16> to vector<16x48xbf16>
    %11 = arith.truncf %8 : vector<24x16xf32> to vector<24x16xbf16>
    %cst_10 = arith.constant dense<0.000000e+00> : vector<24x48xf32>
    %12 = tpu.matmul %11, %10, %cst_10 {dimension_numbers = #tpu.dot_dimension_numbers<[1], [0], [0], [1], [0, 0, 1, 1], [], []>} : vector<24x16xbf16>, vector<16x48xbf16>, vector<24x48xf32> -> vector<24x48xf32>
    %c1_11 = arith.constant 1 : index
    %c0_12 = arith.constant 0 : index
    %13 = vector.load %arg3[%c1_11, %c0_12] : memref<11x64xf32, #tpu.memory_space<vmem>>, vector<1x48xf32>
    %14 = vector.broadcast %13 : vector<1x48xf32> to vector<24x48xf32>
    %15 = arith.addf %12, %14 : vector<24x48xf32>
    %16 = vector.extract_strided_slice %15 {offsets = [0, 0], sizes = [24, 4], strides = [1, 1]} : vector<24x48xf32> to vector<24x4xf32>
    %17 = vector.shape_cast %16 : vector<24x4xf32> to vector<3x8x4xf32>
    %18 = vector.extract_strided_slice %15 {offsets = [0, 16], sizes = [24, 4], strides = [1, 1]} : vector<24x48xf32> to vector<24x4xf32>
    %19 = vector.shape_cast %18 : vector<24x4xf32> to vector<3x8x4xf32>
    %20 = vector.extract_strided_slice %15 {offsets = [0, 32], sizes = [24, 4], strides = [1, 1]} : vector<24x48xf32> to vector<24x4xf32>
    %21 = vector.shape_cast %20 : vector<24x4xf32> to vector<3x8x4xf32>
    %22 = arith.truncf %17 : vector<3x8x4xf32> to vector<3x8x4xbf16>
    %23 = arith.truncf %19 : vector<3x8x4xf32> to vector<3x8x4xbf16>
    "tpu.trace_start"() <{level = 10 : i32, message = "bsd,btd->bst"}> : () -> ()
    %cst_13 = arith.constant dense<0.000000e+00> : vector<3x8x8xf32>
    %24 = tpu.matmul %22, %23, %cst_13 {dimension_numbers = #tpu.dot_dimension_numbers<[2], [2], [1], [1], [0, 0, 0, 1, 1, 1], [0], [0]>} : vector<3x8x4xbf16>, vector<3x8x4xbf16>, vector<3x8x8xf32> -> vector<3x8x8xf32>
    "tpu.trace_stop"() : () -> ()
    %cst_14 = arith.constant 5.000000e-01 : f32
    %25 = vector.broadcast %cst_14 : f32 to vector<3x8x8xf32>
    %26 = arith.mulf %24, %25 : vector<3x8x8xf32>
    %cst_15 = arith.constant dense<0xFF800000> : vector<3x8xf32>
    %27 = vector.multi_reduction <maximumf>, %26, %cst_15 [2] : vector<3x8x8xf32> to vector<3x8xf32>
    %28 = vector.shape_cast %27 : vector<3x8xf32> to vector<3x8x1xf32>
    %29 = vector.broadcast %28 : vector<3x8x1xf32> to vector<3x8x8xf32>
    %30 = arith.subf %26, %29 : vector<3x8x8xf32>
    %31 = math.exp %30 : vector<3x8x8xf32>
    %cst_16 = arith.constant dense<0.000000e+00> : vector<3x8xf32>
    %32 = vector.multi_reduction <add>, %31, %cst_16 [2] : vector<3x8x8xf32> to vector<3x8xf32>
    %33 = vector.shape_cast %32 : vector<3x8xf32> to vector<3x8x1xf32>
    %34 = tpu.reciprocal %33 {approx = true} : vector<3x8x1xf32> -> vector<3x8x1xf32>
    %35 = arith.truncf %31 : vector<3x8x8xf32> to vector<3x8x8xbf16>
    %36 = arith.truncf %21 : vector<3x8x4xf32> to vector<3x8x4xbf16>
    "tpu.trace_start"() <{level = 10 : i32, message = "bst,btd->bsd"}> : () -> ()
    %cst_17 = arith.constant dense<0.000000e+00> : vector<3x8x4xf32>
    %37 = tpu.matmul %35, %36, %cst_17 {dimension_numbers = #tpu.dot_dimension_numbers<[2], [1], [1], [2], [0, 0, 0, 1, 1, 2], [0], [0]>} : vector<3x8x8xbf16>, vector<3x8x4xbf16>, vector<3x8x4xf32> -> vector<3x8x4xf32>
    "tpu.trace_stop"() : () -> ()
    %38 = vector.broadcast %34 : vector<3x8x1xf32> to vector<3x8x4xf32>
    %39 = arith.mulf %37, %38 : vector<3x8x4xf32>
    %40 = vector.shape_cast %39 : vector<3x8x4xf32> to vector<24x4xf32>
    %41 = vector.extract_strided_slice %15 {offsets = [0, 4], sizes = [24, 4], strides = [1, 1]} : vector<24x48xf32> to vector<24x4xf32>
    %42 = vector.shape_cast %41 : vector<24x4xf32> to vector<3x8x4xf32>
    %43 = vector.extract_strided_slice %15 {offsets = [0, 20], sizes = [24, 4], strides = [1, 1]} : vector<24x48xf32> to vector<24x4xf32>
    %44 = vector.shape_cast %43 : vector<24x4xf32> to vector<3x8x4xf32>
    %45 = vector.extract_strided_slice %15 {offsets = [0, 36], sizes = [24, 4], strides = [1, 1]} : vector<24x48xf32> to vector<24x4xf32>
    %46 = vector.shape_cast %45 : vector<24x4xf32> to vector<3x8x4xf32>
    %47 = arith.truncf %42 : vector<3x8x4xf32> to vector<3x8x4xbf16>
    %48 = arith.truncf %44 : vector<3x8x4xf32> to vector<3x8x4xbf16>
    "tpu.trace_start"() <{level = 10 : i32, message = "bsd,btd->bst"}> : () -> ()
    %cst_18 = arith.constant dense<0.000000e+00> : vector<3x8x8xf32>
    %49 = tpu.matmul %47, %48, %cst_18 {dimension_numbers = #tpu.dot_dimension_numbers<[2], [2], [1], [1], [0, 0, 0, 1, 1, 1], [0], [0]>} : vector<3x8x4xbf16>, vector<3x8x4xbf16>, vector<3x8x8xf32> -> vector<3x8x8xf32>
    "tpu.trace_stop"() : () -> ()
    %cst_19 = arith.constant 5.000000e-01 : f32
    %50 = vector.broadcast %cst_19 : f32 to vector<3x8x8xf32>
    %51 = arith.mulf %49, %50 : vector<3x8x8xf32>
    %cst_20 = arith.constant dense<0xFF800000> : vector<3x8xf32>
    %52 = vector.multi_reduction <maximumf>, %51, %cst_20 [2] : vector<3x8x8xf32> to vector<3x8xf32>
    %53 = vector.shape_cast %52 : vector<3x8xf32> to vector<3x8x1xf32>
    %54 = vector.broadcast %53 : vector<3x8x1xf32> to vector<3x8x8xf32>
    %55 = arith.subf %51, %54 : vector<3x8x8xf32>
    %56 = math.exp %55 : vector<3x8x8xf32>
    %cst_21 = arith.constant dense<0.000000e+00> : vector<3x8xf32>
    %57 = vector.multi_reduction <add>, %56, %cst_21 [2] : vector<3x8x8xf32> to vector<3x8xf32>
    %58 = vector.shape_cast %57 : vector<3x8xf32> to vector<3x8x1xf32>
    %59 = tpu.reciprocal %58 {approx = true} : vector<3x8x1xf32> -> vector<3x8x1xf32>
    %60 = arith.truncf %56 : vector<3x8x8xf32> to vector<3x8x8xbf16>
    %61 = arith.truncf %46 : vector<3x8x4xf32> to vector<3x8x4xbf16>
    "tpu.trace_start"() <{level = 10 : i32, message = "bst,btd->bsd"}> : () -> ()
    %cst_22 = arith.constant dense<0.000000e+00> : vector<3x8x4xf32>
    %62 = tpu.matmul %60, %61, %cst_22 {dimension_numbers = #tpu.dot_dimension_numbers<[2], [1], [1], [2], [0, 0, 0, 1, 1, 2], [0], [0]>} : vector<3x8x8xbf16>, vector<3x8x4xbf16>, vector<3x8x4xf32> -> vector<3x8x4xf32>
    "tpu.trace_stop"() : () -> ()
    %63 = vector.broadcast %59 : vector<3x8x1xf32> to vector<3x8x4xf32>
    %64 = arith.mulf %62, %63 : vector<3x8x4xf32>
    %65 = vector.shape_cast %64 : vector<3x8x4xf32> to vector<24x4xf32>
    %66 = vector.extract_strided_slice %15 {offsets = [0, 8], sizes = [24, 4], strides = [1, 1]} : vector<24x48xf32> to vector<24x4xf32>
    %67 = vector.shape_cast %66 : vector<24x4xf32> to vector<3x8x4xf32>
    %68 = vector.extract_strided_slice %15 {offsets = [0, 24], sizes = [24, 4], strides = [1, 1]} : vector<24x48xf32> to vector<24x4xf32>
    %69 = vector.shape_cast %68 : vector<24x4xf32> to vector<3x8x4xf32>
    %70 = vector.extract_strided_slice %15 {offsets = [0, 40], sizes = [24, 4], strides = [1, 1]} : vector<24x48xf32> to vector<24x4xf32>
    %71 = vector.shape_cast %70 : vector<24x4xf32> to vector<3x8x4xf32>
    %72 = arith.truncf %67 : vector<3x8x4xf32> to vector<3x8x4xbf16>
    %73 = arith.truncf %69 : vector<3x8x4xf32> to vector<3x8x4xbf16>
    "tpu.trace_start"() <{level = 10 : i32, message = "bsd,btd->bst"}> : () -> ()
    %cst_23 = arith.constant dense<0.000000e+00> : vector<3x8x8xf32>
    %74 = tpu.matmul %72, %73, %cst_23 {dimension_numbers = #tpu.dot_dimension_numbers<[2], [2], [1], [1], [0, 0, 0, 1, 1, 1], [0], [0]>} : vector<3x8x4xbf16>, vector<3x8x4xbf16>, vector<3x8x8xf32> -> vector<3x8x8xf32>
    "tpu.trace_stop"() : () -> ()
    %cst_24 = arith.constant 5.000000e-01 : f32
    %75 = vector.broadcast %cst_24 : f32 to vector<3x8x8xf32>
    %76 = arith.mulf %74, %75 : vector<3x8x8xf32>
    %cst_25 = arith.constant dense<0xFF800000> : vector<3x8xf32>
    %77 = vector.multi_reduction <maximumf>, %76, %cst_25 [2] : vector<3x8x8xf32> to vector<3x8xf32>
    %78 = vector.shape_cast %77 : vector<3x8xf32> to vector<3x8x1xf32>
    %79 = vector.broadcast %78 : vector<3x8x1xf32> to vector<3x8x8xf32>
    %80 = arith.subf %76, %79 : vector<3x8x8xf32>
    %81 = math.exp %80 : vector<3x8x8xf32>
    %cst_26 = arith.constant dense<0.000000e+00> : vector<3x8xf32>
    %82 = vector.multi_reduction <add>, %81, %cst_26 [2] : vector<3x8x8xf32> to vector<3x8xf32>
    %83 = vector.shape_cast %82 : vector<3x8xf32> to vector<3x8x1xf32>
    %84 = tpu.reciprocal %83 {approx = true} : vector<3x8x1xf32> -> vector<3x8x1xf32>
    %85 = arith.truncf %81 : vector<3x8x8xf32> to vector<3x8x8xbf16>
    %86 = arith.truncf %71 : vector<3x8x4xf32> to vector<3x8x4xbf16>
    "tpu.trace_start"() <{level = 10 : i32, message = "bst,btd->bsd"}> : () -> ()
    %cst_27 = arith.constant dense<0.000000e+00> : vector<3x8x4xf32>
    %87 = tpu.matmul %85, %86, %cst_27 {dimension_numbers = #tpu.dot_dimension_numbers<[2], [1], [1], [2], [0, 0, 0, 1, 1, 2], [0], [0]>} : vector<3x8x8xbf16>, vector<3x8x4xbf16>, vector<3x8x4xf32> -> vector<3x8x4xf32>
    "tpu.trace_stop"() : () -> ()
    %88 = vector.broadcast %84 : vector<3x8x1xf32> to vector<3x8x4xf32>
    %89 = arith.mulf %87, %88 : vector<3x8x4xf32>
    %90 = vector.shape_cast %89 : vector<3x8x4xf32> to vector<24x4xf32>
    %91 = vector.extract_strided_slice %15 {offsets = [0, 12], sizes = [24, 4], strides = [1, 1]} : vector<24x48xf32> to vector<24x4xf32>
    %92 = vector.shape_cast %91 : vector<24x4xf32> to vector<3x8x4xf32>
    %93 = vector.extract_strided_slice %15 {offsets = [0, 28], sizes = [24, 4], strides = [1, 1]} : vector<24x48xf32> to vector<24x4xf32>
    %94 = vector.shape_cast %93 : vector<24x4xf32> to vector<3x8x4xf32>
    %95 = vector.extract_strided_slice %15 {offsets = [0, 44], sizes = [24, 4], strides = [1, 1]} : vector<24x48xf32> to vector<24x4xf32>
    %96 = vector.shape_cast %95 : vector<24x4xf32> to vector<3x8x4xf32>
    %97 = arith.truncf %92 : vector<3x8x4xf32> to vector<3x8x4xbf16>
    %98 = arith.truncf %94 : vector<3x8x4xf32> to vector<3x8x4xbf16>
    "tpu.trace_start"() <{level = 10 : i32, message = "bsd,btd->bst"}> : () -> ()
    %cst_28 = arith.constant dense<0.000000e+00> : vector<3x8x8xf32>
    %99 = tpu.matmul %97, %98, %cst_28 {dimension_numbers = #tpu.dot_dimension_numbers<[2], [2], [1], [1], [0, 0, 0, 1, 1, 1], [0], [0]>} : vector<3x8x4xbf16>, vector<3x8x4xbf16>, vector<3x8x8xf32> -> vector<3x8x8xf32>
    "tpu.trace_stop"() : () -> ()
    %cst_29 = arith.constant 5.000000e-01 : f32
    %100 = vector.broadcast %cst_29 : f32 to vector<3x8x8xf32>
    %101 = arith.mulf %99, %100 : vector<3x8x8xf32>
    %cst_30 = arith.constant dense<0xFF800000> : vector<3x8xf32>
    %102 = vector.multi_reduction <maximumf>, %101, %cst_30 [2] : vector<3x8x8xf32> to vector<3x8xf32>
    %103 = vector.shape_cast %102 : vector<3x8xf32> to vector<3x8x1xf32>
    %104 = vector.broadcast %103 : vector<3x8x1xf32> to vector<3x8x8xf32>
    %105 = arith.subf %101, %104 : vector<3x8x8xf32>
    %106 = math.exp %105 : vector<3x8x8xf32>
    %cst_31 = arith.constant dense<0.000000e+00> : vector<3x8xf32>
    %107 = vector.multi_reduction <add>, %106, %cst_31 [2] : vector<3x8x8xf32> to vector<3x8xf32>
    %108 = vector.shape_cast %107 : vector<3x8xf32> to vector<3x8x1xf32>
    %109 = tpu.reciprocal %108 {approx = true} : vector<3x8x1xf32> -> vector<3x8x1xf32>
    %110 = arith.truncf %106 : vector<3x8x8xf32> to vector<3x8x8xbf16>
    %111 = arith.truncf %96 : vector<3x8x4xf32> to vector<3x8x4xbf16>
    "tpu.trace_start"() <{level = 10 : i32, message = "bst,btd->bsd"}> : () -> ()
    %cst_32 = arith.constant dense<0.000000e+00> : vector<3x8x4xf32>
    %112 = tpu.matmul %110, %111, %cst_32 {dimension_numbers = #tpu.dot_dimension_numbers<[2], [1], [1], [2], [0, 0, 0, 1, 1, 2], [0], [0]>} : vector<3x8x8xbf16>, vector<3x8x4xbf16>, vector<3x8x4xf32> -> vector<3x8x4xf32>
    "tpu.trace_stop"() : () -> ()
    %113 = vector.broadcast %109 : vector<3x8x1xf32> to vector<3x8x4xf32>
    %114 = arith.mulf %112, %113 : vector<3x8x4xf32>
    %115 = vector.shape_cast %114 : vector<3x8x4xf32> to vector<24x4xf32>
    %116 = tpu.concatenate %40, %65, %90, %115 in 1 : vector<24x4xf32>, vector<24x4xf32>, vector<24x4xf32>, vector<24x4xf32> -> vector<24x16xf32>
    %c2 = arith.constant 2 : index
    %c0_33 = arith.constant 0 : index
    %c0_34 = arith.constant 0 : index
    %117 = vector.load %arg2[%c2, %c0_33, %c0_34] : memref<7x32x64xbf16, #tpu.memory_space<vmem>>, vector<1x16x16xbf16>
    %118 = vector.shape_cast %117 : vector<1x16x16xbf16> to vector<16x16xbf16>
    %119 = arith.truncf %116 : vector<24x16xf32> to vector<24x16xbf16>
    %cst_35 = arith.constant dense<0.000000e+00> : vector<24x16xf32>
    %120 = tpu.matmul %119, %118, %cst_35 {dimension_numbers = #tpu.dot_dimension_numbers<[1], [0], [0], [1], [0, 0, 1, 1], [], []>} : vector<24x16xbf16>, vector<16x16xbf16>, vector<24x16xf32> -> vector<24x16xf32>
    %c2_36 = arith.constant 2 : index
    %c0_37 = arith.constant 0 : index
    %121 = vector.load %arg3[%c2_36, %c0_37] : memref<11x64xf32, #tpu.memory_space<vmem>>, vector<1x16xf32>
    %122 = vector.broadcast %121 : vector<1x16xf32> to vector<24x16xf32>
    %123 = arith.addf %120, %122 : vector<24x16xf32>
    %124 = arith.addf %8, %123 : vector<24x16xf32>
    %cst_38 = arith.constant dense<0.000000e+00> : vector<24xf32>
    %125 = vector.multi_reduction <add>, %124, %cst_38 [1] : vector<24x16xf32> to vector<24xf32>
    %126 = vector.shape_cast %125 : vector<24xf32> to vector<24x1xf32>
    %cst_39 = arith.constant 1.600000e+01 : f32
    %127 = vector.broadcast %cst_39 : f32 to vector<24x1xf32>
    %128 = arith.divf %126, %127 : vector<24x1xf32>
    %129 = vector.broadcast %128 : vector<24x1xf32> to vector<24x16xf32>
    %130 = arith.subf %124, %129 : vector<24x16xf32>
    %131 = arith.mulf %130, %130 : vector<24x16xf32>
    %cst_40 = arith.constant dense<0.000000e+00> : vector<24xf32>
    %132 = vector.multi_reduction <add>, %131, %cst_40 [1] : vector<24x16xf32> to vector<24xf32>
    %133 = vector.shape_cast %132 : vector<24xf32> to vector<24x1xf32>
    %cst_41 = arith.constant 1.600000e+01 : f32
    %134 = vector.broadcast %cst_41 : f32 to vector<24x1xf32>
    %135 = arith.divf %133, %134 : vector<24x1xf32>
    %136 = vector.broadcast %128 : vector<24x1xf32> to vector<24x16xf32>
    %137 = arith.subf %124, %136 : vector<24x16xf32>
    %cst_42 = arith.constant 9.99999974E-6 : f32
    %138 = vector.broadcast %cst_42 : f32 to vector<24x1xf32>
    %139 = arith.addf %135, %138 : vector<24x1xf32>
    %140 = math.rsqrt %139 : vector<24x1xf32>
    %141 = vector.broadcast %140 : vector<24x1xf32> to vector<24x16xf32>
    %142 = arith.mulf %137, %141 : vector<24x16xf32>
    %c5 = arith.constant 5 : index
    %c0_43 = arith.constant 0 : index
    %143 = vector.load %arg3[%c5, %c0_43] : memref<11x64xf32, #tpu.memory_space<vmem>>, vector<1x16xf32>
    %144 = vector.broadcast %143 : vector<1x16xf32> to vector<24x16xf32>
    %145 = arith.mulf %142, %144 : vector<24x16xf32>
    %c6 = arith.constant 6 : index
    %c0_44 = arith.constant 0 : index
    %146 = vector.load %arg3[%c6, %c0_44] : memref<11x64xf32, #tpu.memory_space<vmem>>, vector<1x16xf32>
    %147 = vector.broadcast %146 : vector<1x16xf32> to vector<24x16xf32>
    %148 = arith.addf %145, %147 : vector<24x16xf32>
    %c3 = arith.constant 3 : index
    %c0_45 = arith.constant 0 : index
    %c0_46 = arith.constant 0 : index
    %149 = vector.load %arg2[%c3, %c0_45, %c0_46] : memref<7x32x64xbf16, #tpu.memory_space<vmem>>, vector<1x16x16xbf16>
    %150 = vector.shape_cast %149 : vector<1x16x16xbf16> to vector<16x16xbf16>
    %151 = arith.truncf %148 : vector<24x16xf32> to vector<24x16xbf16>
    %cst_47 = arith.constant dense<0.000000e+00> : vector<24x16xf32>
    %152 = tpu.matmul %151, %150, %cst_47 {dimension_numbers = #tpu.dot_dimension_numbers<[1], [0], [0], [1], [0, 0, 1, 1], [], []>} : vector<24x16xbf16>, vector<16x16xbf16>, vector<24x16xf32> -> vector<24x16xf32>
    %c3_48 = arith.constant 3 : index
    %c0_49 = arith.constant 0 : index
    %153 = vector.load %arg3[%c3_48, %c0_49] : memref<11x64xf32, #tpu.memory_space<vmem>>, vector<1x16xf32>
    %154 = vector.broadcast %153 : vector<1x16xf32> to vector<24x16xf32>
    %155 = arith.addf %152, %154 : vector<24x16xf32>
    %cst_50 = arith.constant 0.000000e+00 : f32
    %156 = vector.broadcast %cst_50 : f32 to vector<24x16xf32>
    %157 = arith.maximumf %155, %156 : vector<24x16xf32>
    %c4 = arith.constant 4 : index
    %c0_51 = arith.constant 0 : index
    %c0_52 = arith.constant 0 : index
    %158 = vector.load %arg2[%c4, %c0_51, %c0_52] : memref<7x32x64xbf16, #tpu.memory_space<vmem>>, vector<1x16x16xbf16>
    %159 = vector.shape_cast %158 : vector<1x16x16xbf16> to vector<16x16xbf16>
    %160 = arith.truncf %157 : vector<24x16xf32> to vector<24x16xbf16>
    %cst_53 = arith.constant dense<0.000000e+00> : vector<24x16xf32>
    %161 = tpu.matmul %160, %159, %cst_53 {dimension_numbers = #tpu.dot_dimension_numbers<[1], [0], [0], [1], [0, 0, 1, 1], [], []>} : vector<24x16xbf16>, vector<16x16xbf16>, vector<24x16xf32> -> vector<24x16xf32>
    %c4_54 = arith.constant 4 : index
    %c0_55 = arith.constant 0 : index
    %162 = vector.load %arg3[%c4_54, %c0_55] : memref<11x64xf32, #tpu.memory_space<vmem>>, vector<1x16xf32>
    %163 = vector.broadcast %162 : vector<1x16xf32> to vector<24x16xf32>
    %164 = arith.addf %161, %163 : vector<24x16xf32>
    %165 = arith.addf %148, %164 : vector<24x16xf32>
    %cst_56 = arith.constant dense<0.000000e+00> : vector<24xf32>
    %166 = vector.multi_reduction <add>, %165, %cst_56 [1] : vector<24x16xf32> to vector<24xf32>
    %167 = vector.shape_cast %166 : vector<24xf32> to vector<24x1xf32>
    %cst_57 = arith.constant 1.600000e+01 : f32
    %168 = vector.broadcast %cst_57 : f32 to vector<24x1xf32>
    %169 = arith.divf %167, %168 : vector<24x1xf32>
    %170 = vector.broadcast %169 : vector<24x1xf32> to vector<24x16xf32>
    %171 = arith.subf %165, %170 : vector<24x16xf32>
    %172 = arith.mulf %171, %171 : vector<24x16xf32>
    %cst_58 = arith.constant dense<0.000000e+00> : vector<24xf32>
    %173 = vector.multi_reduction <add>, %172, %cst_58 [1] : vector<24x16xf32> to vector<24xf32>
    %174 = vector.shape_cast %173 : vector<24xf32> to vector<24x1xf32>
    %cst_59 = arith.constant 1.600000e+01 : f32
    %175 = vector.broadcast %cst_59 : f32 to vector<24x1xf32>
    %176 = arith.divf %174, %175 : vector<24x1xf32>
    %177 = vector.broadcast %169 : vector<24x1xf32> to vector<24x16xf32>
    %178 = arith.subf %165, %177 : vector<24x16xf32>
    %cst_60 = arith.constant 9.99999974E-6 : f32
    %179 = vector.broadcast %cst_60 : f32 to vector<24x1xf32>
    %180 = arith.addf %176, %179 : vector<24x1xf32>
    %181 = math.rsqrt %180 : vector<24x1xf32>
    %182 = vector.broadcast %181 : vector<24x1xf32> to vector<24x16xf32>
    %183 = arith.mulf %178, %182 : vector<24x16xf32>
    %c7 = arith.constant 7 : index
    %c0_61 = arith.constant 0 : index
    %184 = vector.load %arg3[%c7, %c0_61] : memref<11x64xf32, #tpu.memory_space<vmem>>, vector<1x16xf32>
    %185 = vector.broadcast %184 : vector<1x16xf32> to vector<24x16xf32>
    %186 = arith.mulf %183, %185 : vector<24x16xf32>
    %c8 = arith.constant 8 : index
    %c0_62 = arith.constant 0 : index
    %187 = vector.load %arg3[%c8, %c0_62] : memref<11x64xf32, #tpu.memory_space<vmem>>, vector<1x16xf32>
    %188 = vector.broadcast %187 : vector<1x16xf32> to vector<24x16xf32>
    %189 = arith.addf %186, %188 : vector<24x16xf32>
    %c5_63 = arith.constant 5 : index
    %c0_64 = arith.constant 0 : index
    %c0_65 = arith.constant 0 : index
    %190 = vector.load %arg2[%c5_63, %c0_64, %c0_65] : memref<7x32x64xbf16, #tpu.memory_space<vmem>>, vector<1x16x32xbf16>
    %191 = vector.shape_cast %190 : vector<1x16x32xbf16> to vector<16x32xbf16>
    %192 = arith.truncf %189 : vector<24x16xf32> to vector<24x16xbf16>
    %cst_66 = arith.constant dense<0.000000e+00> : vector<24x32xf32>
    %193 = tpu.matmul %192, %191, %cst_66 {dimension_numbers = #tpu.dot_dimension_numbers<[1], [0], [0], [1], [0, 0, 1, 1], [], []>} : vector<24x16xbf16>, vector<16x32xbf16>, vector<24x32xf32> -> vector<24x32xf32>
    %c9 = arith.constant 9 : index
    %c0_67 = arith.constant 0 : index
    %194 = vector.load %arg3[%c9, %c0_67] : memref<11x64xf32, #tpu.memory_space<vmem>>, vector<1x32xf32>
    %195 = vector.broadcast %194 : vector<1x32xf32> to vector<24x32xf32>
    %196 = arith.addf %193, %195 : vector<24x32xf32>
    %197 = vector.shape_cast %196 : vector<24x32xf32> to vector<1x3x8x32xf32>
    %198 = vector.extract_strided_slice %0 {offsets = [0, 0, 0, 0], sizes = [1, 1, 8, 32], strides = [1, 1, 1, 1]} : vector<1x3x8x32xf32> to vector<1x1x8x32xf32>
    %199 = vector.shape_cast %198 : vector<1x1x8x32xf32> to vector<1x8x32xf32>
    %200 = vector.extract_strided_slice %0 {offsets = [0, 1, 0, 0], sizes = [1, 1, 8, 32], strides = [1, 1, 1, 1]} : vector<1x3x8x32xf32> to vector<1x1x8x32xf32>
    %201 = vector.shape_cast %200 : vector<1x1x8x32xf32> to vector<1x8x32xf32>
    %202 = vector.extract_strided_slice %0 {offsets = [0, 2, 0, 0], sizes = [1, 1, 8, 32], strides = [1, 1, 1, 1]} : vector<1x3x8x32xf32> to vector<1x1x8x32xf32>
    %203 = vector.shape_cast %202 : vector<1x1x8x32xf32> to vector<1x8x32xf32>
    %204 = vector.extract_strided_slice %197 {offsets = [0, 0, 0, 0], sizes = [1, 1, 8, 32], strides = [1, 1, 1, 1]} : vector<1x3x8x32xf32> to vector<1x1x8x32xf32>
    %205 = vector.shape_cast %204 : vector<1x1x8x32xf32> to vector<1x8x32xf32>
    %206 = vector.extract_strided_slice %197 {offsets = [0, 1, 0, 0], sizes = [1, 1, 8, 32], strides = [1, 1, 1, 1]} : vector<1x3x8x32xf32> to vector<1x1x8x32xf32>
    %207 = vector.shape_cast %206 : vector<1x1x8x32xf32> to vector<1x8x32xf32>
    %208 = vector.extract_strided_slice %197 {offsets = [0, 2, 0, 0], sizes = [1, 1, 8, 32], strides = [1, 1, 1, 1]} : vector<1x3x8x32xf32> to vector<1x1x8x32xf32>
    %209 = vector.shape_cast %208 : vector<1x1x8x32xf32> to vector<1x8x32xf32>
    %210 = vector.shape_cast %199 : vector<1x8x32xf32> to vector<8x32xf32>
    %211 = vector.shape_cast %205 : vector<1x8x32xf32> to vector<8x32xf32>
    %212 = tpu.concatenate %210, %211 in 0 : vector<8x32xf32>, vector<8x32xf32> -> vector<16x32xf32>
    %c6_68 = arith.constant 6 : index
    %c0_69 = arith.constant 0 : index
    %c0_70 = arith.constant 0 : index
    %213 = vector.load %arg2[%c6_68, %c0_69, %c0_70] : memref<7x32x64xbf16, #tpu.memory_space<vmem>>, vector<1x32x64xbf16>
    %214 = vector.shape_cast %213 : vector<1x32x64xbf16> to vector<32x64xbf16>
    %215 = arith.truncf %212 : vector<16x32xf32> to vector<16x32xbf16>
    %cst_71 = arith.constant dense<0.000000e+00> : vector<16x64xf32>
    %216 = tpu.matmul %215, %214, %cst_71 {dimension_numbers = #tpu.dot_dimension_numbers<[1], [0], [0], [1], [0, 0, 1, 1], [], []>} : vector<16x32xbf16>, vector<32x64xbf16>, vector<16x64xf32> -> vector<16x64xf32>
    %c10 = arith.constant 10 : index
    %c0_72 = arith.constant 0 : index
    %217 = vector.load %arg3[%c10, %c0_72] : memref<11x64xf32, #tpu.memory_space<vmem>>, vector<1x64xf32>
    %218 = vector.broadcast %217 : vector<1x64xf32> to vector<16x64xf32>
    %219 = arith.addf %216, %218 : vector<16x64xf32>
    %220 = arith.negf %219 : vector<16x64xf32>
    %221 = math.exp %220 : vector<16x64xf32>
    %cst_73 = arith.constant 1.000000e+00 : f32
    %222 = vector.broadcast %cst_73 : f32 to vector<16x64xf32>
    %223 = arith.addf %222, %221 : vector<16x64xf32>
    %224 = arith.divf %222, %223 : vector<16x64xf32>
    %225 = vector.extract_strided_slice %224 {offsets = [0, 0], sizes = [8, 32], strides = [1, 1]} : vector<16x64xf32> to vector<8x32xf32>
    %226 = vector.shape_cast %225 : vector<8x32xf32> to vector<1x8x32xf32>
    %227 = vector.extract_strided_slice %224 {offsets = [8, 0], sizes = [8, 32], strides = [1, 1]} : vector<16x64xf32> to vector<8x32xf32>
    %228 = vector.shape_cast %227 : vector<8x32xf32> to vector<1x8x32xf32>
    %229 = vector.extract_strided_slice %224 {offsets = [8, 32], sizes = [8, 32], strides = [1, 1]} : vector<16x64xf32> to vector<8x32xf32>
    %230 = vector.shape_cast %229 : vector<8x32xf32> to vector<1x8x32xf32>
    %231 = arith.mulf %201, %226 : vector<1x8x32xf32>
    %232 = arith.mulf %207, %228 : vector<1x8x32xf32>
    %233 = arith.addf %231, %232 : vector<1x8x32xf32>
    %234 = arith.mulf %203, %226 : vector<1x8x32xf32>
    %235 = arith.mulf %209, %230 : vector<1x8x32xf32>
    %236 = arith.addf %234, %235 : vector<1x8x32xf32>
    %237 = arith.addf %199, %233 : vector<1x8x32xf32>
    %238 = arith.addf %237, %236 : vector<1x8x32xf32>
    %c0_74 = arith.constant 0 : index
    %c0_75 = arith.constant 0 : index
    %c0_76 = arith.constant 0 : index
    %239 = vector.load %arg4[%c0_74, %c0_75, %c0_76] : memref<1x8x32xf32, #tpu.memory_space<vmem>>, vector<1x8x32xf32>
    tpu.vector_store %arg4[%c0_74, %c0_75, %c0_76], %238 {strides = array<i32>} : memref<1x8x32xf32, #tpu.memory_space<vmem>>, vector<1x8x32xf32>,
    return
  }
  func.func @transform_0(%arg0: i32) -> (i32, i32, i32, i32) {
    %c0_i32 = arith.constant 0 : i32
    %c0_i32_0 = arith.constant 0 : i32
    %c0_i32_1 = arith.constant 0 : i32
    %c0_i32_2 = arith.constant 0 : i32
    return %arg0, %c0_i32, %c0_i32_0, %c0_i32_1 : i32, i32, i32, i32
  }
  func.func @transform_1(%arg0: i32) -> (i32, i32, i32) {
    %c0_i32 = arith.constant 0 : i32
    %c0_i32_0 = arith.constant 0 : i32
    %c0_i32_1 = arith.constant 0 : i32
    %c0_i32_2 = arith.constant 0 : i32
    return %c0_i32, %c0_i32_0, %c0_i32_1 : i32, i32, i32
  }
  func.func @transform_2(%arg0: i32) -> (i32, i32) {
    %c0_i32 = arith.constant 0 : i32
    %c0_i32_0 = arith.constant 0 : i32
    %c0_i32_1 = arith.constant 0 : i32
    return %c0_i32, %c0_i32_0 : i32, i32
  }
  func.func @transform_3(%arg0: i32) -> (i32, i32, i32) {
    %c0_i32 = arith.constant 0 : i32
    %c0_i32_0 = arith.constant 0 : i32
    %c0_i32_1 = arith.constant 0 : i32
    return %arg0, %c0_i32, %c0_i32_0 : i32, i32, i32
  }
}

module attributes {stable_mosaic.version = 11 : i64} {
  func.func @_hier_attn_kernel(%arg0: i32, %arg1: memref<1x3x8x32xf32, #tpu.memory_space<vmem>>, %arg2: memref<7x32x64xbf16, #tpu.memory_space<vmem>>, %arg3: memref<11x64xf32, #tpu.memory_space<vmem>>, %arg4: memref<1x8x32xf32, #tpu.memory_space<vmem>>) attributes {dimension_semantics = [#tpu.dimension_semantics<parallel>], iteration_bounds = array<i64: 2>, scalar_prefetch = 0 : i64, scratch_operands = 0 : i64, tpu.core_type = #tpu.core_type<tc>, window_params = [{transform_indices = @transform_0, window_bounds = array<i64: 1, 3, 8, 32>}, {pipeline_mode = #tpu.pipeline_mode<synchronous>, transform_indices = @transform_1, window_bounds = array<i64: 7, 32, 64>}, {pipeline_mode = #tpu.pipeline_mode<synchronous>, transform_indices = @transform_2, window_bounds = array<i64: 11, 64>}, {transform_indices = @transform_3, window_bounds = array<i64: 1, 8, 32>}]} {
    %c0 = arith.constant 0 : index
    %c0_0 = arith.constant 0 : index
    %c0_1 = arith.constant 0 : index
    %c0_2 = arith.constant 0 : index
    %0 = vector.load %arg1[%c0, %c0_0, %c0_1, %c0_2] : memref<1x3x8x32xf32, #tpu.memory_space<vmem>>, vector<1x3x8x32xf32>
    %1 = vector.shape_cast %0 : vector<1x3x8x32xf32> to vector<24x32xf32>
    %c0_3 = arith.constant 0 : index
    %c0_4 = arith.constant 0 : index
    %c0_5 = arith.constant 0 : index
    %2 = vector.load %arg2[%c0_3, %c0_4, %c0_5] : memref<7x32x64xbf16, #tpu.memory_space<vmem>>, vector<1x32x16xbf16>
    %3 = vector.shape_cast %2 : vector<1x32x16xbf16> to vector<32x16xbf16>
    %4 = arith.truncf %1 : vector<24x32xf32> to vector<24x32xbf16>
    %cst = arith.constant dense<0.000000e+00> : vector<24x16xf32>
    %5 = tpu.matmul %4, %3, %cst {dimension_numbers = #tpu.dot_dimension_numbers<[1], [0], [0], [1], [0, 0, 1, 1], [], []>} : vector<24x32xbf16>, vector<32x16xbf16>, vector<24x16xf32> -> vector<24x16xf32>
    %c0_6 = arith.constant 0 : index
    %c0_7 = arith.constant 0 : index
    %6 = vector.load %arg3[%c0_6, %c0_7] : memref<11x64xf32, #tpu.memory_space<vmem>>, vector<1x16xf32>
    %7 = vector.broadcast %6 : vector<1x16xf32> to vector<24x16xf32>
    %8 = arith.addf %5, %7 : vector<24x16xf32>
    %c1 = arith.constant 1 : index
    %c0_8 = arith.constant 0 : index
    %c0_9 = arith.constant 0 : index
    %9 = vector.load %arg2[%c1, %c0_8, %c0_9] : memref<7x32x64xbf16, #tpu.memory_space<vmem>>, vector<1x16x48xbf16>
    %10 = vector.shape_cast %9 : vector<1x16x48xbf16> to vector<16x48xbf16>
    %11 = arith.truncf %8 : vector<24x16xf32> to vector<24x16xbf16>
    %cst_10 = arith.constant dense<0.000000e+00> : vector<24x48xf32>
    %12 = tpu.matmul %11, %10, %cst_10 {dimension_numbers = #tpu.dot_dimension_numbers<[1], [0], [0], [1], [0, 0, 1, 1], [], []>} : vector<24x16xbf16>, vector<16x48xbf16>, vector<24x48xf32> -> vector<24x48xf32>
    %c1_11 = arith.constant 1 : index
    %c0_12 = arith.constant 0 : index
    %13 = vector.load %arg3[%c1_11, %c0_12] : memref<11x64xf32, #tpu.memory_space<vmem>>, vector<1x48xf32>
    %14 = vector.broadcast %13 : vector<1x48xf32> to vector<24x48xf32>
    %15 = arith.addf %12, %14 : vector<24x48xf32>
    %16 = vector.extract_strided_slice %15 {offsets = [0, 0], sizes = [24, 4], strides = [1, 1]} : vector<24x48xf32> to vector<24x4xf32>
    %17 = vector.shape_cast %16 : vector<24x4xf32> to vector<3x8x4xf32>
    %18 = vector.extract_strided_slice %15 {offsets = [0, 16], sizes = [24, 4], strides = [1, 1]} : vector<24x48xf32> to vector<24x4xf32>
    %19 = vector.shape_cast %18 : vector<24x4xf32> to vector<3x8x4xf32>
    %20 = vector.extract_strided_slice %15 {offsets = [0, 32], sizes = [24, 4], strides = [1, 1]} : vector<24x48xf32> to vector<24x4xf32>
    %21 = vector.shape_cast %20 : vector<24x4xf32> to vector<3x8x4xf32>
    %22 = arith.truncf %17 : vector<3x8x4xf32> to vector<3x8x4xbf16>
    %23 = arith.truncf %19 : vector<3x8x4xf32> to vector<3x8x4xbf16>
    "tpu.trace_start"() <{level = 10 : i32, message = "bsd,btd->bst"}> : () -> ()
    %cst_13 = arith.constant dense<0.000000e+00> : vector<3x8x8xf32>
    %24 = tpu.matmul %22, %23, %cst_13 {dimension_numbers = #tpu.dot_dimension_numbers<[2], [2], [1], [1], [0, 0, 0, 1, 1, 1], [0], [0]>} : vector<3x8x4xbf16>, vector<3x8x4xbf16>, vector<3x8x8xf32> -> vector<3x8x8xf32>
    "tpu.trace_stop"() : () -> ()
    %cst_14 = arith.constant 5.000000e-01 : f32
    %25 = vector.broadcast %cst_14 : f32 to vector<3x8x8xf32>
    %26 = arith.mulf %24, %25 : vector<3x8x8xf32>
    %cst_15 = arith.constant dense<0xFF800000> : vector<3x8xf32>
    %27 = vector.multi_reduction <maximumf>, %26, %cst_15 [2] : vector<3x8x8xf32> to vector<3x8xf32>
    %28 = vector.shape_cast %27 : vector<3x8xf32> to vector<3x8x1xf32>
    %29 = vector.broadcast %28 : vector<3x8x1xf32> to vector<3x8x8xf32>
    %30 = arith.subf %26, %29 : vector<3x8x8xf32>
    %31 = math.exp %30 : vector<3x8x8xf32>
    %cst_16 = arith.constant dense<0.000000e+00> : vector<3x8xf32>
    %32 = vector.multi_reduction <add>, %31, %cst_16 [2] : vector<3x8x8xf32> to vector<3x8xf32>
    %33 = vector.shape_cast %32 : vector<3x8xf32> to vector<3x8x1xf32>
    %34 = tpu.reciprocal %33 {approx = true} : vector<3x8x1xf32> -> vector<3x8x1xf32>
    %35 = arith.truncf %31 : vector<3x8x8xf32> to vector<3x8x8xbf16>
    %36 = arith.truncf %21 : vector<3x8x4xf32> to vector<3x8x4xbf16>
    "tpu.trace_start"() <{level = 10 : i32, message = "bst,btd->bsd"}> : () -> ()
    %cst_17 = arith.constant dense<0.000000e+00> : vector<3x8x4xf32>
    %37 = tpu.matmul %35, %36, %cst_17 {dimension_numbers = #tpu.dot_dimension_numbers<[2], [1], [1], [2], [0, 0, 0, 1, 1, 2], [0], [0]>} : vector<3x8x8xbf16>, vector<3x8x4xbf16>, vector<3x8x4xf32> -> vector<3x8x4xf32>
    "tpu.trace_stop"() : () -> ()
    %38 = vector.broadcast %34 : vector<3x8x1xf32> to vector<3x8x4xf32>
    %39 = arith.mulf %37, %38 : vector<3x8x4xf32>
    %40 = vector.shape_cast %39 : vector<3x8x4xf32> to vector<24x4xf32>
    %41 = vector.extract_strided_slice %15 {offsets = [0, 4], sizes = [24, 4], strides = [1, 1]} : vector<24x48xf32> to vector<24x4xf32>
    %42 = vector.shape_cast %41 : vector<24x4xf32> to vector<3x8x4xf32>
    %43 = vector.extract_strided_slice %15 {offsets = [0, 20], sizes = [24, 4], strides = [1, 1]} : vector<24x48xf32> to vector<24x4xf32>
    %44 = vector.shape_cast %43 : vector<24x4xf32> to vector<3x8x4xf32>
    %45 = vector.extract_strided_slice %15 {offsets = [0, 36], sizes = [24, 4], strides = [1, 1]} : vector<24x48xf32> to vector<24x4xf32>
    %46 = vector.shape_cast %45 : vector<24x4xf32> to vector<3x8x4xf32>
    %47 = arith.truncf %42 : vector<3x8x4xf32> to vector<3x8x4xbf16>
    %48 = arith.truncf %44 : vector<3x8x4xf32> to vector<3x8x4xbf16>
    "tpu.trace_start"() <{level = 10 : i32, message = "bsd,btd->bst"}> : () -> ()
    %cst_18 = arith.constant dense<0.000000e+00> : vector<3x8x8xf32>
    %49 = tpu.matmul %47, %48, %cst_18 {dimension_numbers = #tpu.dot_dimension_numbers<[2], [2], [1], [1], [0, 0, 0, 1, 1, 1], [0], [0]>} : vector<3x8x4xbf16>, vector<3x8x4xbf16>, vector<3x8x8xf32> -> vector<3x8x8xf32>
    "tpu.trace_stop"() : () -> ()
    %cst_19 = arith.constant 5.000000e-01 : f32
    %50 = vector.broadcast %cst_19 : f32 to vector<3x8x8xf32>
    %51 = arith.mulf %49, %50 : vector<3x8x8xf32>
    %cst_20 = arith.constant dense<0xFF800000> : vector<3x8xf32>
    %52 = vector.multi_reduction <maximumf>, %51, %cst_20 [2] : vector<3x8x8xf32> to vector<3x8xf32>
    %53 = vector.shape_cast %52 : vector<3x8xf32> to vector<3x8x1xf32>
    %54 = vector.broadcast %53 : vector<3x8x1xf32> to vector<3x8x8xf32>
    %55 = arith.subf %51, %54 : vector<3x8x8xf32>
    %56 = math.exp %55 : vector<3x8x8xf32>
    %cst_21 = arith.constant dense<0.000000e+00> : vector<3x8xf32>
    %57 = vector.multi_reduction <add>, %56, %cst_21 [2] : vector<3x8x8xf32> to vector<3x8xf32>
    %58 = vector.shape_cast %57 : vector<3x8xf32> to vector<3x8x1xf32>
    %59 = tpu.reciprocal %58 {approx = true} : vector<3x8x1xf32> -> vector<3x8x1xf32>
    %60 = arith.truncf %56 : vector<3x8x8xf32> to vector<3x8x8xbf16>
    %61 = arith.truncf %46 : vector<3x8x4xf32> to vector<3x8x4xbf16>
    "tpu.trace_start"() <{level = 10 : i32, message = "bst,btd->bsd"}> : () -> ()
    %cst_22 = arith.constant dense<0.000000e+00> : vector<3x8x4xf32>
    %62 = tpu.matmul %60, %61, %cst_22 {dimension_numbers = #tpu.dot_dimension_numbers<[2], [1], [1], [2], [0, 0, 0, 1, 1, 2], [0], [0]>} : vector<3x8x8xbf16>, vector<3x8x4xbf16>, vector<3x8x4xf32> -> vector<3x8x4xf32>
    "tpu.trace_stop"() : () -> ()
    %63 = vector.broadcast %59 : vector<3x8x1xf32> to vector<3x8x4xf32>
    %64 = arith.mulf %62, %63 : vector<3x8x4xf32>
    %65 = vector.shape_cast %64 : vector<3x8x4xf32> to vector<24x4xf32>
    %66 = vector.extract_strided_slice %15 {offsets = [0, 8], sizes = [24, 4], strides = [1, 1]} : vector<24x48xf32> to vector<24x4xf32>
    %67 = vector.shape_cast %66 : vector<24x4xf32> to vector<3x8x4xf32>
    %68 = vector.extract_strided_slice %15 {offsets = [0, 24], sizes = [24, 4], strides = [1, 1]} : vector<24x48xf32> to vector<24x4xf32>
    %69 = vector.shape_cast %68 : vector<24x4xf32> to vector<3x8x4xf32>
    %70 = vector.extract_strided_slice %15 {offsets = [0, 40], sizes = [24, 4], strides = [1, 1]} : vector<24x48xf32> to vector<24x4xf32>
    %71 = vector.shape_cast %70 : vector<24x4xf32> to vector<3x8x4xf32>
    %72 = arith.truncf %67 : vector<3x8x4xf32> to vector<3x8x4xbf16>
    %73 = arith.truncf %69 : vector<3x8x4xf32> to vector<3x8x4xbf16>
    "tpu.trace_start"() <{level = 10 : i32, message = "bsd,btd->bst"}> : () -> ()
    %cst_23 = arith.constant dense<0.000000e+00> : vector<3x8x8xf32>
    %74 = tpu.matmul %72, %73, %cst_23 {dimension_numbers = #tpu.dot_dimension_numbers<[2], [2], [1], [1], [0, 0, 0, 1, 1, 1], [0], [0]>} : vector<3x8x4xbf16>, vector<3x8x4xbf16>, vector<3x8x8xf32> -> vector<3x8x8xf32>
    "tpu.trace_stop"() : () -> ()
    %cst_24 = arith.constant 5.000000e-01 : f32
    %75 = vector.broadcast %cst_24 : f32 to vector<3x8x8xf32>
    %76 = arith.mulf %74, %75 : vector<3x8x8xf32>
    %cst_25 = arith.constant dense<0xFF800000> : vector<3x8xf32>
    %77 = vector.multi_reduction <maximumf>, %76, %cst_25 [2] : vector<3x8x8xf32> to vector<3x8xf32>
    %78 = vector.shape_cast %77 : vector<3x8xf32> to vector<3x8x1xf32>
    %79 = vector.broadcast %78 : vector<3x8x1xf32> to vector<3x8x8xf32>
    %80 = arith.subf %76, %79 : vector<3x8x8xf32>
    %81 = math.exp %80 : vector<3x8x8xf32>
    %cst_26 = arith.constant dense<0.000000e+00> : vector<3x8xf32>
    %82 = vector.multi_reduction <add>, %81, %cst_26 [2] : vector<3x8x8xf32> to vector<3x8xf32>
    %83 = vector.shape_cast %82 : vector<3x8xf32> to vector<3x8x1xf32>
    %84 = tpu.reciprocal %83 {approx = true} : vector<3x8x1xf32> -> vector<3x8x1xf32>
    %85 = arith.truncf %81 : vector<3x8x8xf32> to vector<3x8x8xbf16>
    %86 = arith.truncf %71 : vector<3x8x4xf32> to vector<3x8x4xbf16>
    "tpu.trace_start"() <{level = 10 : i32, message = "bst,btd->bsd"}> : () -> ()
    %cst_27 = arith.constant dense<0.000000e+00> : vector<3x8x4xf32>
    %87 = tpu.matmul %85, %86, %cst_27 {dimension_numbers = #tpu.dot_dimension_numbers<[2], [1], [1], [2], [0, 0, 0, 1, 1, 2], [0], [0]>} : vector<3x8x8xbf16>, vector<3x8x4xbf16>, vector<3x8x4xf32> -> vector<3x8x4xf32>
    "tpu.trace_stop"() : () -> ()
    %88 = vector.broadcast %84 : vector<3x8x1xf32> to vector<3x8x4xf32>
    %89 = arith.mulf %87, %88 : vector<3x8x4xf32>
    %90 = vector.shape_cast %89 : vector<3x8x4xf32> to vector<24x4xf32>
    %91 = vector.extract_strided_slice %15 {offsets = [0, 12], sizes = [24, 4], strides = [1, 1]} : vector<24x48xf32> to vector<24x4xf32>
    %92 = vector.shape_cast %91 : vector<24x4xf32> to vector<3x8x4xf32>
    %93 = vector.extract_strided_slice %15 {offsets = [0, 28], sizes = [24, 4], strides = [1, 1]} : vector<24x48xf32> to vector<24x4xf32>
    %94 = vector.shape_cast %93 : vector<24x4xf32> to vector<3x8x4xf32>
    %95 = vector.extract_strided_slice %15 {offsets = [0, 44], sizes = [24, 4], strides = [1, 1]} : vector<24x48xf32> to vector<24x4xf32>
    %96 = vector.shape_cast %95 : vector<24x4xf32> to vector<3x8x4xf32>
    %97 = arith.truncf %92 : vector<3x8x4xf32> to vector<3x8x4xbf16>
    %98 = arith.truncf %94 : vector<3x8x4xf32> to vector<3x8x4xbf16>
    "tpu.trace_start"() <{level = 10 : i32, message = "bsd,btd->bst"}> : () -> ()
    %cst_28 = arith.constant dense<0.000000e+00> : vector<3x8x8xf32>
    %99 = tpu.matmul %97, %98, %cst_28 {dimension_numbers = #tpu.dot_dimension_numbers<[2], [2], [1], [1], [0, 0, 0, 1, 1, 1], [0], [0]>} : vector<3x8x4xbf16>, vector<3x8x4xbf16>, vector<3x8x8xf32> -> vector<3x8x8xf32>
    "tpu.trace_stop"() : () -> ()
    %cst_29 = arith.constant 5.000000e-01 : f32
    %100 = vector.broadcast %cst_29 : f32 to vector<3x8x8xf32>
    %101 = arith.mulf %99, %100 : vector<3x8x8xf32>
    %cst_30 = arith.constant dense<0xFF800000> : vector<3x8xf32>
    %102 = vector.multi_reduction <maximumf>, %101, %cst_30 [2] : vector<3x8x8xf32> to vector<3x8xf32>
    %103 = vector.shape_cast %102 : vector<3x8xf32> to vector<3x8x1xf32>
    %104 = vector.broadcast %103 : vector<3x8x1xf32> to vector<3x8x8xf32>
    %105 = arith.subf %101, %104 : vector<3x8x8xf32>
    %106 = math.exp %105 : vector<3x8x8xf32>
    %cst_31 = arith.constant dense<0.000000e+00> : vector<3x8xf32>
    %107 = vector.multi_reduction <add>, %106, %cst_31 [2] : vector<3x8x8xf32> to vector<3x8xf32>
    %108 = vector.shape_cast %107 : vector<3x8xf32> to vector<3x8x1xf32>
    %109 = tpu.reciprocal %108 {approx = true} : vector<3x8x1xf32> -> vector<3x8x1xf32>
    %110 = arith.truncf %106 : vector<3x8x8xf32> to vector<3x8x8xbf16>
    %111 = arith.truncf %96 : vector<3x8x4xf32> to vector<3x8x4xbf16>
    "tpu.trace_start"() <{level = 10 : i32, message = "bst,btd->bsd"}> : () -> ()
    %cst_32 = arith.constant dense<0.000000e+00> : vector<3x8x4xf32>
    %112 = tpu.matmul %110, %111, %cst_32 {dimension_numbers = #tpu.dot_dimension_numbers<[2], [1], [1], [2], [0, 0, 0, 1, 1, 2], [0], [0]>} : vector<3x8x8xbf16>, vector<3x8x4xbf16>, vector<3x8x4xf32> -> vector<3x8x4xf32>
    "tpu.trace_stop"() : () -> ()
    %113 = vector.broadcast %109 : vector<3x8x1xf32> to vector<3x8x4xf32>
    %114 = arith.mulf %112, %113 : vector<3x8x4xf32>
    %115 = vector.shape_cast %114 : vector<3x8x4xf32> to vector<24x4xf32>
    %116 = tpu.concatenate %40, %65, %90, %115 in 1 : vector<24x4xf32>, vector<24x4xf32>, vector<24x4xf32>, vector<24x4xf32> -> vector<24x16xf32>
    %c2 = arith.constant 2 : index
    %c0_33 = arith.constant 0 : index
    %c0_34 = arith.constant 0 : index
    %117 = vector.load %arg2[%c2, %c0_33, %c0_34] : memref<7x32x64xbf16, #tpu.memory_space<vmem>>, vector<1x16x16xbf16>
    %118 = vector.shape_cast %117 : vector<1x16x16xbf16> to vector<16x16xbf16>
    %119 = arith.truncf %116 : vector<24x16xf32> to vector<24x16xbf16>
    %cst_35 = arith.constant dense<0.000000e+00> : vector<24x16xf32>
    %120 = tpu.matmul %119, %118, %cst_35 {dimension_numbers = #tpu.dot_dimension_numbers<[1], [0], [0], [1], [0, 0, 1, 1], [], []>} : vector<24x16xbf16>, vector<16x16xbf16>, vector<24x16xf32> -> vector<24x16xf32>
    %c2_36 = arith.constant 2 : index
    %c0_37 = arith.constant 0 : index
    %121 = vector.load %arg3[%c2_36, %c0_37] : memref<11x64xf32, #tpu.memory_space<vmem>>, vector<1x16xf32>
    %122 = vector.broadcast %121 : vector<1x16xf32> to vector<24x16xf32>
    %123 = arith.addf %120, %122 : vector<24x16xf32>
    %124 = arith.addf %8, %123 : vector<24x16xf32>
    %cst_38 = arith.constant dense<0.000000e+00> : vector<24xf32>
    %125 = vector.multi_reduction <add>, %124, %cst_38 [1] : vector<24x16xf32> to vector<24xf32>
    %126 = vector.shape_cast %125 : vector<24xf32> to vector<24x1xf32>
    %cst_39 = arith.constant 1.600000e+01 : f32
    %127 = vector.broadcast %cst_39 : f32 to vector<24x1xf32>
    %128 = arith.divf %126, %127 : vector<24x1xf32>
    %129 = vector.broadcast %128 : vector<24x1xf32> to vector<24x16xf32>
    %130 = arith.subf %124, %129 : vector<24x16xf32>
    %131 = arith.mulf %130, %130 : vector<24x16xf32>
    %cst_40 = arith.constant dense<0.000000e+00> : vector<24xf32>
    %132 = vector.multi_reduction <add>, %131, %cst_40 [1] : vector<24x16xf32> to vector<24xf32>
    %133 = vector.shape_cast %132 : vector<24xf32> to vector<24x1xf32>
    %cst_41 = arith.constant 1.600000e+01 : f32
    %134 = vector.broadcast %cst_41 : f32 to vector<24x1xf32>
    %135 = arith.divf %133, %134 : vector<24x1xf32>
    %136 = vector.broadcast %128 : vector<24x1xf32> to vector<24x16xf32>
    %137 = arith.subf %124, %136 : vector<24x16xf32>
    %cst_42 = arith.constant 9.99999974E-6 : f32
    %138 = vector.broadcast %cst_42 : f32 to vector<24x1xf32>
    %139 = arith.addf %135, %138 : vector<24x1xf32>
    %140 = math.rsqrt %139 : vector<24x1xf32>
    %141 = vector.broadcast %140 : vector<24x1xf32> to vector<24x16xf32>
    %142 = arith.mulf %137, %141 : vector<24x16xf32>
    %c5 = arith.constant 5 : index
    %c0_43 = arith.constant 0 : index
    %143 = vector.load %arg3[%c5, %c0_43] : memref<11x64xf32, #tpu.memory_space<vmem>>, vector<1x16xf32>
    %144 = vector.broadcast %143 : vector<1x16xf32> to vector<24x16xf32>
    %145 = arith.mulf %142, %144 : vector<24x16xf32>
    %c6 = arith.constant 6 : index
    %c0_44 = arith.constant 0 : index
    %146 = vector.load %arg3[%c6, %c0_44] : memref<11x64xf32, #tpu.memory_space<vmem>>, vector<1x16xf32>
    %147 = vector.broadcast %146 : vector<1x16xf32> to vector<24x16xf32>
    %148 = arith.addf %145, %147 : vector<24x16xf32>
    %c3 = arith.constant 3 : index
    %c0_45 = arith.constant 0 : index
    %c0_46 = arith.constant 0 : index
    %149 = vector.load %arg2[%c3, %c0_45, %c0_46] : memref<7x32x64xbf16, #tpu.memory_space<vmem>>, vector<1x16x16xbf16>
    %150 = vector.shape_cast %149 : vector<1x16x16xbf16> to vector<16x16xbf16>
    %151 = arith.truncf %148 : vector<24x16xf32> to vector<24x16xbf16>
    %cst_47 = arith.constant dense<0.000000e+00> : vector<24x16xf32>
    %152 = tpu.matmul %151, %150, %cst_47 {dimension_numbers = #tpu.dot_dimension_numbers<[1], [0], [0], [1], [0, 0, 1, 1], [], []>} : vector<24x16xbf16>, vector<16x16xbf16>, vector<24x16xf32> -> vector<24x16xf32>
    %c3_48 = arith.constant 3 : index
    %c0_49 = arith.constant 0 : index
    %153 = vector.load %arg3[%c3_48, %c0_49] : memref<11x64xf32, #tpu.memory_space<vmem>>, vector<1x16xf32>
    %154 = vector.broadcast %153 : vector<1x16xf32> to vector<24x16xf32>
    %155 = arith.addf %152, %154 : vector<24x16xf32>
    %cst_50 = arith.constant 0.000000e+00 : f32
    %156 = vector.broadcast %cst_50 : f32 to vector<24x16xf32>
    %157 = arith.maximumf %155, %156 : vector<24x16xf32>
    %c4 = arith.constant 4 : index
    %c0_51 = arith.constant 0 : index
    %c0_52 = arith.constant 0 : index
    %158 = vector.load %arg2[%c4, %c0_51, %c0_52] : memref<7x32x64xbf16, #tpu.memory_space<vmem>>, vector<1x16x16xbf16>
    %159 = vector.shape_cast %158 : vector<1x16x16xbf16> to vector<16x16xbf16>
    %160 = arith.truncf %157 : vector<24x16xf32> to vector<24x16xbf16>
    %cst_53 = arith.constant dense<0.000000e+00> : vector<24x16xf32>
    %161 = tpu.matmul %160, %159, %cst_53 {dimension_numbers = #tpu.dot_dimension_numbers<[1], [0], [0], [1], [0, 0, 1, 1], [], []>} : vector<24x16xbf16>, vector<16x16xbf16>, vector<24x16xf32> -> vector<24x16xf32>
    %c4_54 = arith.constant 4 : index
    %c0_55 = arith.constant 0 : index
    %162 = vector.load %arg3[%c4_54, %c0_55] : memref<11x64xf32, #tpu.memory_space<vmem>>, vector<1x16xf32>
    %163 = vector.broadcast %162 : vector<1x16xf32> to vector<24x16xf32>
    %164 = arith.addf %161, %163 : vector<24x16xf32>
    %165 = arith.addf %148, %164 : vector<24x16xf32>
    %cst_56 = arith.constant dense<0.000000e+00> : vector<24xf32>
    %166 = vector.multi_reduction <add>, %165, %cst_56 [1] : vector<24x16xf32> to vector<24xf32>
    %167 = vector.shape_cast %166 : vector<24xf32> to vector<24x1xf32>
    %cst_57 = arith.constant 1.600000e+01 : f32
    %168 = vector.broadcast %cst_57 : f32 to vector<24x1xf32>
    %169 = arith.divf %167, %168 : vector<24x1xf32>
    %170 = vector.broadcast %169 : vector<24x1xf32> to vector<24x16xf32>
    %171 = arith.subf %165, %170 : vector<24x16xf32>
    %172 = arith.mulf %171, %171 : vector<24x16xf32>
    %cst_58 = arith.constant dense<0.000000e+00> : vector<24xf32>
    %173 = vector.multi_reduction <add>, %172, %cst_58 [1] : vector<24x16xf32> to vector<24xf32>
    %174 = vector.shape_cast %173 : vector<24xf32> to vector<24x1xf32>
    %cst_59 = arith.constant 1.600000e+01 : f32
    %175 = vector.broadcast %cst_59 : f32 to vector<24x1xf32>
    %176 = arith.divf %174, %175 : vector<24x1xf32>
    %177 = vector.broadcast %169 : vector<24x1xf32> to vector<24x16xf32>
    %178 = arith.subf %165, %177 : vector<24x16xf32>
    %cst_60 = arith.constant 9.99999974E-6 : f32
    %179 = vector.broadcast %cst_60 : f32 to vector<24x1xf32>
    %180 = arith.addf %176, %179 : vector<24x1xf32>
    %181 = math.rsqrt %180 : vector<24x1xf32>
    %182 = vector.broadcast %181 : vector<24x1xf32> to vector<24x16xf32>
    %183 = arith.mulf %178, %182 : vector<24x16xf32>
    %c7 = arith.constant 7 : index
    %c0_61 = arith.constant 0 : index
    %184 = vector.load %arg3[%c7, %c0_61] : memref<11x64xf32, #tpu.memory_space<vmem>>, vector<1x16xf32>
    %185 = vector.broadcast %184 : vector<1x16xf32> to vector<24x16xf32>
    %186 = arith.mulf %183, %185 : vector<24x16xf32>
    %c8 = arith.constant 8 : index
    %c0_62 = arith.constant 0 : index
    %187 = vector.load %arg3[%c8, %c0_62] : memref<11x64xf32, #tpu.memory_space<vmem>>, vector<1x16xf32>
    %188 = vector.broadcast %187 : vector<1x16xf32> to vector<24x16xf32>
    %189 = arith.addf %186, %188 : vector<24x16xf32>
    %c5_63 = arith.constant 5 : index
    %c0_64 = arith.constant 0 : index
    %c0_65 = arith.constant 0 : index
    %190 = vector.load %arg2[%c5_63, %c0_64, %c0_65] : memref<7x32x64xbf16, #tpu.memory_space<vmem>>, vector<1x16x32xbf16>
    %191 = vector.shape_cast %190 : vector<1x16x32xbf16> to vector<16x32xbf16>
    %192 = arith.truncf %189 : vector<24x16xf32> to vector<24x16xbf16>
    %cst_66 = arith.constant dense<0.000000e+00> : vector<24x32xf32>
    %193 = tpu.matmul %192, %191, %cst_66 {dimension_numbers = #tpu.dot_dimension_numbers<[1], [0], [0], [1], [0, 0, 1, 1], [], []>} : vector<24x16xbf16>, vector<16x32xbf16>, vector<24x32xf32> -> vector<24x32xf32>
    %c9 = arith.constant 9 : index
    %c0_67 = arith.constant 0 : index
    %194 = vector.load %arg3[%c9, %c0_67] : memref<11x64xf32, #tpu.memory_space<vmem>>, vector<1x32xf32>
    %195 = vector.broadcast %194 : vector<1x32xf32> to vector<24x32xf32>
    %196 = arith.addf %193, %195 : vector<24x32xf32>
    %197 = vector.shape_cast %196 : vector<24x32xf32> to vector<1x3x8x32xf32>
    %198 = vector.extract_strided_slice %0 {offsets = [0, 0, 0, 0], sizes = [1, 1, 8, 32], strides = [1, 1, 1, 1]} : vector<1x3x8x32xf32> to vector<1x1x8x32xf32>
    %199 = vector.shape_cast %198 : vector<1x1x8x32xf32> to vector<1x8x32xf32>
    %200 = vector.extract_strided_slice %0 {offsets = [0, 1, 0, 0], sizes = [1, 1, 8, 32], strides = [1, 1, 1, 1]} : vector<1x3x8x32xf32> to vector<1x1x8x32xf32>
    %201 = vector.shape_cast %200 : vector<1x1x8x32xf32> to vector<1x8x32xf32>
    %202 = vector.extract_strided_slice %0 {offsets = [0, 2, 0, 0], sizes = [1, 1, 8, 32], strides = [1, 1, 1, 1]} : vector<1x3x8x32xf32> to vector<1x1x8x32xf32>
    %203 = vector.shape_cast %202 : vector<1x1x8x32xf32> to vector<1x8x32xf32>
    %204 = vector.extract_strided_slice %197 {offsets = [0, 0, 0, 0], sizes = [1, 1, 8, 32], strides = [1, 1, 1, 1]} : vector<1x3x8x32xf32> to vector<1x1x8x32xf32>
    %205 = vector.shape_cast %204 : vector<1x1x8x32xf32> to vector<1x8x32xf32>
    %206 = vector.extract_strided_slice %197 {offsets = [0, 1, 0, 0], sizes = [1, 1, 8, 32], strides = [1, 1, 1, 1]} : vector<1x3x8x32xf32> to vector<1x1x8x32xf32>
    %207 = vector.shape_cast %206 : vector<1x1x8x32xf32> to vector<1x8x32xf32>
    %208 = vector.extract_strided_slice %197 {offsets = [0, 2, 0, 0], sizes = [1, 1, 8, 32], strides = [1, 1, 1, 1]} : vector<1x3x8x32xf32> to vector<1x1x8x32xf32>
    %209 = vector.shape_cast %208 : vector<1x1x8x32xf32> to vector<1x8x32xf32>
    %210 = vector.shape_cast %199 : vector<1x8x32xf32> to vector<8x32xf32>
    %211 = vector.shape_cast %205 : vector<1x8x32xf32> to vector<8x32xf32>
    %212 = tpu.concatenate %210, %211 in 0 : vector<8x32xf32>, vector<8x32xf32> -> vector<16x32xf32>
    %c6_68 = arith.constant 6 : index
    %c0_69 = arith.constant 0 : index
    %c0_70 = arith.constant 0 : index
    %213 = vector.load %arg2[%c6_68, %c0_69, %c0_70] : memref<7x32x64xbf16, #tpu.memory_space<vmem>>, vector<1x32x64xbf16>
    %214 = vector.shape_cast %213 : vector<1x32x64xbf16> to vector<32x64xbf16>
    %215 = arith.truncf %212 : vector<16x32xf32> to vector<16x32xbf16>
    %cst_71 = arith.constant dense<0.000000e+00> : vector<16x64xf32>
    %216 = tpu.matmul %215, %214, %cst_71 {dimension_numbers = #tpu.dot_dimension_numbers<[1], [0], [0], [1], [0, 0, 1, 1], [], []>} : vector<16x32xbf16>, vector<32x64xbf16>, vector<16x64xf32> -> vector<16x64xf32>
    %c10 = arith.constant 10 : index
    %c0_72 = arith.constant 0 : index
    %217 = vector.load %arg3[%c10, %c0_72] : memref<11x64xf32, #tpu.memory_space<vmem>>, vector<1x64xf32>
    %218 = vector.broadcast %217 : vector<1x64xf32> to vector<16x64xf32>
    %219 = arith.addf %216, %218 : vector<16x64xf32>
    %220 = arith.negf %219 : vector<16x64xf32>
    %221 = math.exp %220 : vector<16x64xf32>
    %cst_73 = arith.constant 1.000000e+00 : f32
    %222 = vector.broadcast %cst_73 : f32 to vector<16x64xf32>
    %223 = arith.addf %222, %221 : vector<16x64xf32>
    %224 = arith.divf %222, %223 : vector<16x64xf32>
    %225 = vector.extract_strided_slice %224 {offsets = [0, 0], sizes = [8, 32], strides = [1, 1]} : vector<16x64xf32> to vector<8x32xf32>
    %226 = vector.shape_cast %225 : vector<8x32xf32> to vector<1x8x32xf32>
    %227 = vector.extract_strided_slice %224 {offsets = [8, 0], sizes = [8, 32], strides = [1, 1]} : vector<16x64xf32> to vector<8x32xf32>
    %228 = vector.shape_cast %227 : vector<8x32xf32> to vector<1x8x32xf32>
    %229 = vector.extract_strided_slice %224 {offsets = [8, 32], sizes = [8, 32], strides = [1, 1]} : vector<16x64xf32> to vector<8x32xf32>
    %230 = vector.shape_cast %229 : vector<8x32xf32> to vector<1x8x32xf32>
    %231 = arith.mulf %201, %226 : vector<1x8x32xf32>
    %232 = arith.mulf %207, %228 : vector<1x8x32xf32>
    %233 = arith.addf %231, %232 : vector<1x8x32xf32>
    %234 = arith.mulf %203, %226 : vector<1x8x32xf32>
    %235 = arith.mulf %209, %230 : vector<1x8x32xf32>
    %236 = arith.addf %234, %235 : vector<1x8x32xf32>
    %237 = arith.addf %199, %233 : vector<1x8x32xf32>
    %238 = arith.addf %237, %236 : vector<1x8x32xf32>
    %c0_74 = arith.constant 0 : index
    %c0_75 = arith.constant 0 : index
    %c0_76 = arith.constant 0 : index
    %239 = vector.load %arg4[%c0_74, %c0_75, %c0_76] : memref<1x8x32xf32, #tpu.memory_space<vmem>>, vector<1x8x32xf32>
    tpu.vector_store %arg4[%c0_74, %c0_75, %c0_76], %238 {strides = array<i32>} : memref<1x8x32xf32, #tpu.memory_space<vmem>>, vector<1x8x32xf32>,
    return
  }
  func.func @transform_0(%arg0: i32) -> (i32, i32, i32, i32) {
    %c0_i32 = arith.constant 0 : i32
    %c0_i32_0 = arith.constant 0 : i32
    %c0_i32_1 = arith.constant 0 : i32
    %c0_i32_2 = arith.constant 0 : i32
    return %arg0, %c0_i32, %c0_i32_0, %c0_i32_1 : i32, i32, i32, i32
  }
  func.func @transform_1(%arg0: i32) -> (i32, i32, i32) {
    %c0_i32 = arith.constant 0 : i32
    %c0_i32_0 = arith.constant 0 : i32
    %c0_i32_1 = arith.constant 0 : i32
    %c0_i32_2 = arith.constant 0 : i32
    return %c0_i32, %c0_i32_0, %c0_i32_1 : i32, i32, i32
  }
  func.func @transform_2(%arg0: i32) -> (i32, i32) {
    %c0_i32 = arith.constant 0 : i32
    %c0_i32_0 = arith.constant 0 : i32
    %c0_i32_1 = arith.constant 0 : i32
    return %c0_i32, %c0_i32_0 : i32, i32
  }
  func.func @transform_3(%arg0: i32) -> (i32, i32, i32) {
    %c0_i32 = arith.constant 0 : i32
    %c0_i32_0 = arith.constant 0 : i32
    %c0_i32_1 = arith.constant 0 : i32
    return %arg0, %c0_i32, %c0_i32_0 : i32, i32, i32
  }
}

</mosaic_0001>

<bundles_post_ra>
// kernel: tpu_custom_call.1
= control target key start
LH: loop header
LB: loop body
LE: loop exit
PB: predicated region body
PF: predicated region fallthrough
CT: control target
= control target key end

     0   :  { %8 = vsyncpa [#allocation3], 0  ;;  %s3634_s0 = inlined_call_operand.hbm [shape: f32[2,3,8,32], index: 0, kind: input, shape index: {}]   ;;  %s3635_s1 = inlined_call_operand.hbm [shape: bf16[7,32,64], index: 1, kind: input, shape index: {}]   ;;  %s3636_s2 = inlined_call_operand.hbm [shape: f32[11,64], index: 2, kind: input, shape index: {}]   ;;  %s3637_s3 = inlined_call_operand.hbm [shape: f32[2,8,32], index: 3, kind: output, shape index: {}]  }
   0x1   :  { %10 = vsyncpa [#allocation3 + $0x1], 0 }
   0x2   :  { %11 = vsyncpa [#allocation6], 0 }
   0x3   :  { %12 = vsyncpa [#allocation4], 0 }
   0x4   :  { %14 = vsyncpa [#allocation4 + $0x1], 0  ;;  %s3067_s12 = smov 0   ;;  %s3069_s13 = smov 0  }
   0x5   :  { %s3071_s14 = smov 0   ;;  %s3073_s15 = smov 0  }
   0x6 LB: > { %s3088_s16 = sadd.s32 4294967295, %s3021_s15   ;;  %s2347_s17 = sadd.s32 4294967294, %s3021_s15   ;;  %s3021_s15 = sphi %s3073_s15, %s3657_s15   ;;  %s3017_s14 = sphi %s3071_s14, %s3656_s14   ;;  %s3013_s13 = sphi %s3069_s13, %s3655_s13   ;;  %s3009_s12 = sphi %s3067_s12, %s3654_s12  }
   0x7   : > { %p40_p0 = scmp.ne.s32.totalorder %s3013_s13, %s3009_s12  ;;  %p3638_p1 = scmp.eq.s32.totalorder %s3088_s16, 0 }
   0x8   : > { %p112_p3 = scmp.eq.s32.totalorder %s2347_s17, 1  ;;  %p2348_p5 = scmp.ge.s32.totalorder %s3021_s15, 1 }
   0x9   : > { %p3097_p4 = por %p3638_p1, %p40_p0  ;;  %p119_p7 = scmp.lt.s32.totalorder %s3021_s15, 3 }
   0xa   : > { %p3102_p6 = por %p112_p3, %p40_p0  ;;  %s3023_s21 = smov [#allocation5]  }
   0xb   : > { %s3641_s18 = scalar_select %p3097_p4, 1, 0 }
   0xc   : > { %s3642_s19 = scalar_select %p3102_p6, 1, 0 }
   0xd   : > { %p3107_p8 = pnand %p2348_p5, %p119_p7  ;;  %s131_s22 = sshll.u32 %s3023_s21, 4  ;;  %s3111_s22 = int_to_ptr.vmem [resolvable:$true] %s131_s22 }
   0xe   : > { %s3024_s24 = smov [#allocation7]   ;;  %s2865_s28 = scalar_lea.hbm %s3635_s1, 1792 }
   0xf   : > { %p2695_p9 = pneg %p3107_p8  ;;  %s144_s25 = sshll.u32 %s3024_s24, 4  ;;  %s3122_s25 = int_to_ptr.vmem [resolvable:$true] %s144_s25 }
  0x10   : > { %p2866_p12 = scmp.ne.s32.totalorder %s3635_s1, %s2865_s28  ;;  %p2872_p5 = scmp.lt.u32.totalorder %s2865_s28, %s3635_s1 }
  0x11   : > { %p3118_p11 = pnand %p2695_p9, %p3638_p1 }
  0x13   : > { %p2867_p13 = pneg %p3118_p11 }
  0x15   : > { %p2868_p0 = pnand %p2867_p13, %p2866_p12 }
  0x17   : > { %p2869_p3 = pneg %p2868_p0 }
  0x19   : > { %p2874_p7 = pnand %p2872_p5, %p2869_p3 }
  0x1b   : > { %2877 = shalt.err (!%p2874_p7)
}
  0x1c   : > { %s2878_s6 = scalar_lea.vmem %s3111_s22, 1792  ;;  %p2886_p2 = scmp.lt.s32.totalorder %s3111_s22, %s3111_s22 }
  0x1d   : > { %p2879_p9 = scmp.ne.s32.totalorder %s3111_s22, %s2878_s6  ;;  %p2887_p12 = scmp.lt.s32.totalorder %s2878_s6, %s2878_s6 }
  0x1f   : > { %p2881_p10 = pnand %p2879_p9, %p2867_p13  ;;  %p2888_p0 = por %p2887_p12, %p2886_p2 }
  0x21   : > { %p2882_p1 = pneg %p2881_p10 }
  0x23   : > { %p2889_p6 = pnand %p2888_p0, %p2882_p1 }
  0x25   : > { %2892 = shalt.err (!%p2889_p6)
}
  0x26   : > { %s3025_s7 = smov 64   ;;  %s3026_s8 = smov 4  }
  0x27   : > { %2698 = dma.hbm_to_vmem [thread:$0]  (!%p3118_p11), %s3635_s1, 1792, %s3111_s22, [#allocation6], %s3025_s7, %s3025_s7, %s3026_s8  }
  0x28   : > { %s2893_s21 = scalar_lea.hbm %s3636_s2, 256 }
  0x29   : > { %p2894_p2 = scmp.ne.s32.totalorder %s3636_s2, %s2893_s21  ;;  %p2900_p10 = scmp.lt.u32.totalorder %s2893_s21, %s3636_s2 }
  0x2b   : > { %p2896_p1 = pnand %p2894_p2, %p2867_p13 }
  0x2d   : > { %p2897_p6 = pneg %p2896_p1 }
  0x2f   : > { %p2902_p3 = pnand %p2900_p10, %p2897_p6 }
  0x31   : > { %2905 = shalt.err (!%p2902_p3)
}
  0x32   : > { %s2906_s22 = scalar_lea.vmem %s3122_s25, 256  ;;  %p2914_p12 = scmp.lt.s32.totalorder %s3122_s25, %s3122_s25 }
  0x33   : > { %p2907_p5 = scmp.ne.s32.totalorder %s3122_s25, %s2906_s22  ;;  %p2915_p0 = scmp.lt.s32.totalorder %s2906_s22, %s2906_s22 }
  0x35   : > { %p2909_p7 = pnand %p2907_p5, %p2867_p13  ;;  %p2916_p2 = por %p2915_p0, %p2914_p12 }
  0x37   : > { %p2910_p9 = pneg %p2909_p7 }
  0x39   : > { %p2917_p1 = pnand %p2916_p2, %p2910_p9 }
  0x3b   : > { %2920 = shalt.err (!%p2917_p1)
}
  0x3c   : > { %s3027_s29 = smov 128   ;;  %s3028_s30 = smov 8  }
  0x3d   : > { %2701 = dma.hbm_to_vmem [thread:$0]  (!%p3118_p11), %s3636_s2, 256, %s3122_s25, [#allocation6], %s3027_s29, %s3027_s29, %s3028_s30  }
  0x3e   : > { %s3180_s6 = sadd.s32 1, %s3021_s15   ;;  %s27_s8 = sadd.s32 1, %s3017_s14 }
  0x3f   : > { %s24_s7 = ssub.s32 %s3021_s15, %s3180_s6  ;;  %p34_p6 = scmp.ne.s32.totalorder %s3017_s14, %s3013_s13 }
  0x40   : > { %p25_p13 = scmp.eq.s32.totalorder %s24_s7, 0  ;;  %p35_p10 = scmp.eq.s32.totalorder %s3021_s15, 0 }
  0x41   : > { %p3645_p5 = scmp.eq.s32.totalorder %s3088_s16, 1  ;;  %p2712_p9 = scmp.lt.s32.totalorder %s3021_s15, 2 }
  0x42   : > { %s3189_s9 = scalar_select %p25_p13, %s3017_s14, %s27_s8  }
  0x43   : > { %p36_p3 = por %p35_p10, %p34_p6  ;;  %p3193_p7 = por %p3645_p5, %p34_p6 }
  0x44   : > { %s158_s10 = sand.u32 1, %s3017_s14   ;;  %s2681_s25 = smul.u32 384, %s3021_s15 }
  0x45   : > { %s3646_s23 = scalar_select %p3193_p7, 1, 0 }
  0x46   : > { %s2680_s11 = smul.u32 24, %s158_s10  ;;  %p3200_p11 = pnand %p2712_p9, %p36_p3 }
  0x47   : > { %s3207_s26 = scalar_lea.hbm %s3634_s0, %s2681_s25  ;;  %s3211_s22 = scalar_lea.sflag [#allocation3], %s158_s10 }
  0x48   : > { %s162_s27 = scalar_lea.vmem [#allocation2], %s2680_s11  ;;  %s2921_s4 = scalar_lea.hbm %s3207_s26, 384 }
  0x49   : > { %s169_s28 = sshll.u32 %s162_s27, 4  ;;  %p2922_p12 = scmp.ne.s32.totalorder %s3207_s26, %s2921_s4  ;;  %s3209_s28 = int_to_ptr.vmem [resolvable:$true] %s169_s28 }
  0x4a   : > { %p2923_p0 = pneg %p3200_p11  ;;  %s2926_s8 = scalar_lea.hbm %s3634_s0, 768 }
  0x4b   : > { %p2927_p13 = scmp.lt.u32.totalorder %s3207_s26, %s3634_s0  ;;  %p2928_p6 = scmp.lt.u32.totalorder %s2926_s8, %s2921_s4 }
  0x4c   : > { %p2924_p2 = pnand %p2923_p0, %p2922_p12  ;;  %p2930_p3 = scmp.lt.u32.totalorder %s2921_s4, %s3207_s26 }
  0x4d   : > { %p2929_p10 = por %p2928_p6, %p2927_p13 }
  0x4e   : > { %p2925_p1 = pneg %p2924_p2 }
  0x4f   : > { %p2931_p5 = por %p2930_p3, %p2929_p10 }
  0x51   : > { %p2932_p9 = pnand %p2931_p5, %p2925_p1 }
  0x53   : > { %2935 = shalt.err (!%p2932_p9)
}
  0x54   : > { %s2936_s10 = scalar_lea.vmem %s3209_s28, 384  ;;  %s3029_s11 = smov [#allocation2]  }
  0x55   : > { %p2937_p12 = scmp.ne.s32.totalorder %s3209_s28, %s2936_s10  ;;  %s2941_s24 = sshll.u32 %s3029_s11, 4  ;;  %s2942_s24 = int_to_ptr.vmem [resolvable:$false] %s2941_s24 }
  0x56   : > { %s2943_s27 = scalar_lea.vmem %s2942_s24, 768  ;;  %p2944_p4 = scmp.lt.s32.totalorder %s3209_s28, %s2942_s24 }
  0x57   : > { %p2939_p2 = pnand %p2937_p12, %p2923_p0  ;;  %p2945_p13 = scmp.lt.s32.totalorder %s2943_s27, %s2936_s10 }
  0x59   : > { %p2940_p7 = pneg %p2939_p2  ;;  %p2946_p6 = por %p2945_p13, %p2944_p4 }
  0x5b   : > { %p2947_p10 = pnand %p2946_p6, %p2940_p7 }
  0x5d   : > { %2950 = shalt.err (!%p2947_p10)
}
  0x5e   : > { %2705 = dma.hbm_to_vmem [thread:$0]  (!%p3200_p11), %s3207_s26, 384, %s3209_s28, %s3211_s22, %s3027_s29, %s3027_s29, %s3028_s30  }
  0x5f   : > { %181 = sbr.rel (%p3107_p8) target bundleno = 4440 (0x1158), region = 32  ;;  %s3245_s4 = sand.u32 (!%p3107_p8), 1, %s3013_s13  }
  0x60   : > { %s2682_s5 = smul.u32 (!%p3107_p8), 24, %s3245_s4  ;;  %s184_s7 = scalar_lea.sflag (!%p3107_p8), [#allocation3], %s3245_s4 }
  0x61   : > { %p3648_p4 = scmp.ne.s32.totalorder (!%p3107_p8), %s3641_s18, 0 }
  0x62   : > { %s3249_s8 = scalar_lea.vmem (!%p3107_p8), [#allocation2], %s2682_s5 }
  0x66   : > { %2996 = dma.done.wait (%p3648_p4), %s184_s7, 384  }
  0x67   : > { %2998 = vsyncadd (%p3648_p4), %s184_s7, 4294966912  ;;  %p3649_p7 = scmp.eq.s32.totalorder %s3088_s16, 0 }
  0x69   : > { %3000 = dma.done.wait (%p3649_p7), [#allocation6], 2048   ;;  %p3650_p8 = pmov %p3649_p7 }
  0x6a   : > { %v2785_v0 = vld [vmem:[#allocation5] sm:$0xff]   ;;  %v2786_v1 = vld [vmem:[#allocation5 + $0x8] sm:$0xff]   ;;  %v220_v3 = vld [vmem:[%s3249_s8 + $0x8] sm:$0xff]  ;;  %vm245_vm0 = vcmask 261120   ;;  %vm316_vm1 = vcmask 130048   ;;  %v3030_v18 = vmov 0.0  }
  0x6b   : > { %3002 = vsyncadd (%p3650_p8), [#allocation6], 4294965248  ;;  %2490 = vmatprep.subr.bf16.mxu0 %v2785_v0  ;;  %v219_v2 = vld [vmem:[%s3249_s8] sm:$0xff]  ;;  %v221_v4 = vld [vmem:[%s3249_s8 + $0x10] sm:$0xff]  ;;  %vm3031_vm2 = vmmov 0   ;;  %s3032_s18 = smov 112  }
  0x6c   : > { %2491 = vmatpush3.bf16.msra.mxu0 %v2785_v0  ;;  %v226_v5 = vpack.c.bf16 %v220_v3, %v219_v2  ;;  %v227_v6 = vpack.c.bf16 %v221_v4, %v221_v4  ;;  %v2787_v7 = vld [vmem:[#allocation5 + $0x10] sm:$0xff]   ;;  %s3033_s20 = smov 96   ;;  %vm377_vm3 = vcmask 31744   ;;  %vm564_vm4 = vcmask 1043456   ;;  %s3034_s29 = smov 108  }
  0x6d   : > { %2492 = vmatprep.subr.bf16.mxu0 %v2786_v1  ;;  %2498 = vmatprep.subr.bf16.mxu1 %v2787_v7  ;;  %v2357_v9 = vld [vmem:[#allocation7] ss:$0 sm:$0xff]  ;;  %v2362_v19 = vld [vmem:[#allocation7 + $0x1] ss:$0 sm:$0xff]  ;;  %vm525_vm5 = vcmask 64512   ;;  %s3035_s30 = smov 124  }
  0x6e   : > { %2494 = vmatprep.mubr.msk.bf16.mxu0 %vm245_vm0, %v226_v5  ;;  %2499 = vmatpush3.bf16.msra.mxu1 %v2787_v7  ;;  %s3036_s17 = smov 92   ;;  %s3037_s26 = smov 104   ;;  %vm1748_vm6 = vcmask 97280  }
  0x6f   : > { %2504 = vmatprep.subr.bf16.mxu1 %v3030_v18  ;;  %s3038_s28 = smov 120   ;;  %s3039_s22 = smov 88  }
  0x70   : > { %2493 = vmatpush3.bf16.msra.mxu0 %v2786_v1  ;;  %s3040_s25 = smov 100   ;;  %s3041_s21 = smov 116  }
  0x71   : > { %2510 = vmatprep.subr.bf16.mxu0 %v3030_v18  ;;  %s3042_s10 = smov 84   ;;  %s3043_s11 = smov 4  }
  0x72   : > { %s3044_s24 = smov 8   ;;  %s3045_s27 = smov 12  }
  0x73   : > { %2495 = vmatmul.mubr.msk.bf16.vlgmr.msra.gmra.mrb[0].mxu0 %vm245_vm0, %v227_v6  ;;  %s2356_s5 = sshll.u32 %s3245_s4, 3  ;;  %s2417_s7 = sshll.u32 %s3088_s16, 7 }
  0x74   : > { %2512 = vmatprep.mubr.msk.bf16.mxu0 %vm3031_vm2, %v3030_v18  ;;  %p3651_p0 = scmp.ne.s32.totalorder %s3646_s23, 0  ;;  %s3046_s16 = smov [#allocation8]  }
 0x146   : > { %v2496_v8 = vpop.f32.mrb[0].mxu0 }
 0x147   : > { %v286_v10 = vpop.f32.mrb[1].mxu0  ;;  %v3264_v12 = vadd.f32 %v2496_v8, %v2357_v9 }
 0x148   : > { %v2497_v11 = vpop.f32.mrb[2].mxu0  ;;  %v3266_v14 = vadd.f32 %v2357_v9, %v286_v10 }
 0x149   : > { %v289_v13 = vpop.f32.mrb[3].mxu0  ;;  %v304_v17 = vpack.c.bf16 %v3264_v12, %v3264_v12 }
 0x14a   : > { %v3268_v15 = vadd.f32 %v2357_v9, %v289_v13 }
 0x14c   : > { %v303_v16 = vpack.c.bf16 %v3268_v15, %v3266_v14 }
 0x14e   : > { %2500 = vmatprep.mubr.msk.bf16.mxu1 %vm316_vm1, %v303_v16 }
 0x14f   : > { %2501 = vmatmul.mubr.msk.bf16.vlgmr.msra.gmra.mrb[0].mxu1 %vm316_vm1, %v304_v17 }
 0x150   : > { %2506 = vmatprep.mubr.msk.bf16.mxu1 %vm3031_vm2, %v3030_v18 }
 0x222   : > { %v2502_v20 = vpop.f32.mrb[0].mxu1 }
 0x223   : > { %v366_v21 = vadd.f32 %v2502_v20, %v2362_v19  ;;  %v357_v22 = vpop.f32.mrb[1].mxu1 }
 0x224   : > { %v358_v23 = vadd.f32 %v2362_v19, %v357_v22  ;;  %v2503_v24 = vpop.f32.mrb[2].mxu1 }
 0x225   : > { %v3282_v25 = vpack.c.bf16 %v366_v21, %v366_v21  ;;  %v360_v26 = vpop.f32.mrb[3].mxu1 }
 0x226   : > { %v3284_v27 = vpack.c.bf16 %v358_v23, %v358_v23  ;;  %v361_v28 = vadd.f32 %v2362_v19, %v360_v26 }
 0x227   : > { %474 = vrot.lane.b32.xlu1 %v3282_v25, %s3032_s18 }
 0x228   : > { %375 = vrot.lane.b32.xlu0 %v3284_v27, %s3032_s18  ;;  %v3288_v29 = vpack.c.bf16 %v361_v28, %v361_v28 }
 0x22b   : > { %656 = vrot.lane.b32.xlu1 %v3282_v25, %s3033_s20 }
 0x22c   : > { %425 = vrot.lane.b32.xlu0 %v3288_v29, %s3032_s18  ;;  %s217_s18 = scalar_lea.vmem [#allocation8], %s2356_s5 }
 0x22f   : > { %608 = vrot.lane.b32.xlu1 %v3288_v29, %s3033_s20 }
 0x230   : > { %559 = vrot.lane.b32.xlu0 %v3284_v27, %s3033_s20 }
 0x299   : > { %v475_v32 = vpop.permute.xlu1 %474 }
 0x29a   : > { %v376_v30 = vpop.permute.xlu0 %375  ;;  %v480_v36 = vsel %vm377_vm3, %v475_v32, 0 }
 0x29b   : > { %v382_v31 = vsel %vm377_vm3, %v376_v30, 0 }
 0x29c   : > { %2505 = vmatpush3.bf16.xpose.msra.mxu1 %v382_v31 }
 0x29d   : > { %2516 = vmatprep.subr.bf16.mxu1 %v3030_v18  ;;  %v3301_v35 = vpop.permute.xlu1 %656 }
 0x29e   : > { %v426_v33 = vpop.permute.xlu0 %425  ;;  %v662_v8 = vsel %vm564_vm4, %v3301_v35, 0 }
 0x29f   : > { %v431_v34 = vsel %vm377_vm3, %v426_v33, 0 }
 0x2a0   : > { %2511 = vmatpush3.bf16.xpose.msra.mxu0 %v431_v34 }
 0x2a1   : > { %2522 = vmatprep.subr.bf16.mxu0 %v3030_v18  ;;  %v609_v39 = vpop.permute.xlu1 %608 }
 0x2a2   : > { %v560_v37 = vpop.permute.xlu0 %559  ;;  %v614_v40 = vsel %vm564_vm4, %v609_v39, 0 }
 0x2a3   : > { %2507 = vmatmul.mubr.msk.bf16.vlgmr.msra.gmra.mrb[4].mxu1 %vm377_vm3, %v3284_v27  ;;  %v566_v38 = vsel %vm564_vm4, %v560_v37, 0 }
 0x2a4   : > { %2517 = vmatpush3.bf16.xpose.msra.mxu1 %v480_v36  ;;  %2518 = vmatprep.mubr.msk.bf16.mxu1 %vm3031_vm2, %v3030_v18 }
 0x2a5   : > { %2528 = vmatprep.subr.bf16.mxu1 %v3030_v18 }
 0x2a7   : > { %2513 = vmatmul.mubr.msk.bf16.vlgmr.msra.gmra.mrb[4].mxu0 %vm377_vm3, %v3288_v29 }
 0x2a8   : > { %2523 = vmatpush3.bf16.msra.mxu0 %v566_v38  ;;  %2524 = vmatprep.mubr.msk.bf16.mxu0 %vm3031_vm2, %v3030_v18 }
 0x2a9   : > { %2534 = vmatprep.subr.bf16.mxu0 %v3030_v18 }
 0x2ab   : > { %2519 = vmatmul.mubr.msk.bf16.vlgmr.msra.gmra.mrb[8].mxu1 %vm377_vm3, %v3282_v25 }
 0x2ac   : > { %2529 = vmatpush3.bf16.msra.mxu1 %v614_v40  ;;  %2530 = vmatprep.mubr.msk.bf16.mxu1 %vm3031_vm2, %v3030_v18 }
 0x2ad   : > { %2540 = vmatprep.subr.bf16.mxu1 %v3030_v18 }
 0x376   : > { %v418_v41 = vpop.f32.mrb[4].mxu1 }
 0x377   : > { %v522_v42 = vmul.f32 0.5, %v418_v41  ;;  %v2508_v43 = vpop.f32.mrb[5].mxu1 }
 0x378   : > { %v421_v44 = vpop.f32.mrb[6].mxu1 }
 0x379   : > { %v2509_v45 = vpop.f32.mrb[7].mxu1  ;;  %v526_v46 = vsel %vm525_vm5, %v522_v42, -inf }
 0x37a   : > { %527 = vmax.xlane.f32.xlu1 %v526_v46  ;;  %v467_v47 = vpop.f32.mrb[4].mxu0 }
 0x37b   : > { %v523_v48 = vmul.f32 0.5, %v467_v47  ;;  %v2514_v49 = vpop.f32.mrb[5].mxu0 }
 0x37c   : > { %v470_v50 = vpop.f32.mrb[6].mxu0 }
 0x37d   : > { %v2515_v51 = vpop.f32.mrb[7].mxu0  ;;  %v529_v52 = vsel %vm525_vm5, %v523_v48, -inf }
 0x37e   : > { %v516_v53 = vpop.f32.mrb[8].mxu1  ;;  %530 = vmax.xlane.f32.xlu0 %v529_v52 }
 0x37f   : > { %v524_v54 = vmul.f32 0.5, %v516_v53  ;;  %v2520_v55 = vpop.f32.mrb[9].mxu1 }
 0x380   : > { %v519_v56 = vpop.f32.mrb[10].mxu1 }
 0x381   : > { %v2521_v57 = vpop.f32.mrb[11].mxu1  ;;  %v532_v58 = vsel %vm525_vm5, %v524_v54, -inf }
 0x382   : > { %533 = vmax.xlane.f32.xlu0 %v532_v58 }
 0x38b   : > { %709 = vrot.lane.b32.xlu1 %v3284_v27, %s3034_s29 }
 0x38f   : > { %707 = vrot.lane.b32.xlu1 %v3284_v27, %s3035_s30 }
 0x393   : > { %757 = vrot.lane.b32.xlu1 %v3288_v29, %s3035_s30 }
 0x397   : > { %893 = vrot.lane.b32.xlu1 %v3284_v27, %s3036_s17 }
 0x398   : > { %759 = vrot.lane.b32.xlu0 %v3288_v29, %s3034_s29 }
 0x39c   : > { %809 = vrot.lane.b32.xlu0 %v3282_v25, %s3034_s29  ;;  %s2258_s29 = sshll.u32 %s217_s18, 4  ;;  %s3591_s29 = int_to_ptr.vmem [resolvable:$true] %s2258_s29 }
 0x3a0   : > { %807 = vrot.lane.b32.xlu0 %v3282_v25, %s3035_s30 }
 0x3a4   : > { %941 = vrot.lane.b32.xlu0 %v3288_v29, %s3036_s17 }
 0x407   : > { %v528_v59 = vpop.xlane.xlu1 %527 }
 0x408   : > { %v535_v60 = vsub.f32 %v522_v42, %v528_v59 }
 0x40a   : > { %v538_v61 = vmul.f32 1.442695, %v535_v60 }
 0x40b   : > { %v531_v62 = vpop.xlane.xlu0 %530  ;;  %v710_v4 = vpop.permute.xlu1 %709 }
 0x40c   : > { %2794 = vpow2.f32 %v538_v61  ;;  %v536_v63 = vsub.f32 %v523_v48, %v531_v62  ;;  %v715_v13 = vsel %vm377_vm3, %v710_v4, 0 }
 0x40e   : > { %v540_v0 = vmul.f32 1.442695, %v536_v63 }
 0x40f   : > { %v534_v1 = vpop.xlane.xlu0 %533  ;;  %v708_v10 = vpop.permute.xlu1 %707 }
 0x410   : > { %2796 = vpow2.f32 %v540_v0  ;;  %v537_v2 = vsub.f32 %v524_v54, %v534_v1 }
 0x412   : > { %v542_v3 = vmul.f32 1.442695, %v537_v2 }
 0x413   : > { %v760_v7 = vpop.permute.xlu0 %759  ;;  %v758_v20 = vpop.permute.xlu1 %757 }
 0x414   : > { %2798 = vpow2.f32 %v542_v3  ;;  %v765_v21 = vsel %vm377_vm3, %v760_v7, 0 }
 0x416   : > { %v3334_v5 = vpop.eup %2794 }
 0x417   : > { %v556_v6 = vpack.c.bf16 %v3334_v5, %v3334_v5  ;;  %v810_v17 = vpop.permute.xlu0 %809  ;;  %v894_v24 = vpop.permute.xlu1 %893 }
 0x418   : > { %v815_v23 = vsel %vm377_vm3, %v810_v17, 0  ;;  %v899_v26 = vsel %vm564_vm4, %v894_v24, 0 }
 0x419   : > { %2525 = vmatmul.mubr.msk.bf16.vlgmr.msra.gmra.mrb[8].mxu0 %vm525_vm5, %v556_v6 }
 0x41a   : > { %v3341_v9 = vpop.eup %2796  ;;  %2535 = vmatpush3.bf16.msra.mxu0 %v662_v8  ;;  %2536 = vmatprep.mubr.msk.bf16.mxu0 %vm3031_vm2, %v3030_v18 }
 0x41b   : > { %v557_v11 = vpack.c.bf16 %v3341_v9, %v3341_v9  ;;  %2546 = vmatprep.subr.bf16.mxu0 %v3030_v18  ;;  %v808_v22 = vpop.permute.xlu0 %807 }
 0x41d   : > { %2531 = vmatmul.mubr.msk.bf16.vlgmr.msra.gmra.mrb[12].mxu1 %vm525_vm5, %v557_v11 }
 0x41e   : > { %v3350_v16 = vpop.eup %2798  ;;  %2541 = vmatpush3.bf16.xpose.msra.mxu1 %v715_v13  ;;  %2542 = vmatprep.mubr.msk.bf16.mxu1 %vm3031_vm2, %v3030_v18 }
 0x41f   : > { %v558_v19 = vpack.c.bf16 %v3350_v16, %v3350_v16  ;;  %2552 = vmatprep.subr.bf16.mxu1 %v3030_v18  ;;  %v942_v28 = vpop.permute.xlu0 %941 }
 0x420   : > { %v947_v30 = vsel %vm564_vm4, %v942_v28, 0 }
 0x421   : > { %2537 = vmatmul.mubr.msk.bf16.vlgmr.msra.gmra.mrb[12].mxu0 %vm525_vm5, %v558_v19 }
 0x422   : > { %2548 = vmatprep.mubr.msk.bf16.mxu0 %vm3031_vm2, %v3030_v18 }
 0x423   : > { %2547 = vmatpush3.bf16.xpose.msra.mxu0 %v765_v21 }
 0x424   : > { %2558 = vmatprep.subr.bf16.mxu0 %v3030_v18 }
 0x425   : > { %2543 = vmatmul.mubr.msk.bf16.vlgmr.msra.gmra.mrb[16].mxu1 %vm377_vm3, %v708_v10 }
 0x426   : > { %2553 = vmatpush3.bf16.xpose.msra.mxu1 %v815_v23  ;;  %2554 = vmatprep.mubr.msk.bf16.mxu1 %vm3031_vm2, %v3030_v18 }
 0x427   : > { %2564 = vmatprep.subr.bf16.mxu1 %v3030_v18 }
 0x42a   : > { %2549 = vmatmul.mubr.msk.bf16.vlgmr.msra.gmra.mrb[16].mxu0 %vm377_vm3, %v758_v20 }
 0x42b   : > { %2559 = vmatpush3.bf16.msra.mxu0 %v899_v26  ;;  %2560 = vmatprep.mubr.msk.bf16.mxu0 %vm3031_vm2, %v3030_v18 }
 0x42c   : > { %2570 = vmatprep.subr.bf16.mxu0 %v3030_v18 }
 0x42d   : > { %2555 = vmatmul.mubr.msk.bf16.vlgmr.msra.gmra.mrb[20].mxu1 %vm377_vm3, %v808_v22 }
 0x42e   : > { %2565 = vmatpush3.bf16.msra.mxu1 %v947_v30  ;;  %2566 = vmatprep.mubr.msk.bf16.mxu1 %vm3031_vm2, %v3030_v18 }
 0x42f   : > { %2576 = vmatprep.subr.bf16.mxu1 %v3030_v18 }
 0x4ec   : > { %v3377_v31 = vpop.f32.mrb[8].mxu0 }
 0x4ed   : > { %v2526_v32 = vpop.f32.mrb[9].mxu0 }
 0x4ee   : > { %v605_v33 = vpop.f32.mrb[10].mxu0 }
 0x4ef   : > { %v2527_v34 = vpop.f32.mrb[11].mxu0 }
 0x4f0   : > { %v3379_v35 = vpop.f32.mrb[12].mxu1 }
 0x4f1   : > { %v2532_v36 = vpop.f32.mrb[13].mxu1 }
 0x4f2   : > { %v653_v37 = vpop.f32.mrb[14].mxu1 }
 0x4f3   : > { %v2533_v38 = vpop.f32.mrb[15].mxu1 }
 0x4f4   : > { %v3381_v39 = vpop.f32.mrb[12].mxu0 }
 0x4f5   : > { %v2538_v40 = vpop.f32.mrb[13].mxu0 }
 0x4f6   : > { %v701_v41 = vpop.f32.mrb[14].mxu0 }
 0x4f7   : > { %v2539_v42 = vpop.f32.mrb[15].mxu0 }
 0x4f8   : > { %v751_v43 = vpop.f32.mrb[16].mxu1 }
 0x4f9   : > { %v857_v44 = vmul.f32 0.5, %v751_v43  ;;  %v2544_v45 = vpop.f32.mrb[17].mxu1 }
 0x4fa   : > { %v754_v46 = vpop.f32.mrb[18].mxu1 }
 0x4fb   : > { %v2545_v47 = vpop.f32.mrb[19].mxu1  ;;  %v860_v48 = vsel %vm525_vm5, %v857_v44, -inf }
 0x4fc   : > { %861 = vmax.xlane.f32.xlu1 %v860_v48 }
 0x4fd   : > { %v801_v49 = vpop.f32.mrb[16].mxu0 }
 0x4fe   : > { %v858_v50 = vmul.f32 0.5, %v801_v49  ;;  %v2550_v51 = vpop.f32.mrb[17].mxu0 }
 0x4ff   : > { %v804_v52 = vpop.f32.mrb[18].mxu0 }
 0x500   : > { %v2551_v53 = vpop.f32.mrb[19].mxu0  ;;  %v863_v54 = vsel %vm525_vm5, %v858_v50, -inf  ;;  %v851_v55 = vpop.f32.mrb[20].mxu1 }
 0x501   : > { %864 = vmax.xlane.f32.xlu0 %v863_v54  ;;  %v859_v56 = vmul.f32 0.5, %v851_v55  ;;  %v2556_v57 = vpop.f32.mrb[21].mxu1 }
 0x502   : > { %v854_v58 = vpop.f32.mrb[22].mxu1 }
 0x503   : > { %v2557_v59 = vpop.f32.mrb[23].mxu1  ;;  %v866_v60 = vsel %vm525_vm5, %v859_v56, -inf }
 0x505   : > { %867 = vmax.xlane.f32.xlu0 %v866_v60 }
 0x50d   : > { %989 = vrot.lane.b32.xlu1 %v3282_v25, %s3036_s17 }
 0x511   : > { %1042 = vrot.lane.b32.xlu1 %v3284_v27, %s3037_s26 }
 0x515   : > { %1040 = vrot.lane.b32.xlu1 %v3284_v27, %s3038_s28 }
 0x519   : > { %1090 = vrot.lane.b32.xlu1 %v3288_v29, %s3038_s28 }
 0x51b   : > { %1092 = vrot.lane.b32.xlu0 %v3288_v29, %s3037_s26 }
 0x51d   : > { %1274 = vrot.lane.b32.xlu1 %v3288_v29, %s3039_s22 }
 0x51f   : > { %1142 = vrot.lane.b32.xlu0 %v3282_v25, %s3037_s26  ;;  %s2951_s26 = scalar_lea.vmem %s3591_s29, 128 }
 0x520   : > { %p2952_p11 = scmp.ne.s32.totalorder %s3591_s29, %s2951_s26 }
 0x521   : > { %1322 = vrot.lane.b32.xlu1 %v3282_v25, %s3039_s22 }
 0x522   : > { %p2953_p1 = pnand %p2952_p11, %p3651_p0 }
 0x523   : > { %1140 = vrot.lane.b32.xlu0 %v3282_v25, %s3038_s28  ;;  %s2955_s28 = sshll.u32 %s3046_s16, 4  ;;  %s2956_s28 = int_to_ptr.vmem [resolvable:$false] %s2955_s28 }
 0x524   : > { %p2954_p3 = pneg %p2953_p1  ;;  %p2958_p5 = scmp.lt.s32.totalorder %s3591_s29, %s2956_s28 }
 0x527   : > { %1226 = vrot.lane.b32.xlu0 %v3284_v27, %s3039_s22  ;;  %s2957_s22 = scalar_lea.vmem %s2956_s28, 256 }
 0x528   : > { %p2959_p9 = scmp.lt.s32.totalorder %s2957_s22, %s2951_s26 }
 0x52a   : > { %p2960_p12 = por %p2959_p9, %p2958_p5 }
 0x52c   : > { %p2961_p2 = pnand %p2960_p12, %p2954_p3 }
 0x589   : > { %v862_v61 = vpop.xlane.xlu1 %861 }
 0x58a   : > { %v869_v62 = vsub.f32 %v857_v44, %v862_v61 }
 0x58c   : > { %v872_v63 = vmul.f32 1.442695, %v869_v62 }
 0x58d   : > { %v990_v6 = vpop.permute.xlu1 %989 }
 0x58e   : > { %2800 = vpow2.f32 %v872_v63  ;;  %v865_v0 = vpop.xlane.xlu0 %864  ;;  %v995_v13 = vsel %vm564_vm4, %v990_v6, 0 }
 0x58f   : > { %v870_v1 = vsub.f32 %v858_v50, %v865_v0 }
 0x591   : > { %v874_v2 = vmul.f32 1.442695, %v870_v1  ;;  %v1043_v17 = vpop.permute.xlu1 %1042 }
 0x592   : > { %v868_v3 = vpop.xlane.xlu0 %867  ;;  %v1048_v22 = vsel %vm377_vm3, %v1043_v17, 0 }
 0x593   : > { %2802 = vpow2.f32 %v874_v2  ;;  %v871_v4 = vsub.f32 %v859_v56, %v868_v3 }
 0x595   : > { %v876_v7 = vmul.f32 1.442695, %v871_v4  ;;  %v1041_v24 = vpop.permute.xlu1 %1040 }
 0x596   : > { %v1093_v8 = vpop.permute.xlu0 %1092 }
 0x597   : > { %2804 = vpow2.f32 %v876_v7  ;;  %v1098_v30 = vsel %vm377_vm3, %v1093_v8, 0 }
 0x598   : > { %v3397_v10 = vpop.eup %2800 }
 0x599   : > { %v890_v11 = vpack.c.bf16 %v3397_v10, %v3397_v10  ;;  %v1091_v32 = vpop.permute.xlu1 %1090 }
 0x59a   : > { %v1143_v20 = vpop.permute.xlu0 %1142 }
 0x59b   : > { %2561 = vmatmul.mubr.msk.bf16.vlgmr.msra.gmra.mrb[20].mxu0 %vm525_vm5, %v890_v11  ;;  %v1148_v33 = vsel %vm377_vm3, %v1143_v20, 0 }
 0x59c   : > { %2571 = vmatpush3.bf16.msra.mxu0 %v995_v13  ;;  %2572 = vmatprep.mubr.msk.bf16.mxu0 %vm3031_vm2, %v3030_v18 }
 0x59d   : > { %v3405_v19 = vpop.eup %2802  ;;  %2582 = vmatprep.subr.bf16.mxu0 %v3030_v18  ;;  %v1275_v37 = vpop.permute.xlu1 %1274 }
 0x59e   : > { %v891_v21 = vpack.c.bf16 %v3405_v19, %v3405_v19  ;;  %v1141_v28 = vpop.permute.xlu0 %1140  ;;  %v1280_v38 = vsel %vm564_vm4, %v1275_v37, 0 }
 0x5a0   : > { %2567 = vmatmul.mubr.msk.bf16.vlgmr.msra.gmra.mrb[24].mxu1 %vm525_vm5, %v891_v21 }
 0x5a1   : > { %v3412_v23 = vpop.eup %2804  ;;  %2577 = vmatpush3.bf16.xpose.msra.mxu1 %v1048_v22  ;;  %2578 = vmatprep.mubr.msk.bf16.mxu1 %vm3031_vm2, %v3030_v18  ;;  %v1323_v7 = vpop.permute.xlu1 %1322 }
 0x5a2   : > { %v892_v26 = vpack.c.bf16 %v3412_v23, %v3412_v23  ;;  %2588 = vmatprep.subr.bf16.mxu1 %v3030_v18  ;;  %v1227_v34 = vpop.permute.xlu0 %1226 }
 0x5a3   : > { %v1232_v36 = vsel %vm564_vm4, %v1227_v34, 0 }
 0x5a4   : > { %2573 = vmatmul.mubr.msk.bf16.vlgmr.msra.gmra.mrb[24].mxu0 %vm525_vm5, %v892_v26 }
 0x5a5   : > { %2583 = vmatpush3.bf16.xpose.msra.mxu0 %v1098_v30  ;;  %2584 = vmatprep.mubr.msk.bf16.mxu0 %vm3031_vm2, %v3030_v18 }
 0x5a6   : > { %2594 = vmatprep.subr.bf16.mxu0 %v3030_v18 }
 0x5a8   : > { %2579 = vmatmul.mubr.msk.bf16.vlgmr.msra.gmra.mrb[28].mxu1 %vm377_vm3, %v1041_v24 }
 0x5a9   : > { %2589 = vmatpush3.bf16.xpose.msra.mxu1 %v1148_v33  ;;  %2590 = vmatprep.mubr.msk.bf16.mxu1 %vm3031_vm2, %v3030_v18 }
 0x5aa   : > { %2600 = vmatprep.subr.bf16.mxu1 %v3030_v18 }
 0x5ac   : > { %2585 = vmatmul.mubr.msk.bf16.vlgmr.msra.gmra.mrb[28].mxu0 %vm377_vm3, %v1091_v32  ;;  %v1328_v32 = vsel %vm564_vm4, %v1323_v7, 0 }
 0x5ad   : > { %2595 = vmatpush3.bf16.msra.mxu0 %v1232_v36  ;;  %2596 = vmatprep.mubr.msk.bf16.mxu0 %vm3031_vm2, %v3030_v18 }
 0x5ae   : > { %2606 = vmatprep.subr.bf16.mxu0 %v3030_v18 }
 0x5b0   : > { %2591 = vmatmul.mubr.msk.bf16.vlgmr.msra.gmra.mrb[32].mxu1 %vm377_vm3, %v1141_v28 }
 0x5b1   : > { %2601 = vmatpush3.bf16.msra.mxu1 %v1280_v38  ;;  %2602 = vmatprep.mubr.msk.bf16.mxu1 %vm3031_vm2, %v3030_v18 }
 0x5b2   : > { %2612 = vmatprep.subr.bf16.mxu1 %v3030_v18 }
 0x66e   : > { %v3439_v40 = vpop.f32.mrb[20].mxu0 }
 0x66f   : > { %v2562_v41 = vpop.f32.mrb[21].mxu0 }
 0x670   : > { %v938_v42 = vpop.f32.mrb[22].mxu0 }
 0x671   : > { %v2563_v43 = vpop.f32.mrb[23].mxu0 }
 0x673   : > { %v3441_v44 = vpop.f32.mrb[24].mxu1 }
 0x674   : > { %v2568_v45 = vpop.f32.mrb[25].mxu1 }
 0x675   : > { %v986_v46 = vpop.f32.mrb[26].mxu1 }
 0x676   : > { %v2569_v47 = vpop.f32.mrb[27].mxu1 }
 0x677   : > { %v3443_v48 = vpop.f32.mrb[24].mxu0 }
 0x678   : > { %v2574_v49 = vpop.f32.mrb[25].mxu0 }
 0x679   : > { %v1034_v50 = vpop.f32.mrb[26].mxu0 }
 0x67a   : > { %v2575_v51 = vpop.f32.mrb[27].mxu0 }
 0x67b   : > { %v1084_v52 = vpop.f32.mrb[28].mxu1 }
 0x67c   : > { %v1190_v53 = vmul.f32 0.5, %v1084_v52  ;;  %v2580_v54 = vpop.f32.mrb[29].mxu1 }
 0x67d   : > { %v1087_v55 = vpop.f32.mrb[30].mxu1 }
 0x67e   : > { %v2581_v56 = vpop.f32.mrb[31].mxu1  ;;  %v1193_v57 = vsel %vm525_vm5, %v1190_v53, -inf }
 0x67f   : > { %1194 = vmax.xlane.f32.xlu1 %v1193_v57  ;;  %v1134_v58 = vpop.f32.mrb[28].mxu0 }
 0x680   : > { %v1191_v59 = vmul.f32 0.5, %v1134_v58  ;;  %v2586_v60 = vpop.f32.mrb[29].mxu0 }
 0x681   : > { %v1137_v61 = vpop.f32.mrb[30].mxu0 }
 0x682   : > { %v2587_v62 = vpop.f32.mrb[31].mxu0  ;;  %v1196_v63 = vsel %vm525_vm5, %v1191_v59, -inf }
 0x683   : > { %1197 = vmax.xlane.f32.xlu0 %v1196_v63  ;;  %v1184_v0 = vpop.f32.mrb[32].mxu1 }
 0x684   : > { %v1192_v1 = vmul.f32 0.5, %v1184_v0  ;;  %v2592_v2 = vpop.f32.mrb[33].mxu1 }
 0x685   : > { %v1187_v3 = vpop.f32.mrb[34].mxu1 }
 0x686   : > { %v2593_v4 = vpop.f32.mrb[35].mxu1  ;;  %v1199_v6 = vsel %vm525_vm5, %v1192_v1, -inf }
 0x687   : > { %1200 = vmax.xlane.f32.xlu0 %v1199_v6 }
 0x690   : > { %1375 = vrot.lane.b32.xlu1 %v3284_v27, %s3040_s25 }
 0x694   : > { %1373 = vrot.lane.b32.xlu1 %v3284_v27, %s3041_s21 }
 0x698   : > { %1423 = vrot.lane.b32.xlu1 %v3288_v29, %s3041_s21 }
 0x69c   : > { %1559 = vrot.lane.b32.xlu1 %v3284_v27, %s3042_s10 }
 0x69d   : > { %1425 = vrot.lane.b32.xlu0 %v3288_v29, %s3040_s25 }
 0x6a1   : > { %1475 = vrot.lane.b32.xlu0 %v3282_v25, %s3040_s25 }
 0x6a5   : > { %1473 = vrot.lane.b32.xlu0 %v3282_v25, %s3041_s21 }
 0x70c   : > { %v1195_v8 = vpop.xlane.xlu1 %1194 }
 0x70d   : > { %v1202_v11 = vsub.f32 %v1190_v53, %v1195_v8 }
 0x70f   : > { %v1205_v13 = vmul.f32 1.442695, %v1202_v11 }
 0x710   : > { %v1198_v17 = vpop.xlane.xlu0 %1197  ;;  %v1376_v27 = vpop.permute.xlu1 %1375 }
 0x711   : > { %2806 = vpow2.f32 %v1205_v13  ;;  %v1203_v20 = vsub.f32 %v1191_v59, %v1198_v17  ;;  %v1381_v38 = vsel %vm377_vm3, %v1376_v27, 0 }
 0x713   : > { %v1207_v21 = vmul.f32 1.442695, %v1203_v20 }
 0x714   : > { %v1201_v22 = vpop.xlane.xlu0 %1200  ;;  %v1374_v34 = vpop.permute.xlu1 %1373 }
 0x715   : > { %2808 = vpow2.f32 %v1207_v21  ;;  %v1204_v24 = vsub.f32 %v1192_v1, %v1201_v22 }
 0x717   : > { %v1209_v26 = vmul.f32 1.442695, %v1204_v24 }
 0x718   : > { %v1426_v37 = vpop.permute.xlu0 %1425  ;;  %v1424_v43 = vpop.permute.xlu1 %1423 }
 0x719   : > { %2810 = vpow2.f32 %v1209_v26  ;;  %v1431_v45 = vsel %vm377_vm3, %v1426_v37, 0  ;;  %v881_v37 = vsel %vm525_vm5, %v3405_v19, 0.0 }
 0x71b   : > { %v3456_v28 = vpop.eup %2806 }
 0x71c   : > { %v1223_v30 = vpack.c.bf16 %v3456_v28, %v3456_v28  ;;  %v1476_v46 = vpop.permute.xlu0 %1475  ;;  %v1560_v49 = vpop.permute.xlu1 %1559 }
 0x71d   : > { %v1481_v47 = vsel %vm377_vm3, %v1476_v46, 0  ;;  %v1565_v50 = vsel %vm564_vm4, %v1560_v49, 0 }
 0x71e   : > { %2597 = vmatmul.mubr.msk.bf16.vlgmr.msra.gmra.mrb[32].mxu0 %vm525_vm5, %v1223_v30 }
 0x71f   : > { %v3462_v33 = vpop.eup %2808  ;;  %2607 = vmatpush3.bf16.msra.mxu0 %v1328_v32  ;;  %2608 = vmatprep.mubr.msk.bf16.mxu0 %vm3031_vm2, %v3030_v18  ;;  %v878_v32 = vsel %vm525_vm5, %v3397_v10, 0.0 }
 0x720   : > { %v1224_v36 = vpack.c.bf16 %v3462_v33, %v3462_v33  ;;  %2618 = vmatprep.subr.bf16.mxu0 %v3030_v18  ;;  %v1474_v51 = vpop.permute.xlu0 %1473 }
 0x722   : > { %2603 = vmatmul.mubr.msk.bf16.vlgmr.msra.gmra.mrb[36].mxu1 %vm525_vm5, %v1224_v36 }
 0x723   : > { %v3471_v41 = vpop.eup %2810  ;;  %2613 = vmatpush3.bf16.xpose.msra.mxu1 %v1381_v38  ;;  %2614 = vmatprep.mubr.msk.bf16.mxu1 %vm3031_vm2, %v3030_v18 }
 0x724   : > { %v1225_v42 = vpack.c.bf16 %v3471_v41, %v3471_v41  ;;  %2624 = vmatprep.subr.bf16.mxu1 %v3030_v18  ;;  %v1217_v36 = vsel %vm525_vm5, %v3471_v41, 0.0 }
 0x726   : > { %2609 = vmatmul.mubr.msk.bf16.vlgmr.msra.gmra.mrb[36].mxu0 %vm525_vm5, %v1225_v42 }
 0x727   : > { %2620 = vmatprep.mubr.msk.bf16.mxu0 %vm3031_vm2, %v3030_v18 }
 0x728   : > { %2619 = vmatpush3.bf16.xpose.msra.mxu0 %v1431_v45 }
 0x729   : > { %2630 = vmatprep.subr.bf16.mxu0 %v3030_v18 }
 0x72a   : > { %2615 = vmatmul.mubr.msk.bf16.vlgmr.msra.gmra.mrb[40].mxu1 %vm377_vm3, %v1374_v34  ;;  %v1211_v34 = vsel %vm525_vm5, %v3456_v28, 0.0 }
 0x72b   : > { %2625 = vmatpush3.bf16.xpose.msra.mxu1 %v1481_v47  ;;  %2626 = vmatprep.mubr.msk.bf16.mxu1 %vm3031_vm2, %v3030_v18 }
 0x72c   : > { %2636 = vmatprep.subr.bf16.mxu1 %v3030_v18 }
 0x72f   : > { %2621 = vmatmul.mubr.msk.bf16.vlgmr.msra.gmra.mrb[40].mxu0 %vm377_vm3, %v1424_v43 }
 0x730   : > { %2631 = vmatpush3.bf16.msra.mxu0 %v1565_v50  ;;  %2632 = vmatprep.mubr.msk.bf16.mxu0 %vm3031_vm2, %v3030_v18 }
 0x731   : > { %2642 = vmatprep.subr.bf16.mxu0 %v3030_v18 }
 0x732   : > { %2627 = vmatmul.mubr.msk.bf16.vlgmr.msra.gmra.mrb[44].mxu1 %vm377_vm3, %v1474_v51 }
 0x733   : > { %2638 = vmatprep.mubr.msk.bf16.mxu1 %vm3031_vm2, %v3030_v18 }
 0x7f1   : > { %v3496_v52 = vpop.f32.mrb[32].mxu0 }
 0x7f2   : > { %v2598_v53 = vpop.f32.mrb[33].mxu0 }
 0x7f3   : > { %v1271_v54 = vpop.f32.mrb[34].mxu0 }
 0x7f4   : > { %v2599_v55 = vpop.f32.mrb[35].mxu0 }
 0x7f5   : > { %v3498_v56 = vpop.f32.mrb[36].mxu1 }
 0x7f6   : > { %v2604_v57 = vpop.f32.mrb[37].mxu1 }
 0x7f7   : > { %v1319_v58 = vpop.f32.mrb[38].mxu1 }
 0x7f8   : > { %v2605_v59 = vpop.f32.mrb[39].mxu1 }
 0x7f9   : > { %v3500_v60 = vpop.f32.mrb[36].mxu0  ;;  %v544_v59 = vsel %vm525_vm5, %v3334_v5, 0.0 }
 0x7fa   : > { %v2610_v61 = vpop.f32.mrb[37].mxu0 }
 0x7fb   : > { %v1367_v62 = vpop.f32.mrb[38].mxu0 }
 0x7fc   : > { %v2611_v63 = vpop.f32.mrb[39].mxu0 }
 0x7fd   : > { %v1417_v0 = vpop.f32.mrb[40].mxu1  ;;  %v550_v63 = vsel %vm525_vm5, %v3350_v16, 0.0 }
 0x7fe   : > { %v1523_v1 = vmul.f32 0.5, %v1417_v0  ;;  %v2616_v2 = vpop.f32.mrb[41].mxu1  ;;  %v547_v0 = vsel %vm525_vm5, %v3341_v9, 0.0 }
 0x7ff   : > { %v1420_v3 = vpop.f32.mrb[42].mxu1 }
 0x800   : > { %v2617_v4 = vpop.f32.mrb[43].mxu1  ;;  %v1526_v6 = vsel %vm525_vm5, %v1523_v1, -inf }
 0x801   : > { %1527 = vmax.xlane.f32.xlu1 %v1526_v6 }
 0x802   : > { %v1467_v7 = vpop.f32.mrb[40].mxu0 }
 0x803   : > { %v1524_v8 = vmul.f32 0.5, %v1467_v7  ;;  %v2622_v11 = vpop.f32.mrb[41].mxu0 }
 0x804   : > { %v1470_v13 = vpop.f32.mrb[42].mxu0 }
 0x805   : > { %v2623_v17 = vpop.f32.mrb[43].mxu0  ;;  %v1529_v20 = vsel %vm525_vm5, %v1524_v8, -inf  ;;  %v1517_v21 = vpop.f32.mrb[44].mxu1 }
 0x806   : > { %1530 = vmax.xlane.f32.xlu0 %v1529_v20  ;;  %v1525_v22 = vmul.f32 0.5, %v1517_v21  ;;  %v2628_v24 = vpop.f32.mrb[45].mxu1 }
 0x807   : > { %v1520_v26 = vpop.f32.mrb[46].mxu1 }
 0x808   : > { %v2629_v27 = vpop.f32.mrb[47].mxu1  ;;  %v1532_v30 = vsel %vm525_vm5, %v1525_v22, -inf }
 0x80a   : > { %1533 = vmax.xlane.f32.xlu0 %v1532_v30 }
 0x812   : > { %1655 = vrot.lane.b32.xlu1 %v3282_v25, %s3042_s10  ;;  %v884_v25 = vsel %vm525_vm5, %v3412_v23, 0.0 }
 0x820   : > { %1607 = vrot.lane.b32.xlu0 %v3288_v29, %s3042_s10  ;;  %v1214_v29 = vsel %vm525_vm5, %v3462_v33, 0.0 }
 0x836   : > { %879 = vadd.xlane.f32.xlu1 %v878_v32 }
 0x83a   : > { %1212 = vadd.xlane.f32.xlu1 %v1211_v34 }
 0x83e   : > { %1218 = vadd.xlane.f32.xlu1 %v1217_v36 }
 0x83f   : > { %882 = vadd.xlane.f32.xlu0 %v881_v37 }
 0x843   : > { %885 = vadd.xlane.f32.xlu0 %v884_v25 }
 0x847   : > { %1215 = vadd.xlane.f32.xlu0 %v1214_v29 }
 0x88e   : > { %v1528_v10 = vpop.xlane.xlu1 %1527 }
 0x88f   : > { %v1535_v38 = vsub.f32 %v1523_v1, %v1528_v10 }
 0x891   : > { %v1538_v28 = vmul.f32 1.442695, %v1535_v38 }
 0x892   : > { %v1656_v50 = vpop.permute.xlu1 %1655 }
 0x893   : > { %2812 = vpow2.f32 %v1538_v28  ;;  %v1531_v42 = vpop.xlane.xlu0 %1530  ;;  %v1661_v53 = vsel %vm564_vm4, %v1656_v50, 0 }
 0x894   : > { %v1536_v43 = vsub.f32 %v1524_v8, %v1531_v42 }
 0x896   : > { %v1540_v41 = vmul.f32 1.442695, %v1536_v43 }
 0x897   : > { %v1534_v45 = vpop.xlane.xlu0 %1533 }
 0x898   : > { %2814 = vpow2.f32 %v1540_v41  ;;  %v1537_v46 = vsub.f32 %v1525_v22, %v1534_v45 }
 0x89a   : > { %v1542_v19 = vmul.f32 1.442695, %v1537_v46 }
 0x89b   : > { %v1608_v47 = vpop.permute.xlu0 %1607 }
 0x89c   : > { %2816 = vpow2.f32 %v1542_v19  ;;  %v1613_v23 = vsel %vm564_vm4, %v1608_v47, 0 }
 0x89d   : > { %v2813_v49 = vpop.eup %2812  ;;  %2637 = vmatpush3.bf16.msra.mxu1 %v1613_v23 }
 0x89e   : > { %v1544_v33 = vsel %vm525_vm5, %v2813_v49, 0.0  ;;  %v1556_v51 = vpack.c.bf16 %v2813_v49, %v2813_v49 }
 0x89f   : > { %1545 = vadd.xlane.f32.xlu0 %v1544_v33 }
 0x8a0   : > { %2633 = vmatmul.mubr.msk.bf16.vlgmr.msra.gmra.mrb[44].mxu0 %vm525_vm5, %v1556_v51 }
 0x8a1   : > { %2643 = vmatpush3.bf16.msra.mxu0 %v1661_v53  ;;  %2644 = vmatprep.mubr.msk.bf16.mxu0 %vm3031_vm2, %v3030_v18 }
 0x8a2   : > { %v2815_v54 = vpop.eup %2814 }
 0x8a3   : > { %v1547_v55 = vsel %vm525_vm5, %v2815_v54, 0.0  ;;  %v1557_v57 = vpack.c.bf16 %v2815_v54, %v2815_v54 }
 0x8a4   : > { %1548 = vadd.xlane.f32.xlu1 %v1547_v55 }
 0x8a5   : > { %2639 = vmatmul.mubr.msk.bf16.vlgmr.msra.gmra.mrb[48].mxu1 %vm525_vm5, %v1557_v57 }
 0x8a6   : > { %v2817_v58 = vpop.eup %2816 }
 0x8a7   : > { %v1550_v61 = vsel %vm525_vm5, %v2817_v58, 0.0  ;;  %v1558_v62 = vpack.c.bf16 %v2817_v58, %v2817_v58 }
 0x8a8   : > { %545 = vadd.xlane.f32.xlu1 %v544_v59  ;;  %1551 = vadd.xlane.f32.xlu0 %v1550_v61 }
 0x8a9   : > { %2645 = vmatmul.mubr.msk.bf16.vlgmr.msra.gmra.mrb[48].mxu0 %vm525_vm5, %v1558_v62 }
 0x8ac   : > { %551 = vadd.xlane.f32.xlu1 %v550_v63  ;;  %548 = vadd.xlane.f32.xlu0 %v547_v0 }
 0x8c3   : > { %v880_v1 = vpop.xlane.xlu1 %879 }
 0x8c4   : > { %2818 = vrcp.f32 %v880_v1 }
 0x8c7   : > { %v1213_v2 = vpop.xlane.xlu1 %1212 }
 0x8cb   : > { %v1219_v5 = vpop.xlane.xlu1 %1218 }
 0x8cc   : > { %v883_v3 = vpop.xlane.xlu0 %882 }
 0x8cd   : > { %2820 = vrcp.f32 %v883_v3 }
 0x8ce   : > { %2822 = vrcp.f32 %v1219_v5  ;;  %v2819_v7 = vpop.eup %2818 }
 0x8cf   : > { %v1037_v16 = vmul.f32 %v2819_v7, %v3439_v40 }
 0x8d0   : > { %v886_v4 = vpop.xlane.xlu0 %885 }
 0x8d1   : > { %2824 = vrcp.f32 %v886_v4 }
 0x8d2   : > { %2826 = vrcp.f32 %v1213_v2 }
 0x8d4   : > { %v1216_v6 = vpop.xlane.xlu0 %1215 }
 0x8d5   : > { %2828 = vrcp.f32 %v1216_v6 }
 0x8d7   : > { %v2821_v8 = vpop.eup %2820 }
 0x8d8   : > { %v1038_v9 = vmul.f32 %v2821_v8, %v3441_v44  ;;  %v2823_v11 = vpop.eup %2822  ;;  %v2788_v44 = vld [vmem:[#allocation5 + $0x20] sm:$0xff]  }
 0x8d9   : > { %v1372_v22 = vmul.f32 %v2823_v11, %v3500_v60  ;;  %2648 = vmatprep.subr.bf16.mxu1 %v2788_v44 }
 0x8da   : > { %v2770_v13 = vpack.i.bf16 %v1038_v9, %v1037_v16  ;;  %2649 = vmatpush3.bf16.msra.mxu1 %v2788_v44 }
 0x8db   : > { %v2825_v17 = vpop.eup %2824 }
 0x8dc   : > { %2771 = vrot.lane.b32.xlu0 %v2770_v13, %s3043_s11  ;;  %v1039_v20 = vmul.f32 %v2825_v17, %v3443_v48  ;;  %v2827_v21 = vpop.eup %2826 }
 0x8dd   : > { %v1370_v26 = vmul.f32 %v2827_v21, %v3496_v52 }
 0x8de   : > { %1713 = vrot.lane.b32.xlu1 %v1039_v20, %s3043_s11 }
 0x8df   : > { %v2829_v24 = vpop.eup %2828 }
 0x8e0   : > { %1725 = vrot.lane.b32.xlu0 %v1372_v22, %s3044_s24  ;;  %v1371_v40 = vmul.f32 %v2829_v24, %v3498_v56  ;;  %v2390_v22 = vld [vmem:[#allocation7 + $0x2] ss:$0 sm:$0xff] }
 0x8e2   : > { %v2775_v27 = vpack.i.bf16 %v1371_v40, %v1370_v26 }
 0x8e4   : > { %2776 = vrot.lane.b32.xlu1 %v2775_v27, %s3044_s24 }
 0x92c   : > { %v1546_v30 = vpop.xlane.xlu0 %1545 }
 0x92d   : > { %2830 = vrcp.f32 %v1546_v30 }
 0x931   : > { %v1549_v32 = vpop.xlane.xlu1 %1548 }
 0x932   : > { %2832 = vrcp.f32 %v1549_v32 }
 0x935   : > { %v1552_v48 = vpop.xlane.xlu0 %1551  ;;  %v546_v49 = vpop.xlane.xlu1 %545 }
 0x936   : > { %2834 = vrcp.f32 %v1552_v48 }
 0x937   : > { %v2831_v25 = vpop.eup %2830 }
 0x939   : > { %v552_v50 = vpop.xlane.xlu1 %551  ;;  %v549_v33 = vpop.xlane.xlu0 %548 }
 0x93a   : > { %2836 = vrcp.f32 %v552_v50 }
 0x93b   : > { %2838 = vrcp.f32 %v546_v49 }
 0x93c   : > { %v2833_v29 = vpop.eup %2832  ;;  %2840 = vrcp.f32 %v549_v33 }
 0x940   : > { %v2835_v41 = vpop.eup %2834 }
 0x944   : > { %v2837_v54 = vpop.eup %2836 }
 0x945   : > { %v2839_v55 = vpop.eup %2838  ;;  %v706_v62 = vmul.f32 %v2837_v54, %v3381_v39 }
 0x946   : > { %v2841_v58 = vpop.eup %2840  ;;  %v704_v2 = vmul.f32 %v2839_v55, %v3377_v31 }
 0x947   : > { %v705_v3 = vmul.f32 %v2841_v58, %v3379_v35 }
 0x94e   : > { %v2772_v53 = vpop.permute.xlu0 %2771 }
 0x94f   : > { %v2774_v59 = vunpack.i.h.bf16 %v2772_v53  ;;  %v2773_v61 = vunpack.i.l.bf16 %v2772_v53 }
 0x950   : > { %v1714_v51 = vpop.permute.xlu1 %1713 }
 0x951   : > { %v1744_v5 = vsel %vm377_vm3, %v706_v62, %v1714_v51  ;;  %v1743_v6 = vsel %vm377_vm3, %v705_v3, %v2774_v59  ;;  %v1742_v7 = vsel %vm377_vm3, %v704_v2, %v2773_v61  ;;  %v2394_v59 = vld [vmem:[#allocation7 + $0x5] ss:$0 sm:$0xff] }
 0x952   : > { %v1726_v63 = vpop.permute.xlu0 %1725 }
 0x953   : > { %v1747_v9 = vsel %vm525_vm5, %v1744_v5, %v1726_v63 }
 0x956   : > { %v2777_v57 = vpop.permute.xlu1 %2776 }
 0x957   : > { %v2779_v0 = vunpack.i.h.bf16 %v2777_v57  ;;  %v2778_v1 = vunpack.i.l.bf16 %v2777_v57 }
 0x959   : > { %v1745_v39 = vsel %vm525_vm5, %v1742_v7, %v2778_v1  ;;  %v1746_v11 = vsel %vm525_vm5, %v1743_v6, %v2779_v0  ;;  %v2395_v1 = vld [vmem:[#allocation7 + $0x6] ss:$0 sm:$0xff] }
 0x973   : > { %v1601_v34 = vpop.f32.mrb[44].mxu0 }
 0x974   : > { %v2634_v60 = vpop.f32.mrb[45].mxu0  ;;  %v1703_v10 = vmul.f32 %v2831_v25, %v1601_v34 }
 0x975   : > { %v1604_v36 = vpop.f32.mrb[46].mxu0 }
 0x976   : > { %v2635_v37 = vpop.f32.mrb[47].mxu0 }
 0x978   : > { %v1649_v52 = vpop.f32.mrb[48].mxu1 }
 0x979   : > { %v1704_v56 = vmul.f32 %v2833_v29, %v1649_v52  ;;  %v2640_v38 = vpop.f32.mrb[49].mxu1 }
 0x97a   : > { %v1652_v28 = vpop.f32.mrb[50].mxu1 }
 0x97b   : > { %v2780_v42 = vpack.i.bf16 %v1704_v56, %v1703_v10  ;;  %v2641_v43 = vpop.f32.mrb[51].mxu1 }
 0x97c   : > { %v1697_v45 = vpop.f32.mrb[48].mxu0 }
 0x97d   : > { %v1705_v46 = vmul.f32 %v2835_v41, %v1697_v45  ;;  %v2646_v19 = vpop.f32.mrb[49].mxu0  ;;  %2781 = vrot.lane.b32.xlu1 %v2780_v42, %s3045_s27 }
 0x97e   : > { %v1700_v47 = vpop.f32.mrb[50].mxu0 }
 0x97f   : > { %v2647_v23 = vpop.f32.mrb[51].mxu0  ;;  %1737 = vrot.lane.b32.xlu0 %v1705_v46, %s3045_s27  ;;  %v2789_v47 = vld [vmem:[#allocation5 + $0x30] sm:$0xff]  }
 0x980   : > { %2654 = vmatprep.subr.bf16.mxu0 %v2789_v47 }
 0x981   : > { %2655 = vmatpush3.bf16.msra.mxu0 %v2789_v47 }
 0x9ef   : > { %v2782_v4 = vpop.permute.xlu1 %2781 }
 0x9f0   : > { %v2784_v8 = vunpack.i.h.bf16 %v2782_v4  ;;  %v2783_v16 = vunpack.i.l.bf16 %v2782_v4 }
 0x9f1   : > { %v1738_v13 = vpop.permute.xlu0 %1737 }
 0x9f2   : > { %v1749_v31 = vsel %vm1748_vm6, %v1745_v39, %v2783_v16  ;;  %v1750_v17 = vsel %vm1748_vm6, %v1746_v11, %v2784_v8  ;;  %v1751_v35 = vsel %vm1748_vm6, %v1747_v9, %v1738_v13  ;;  %v2790_v39 = vld [vmem:[#allocation5 + $0x40] sm:$0xff]   ;;  %v2396_v11 = vld [vmem:[#allocation7 + $0x3] ss:$0 sm:$0xff] }
 0x9f3   : > { %v1755_v20 = vpack.c.bf16 %v1750_v17, %v1749_v31  ;;  %v1756_v21 = vpack.c.bf16 %v1751_v35, %v1751_v35  ;;  %2660 = vmatprep.subr.bf16.mxu1 %v2790_v39 }
 0x9f5   : > { %2650 = vmatprep.mubr.msk.bf16.mxu1 %vm316_vm1, %v1755_v20 }
 0x9f6   : > { %2651 = vmatmul.mubr.msk.bf16.vlgmr.msra.gmra.mrb[52].mxu1 %vm316_vm1, %v1756_v21 }
 0x9f7   : > { %2661 = vmatpush3.bf16.msra.mxu1 %v2790_v39 }
 0x9f8   : > { %2672 = vmatprep.subr.bf16.mxu1 %v3030_v18 }
 0xac9   : > { %v2652_v24 = vpop.f32.mrb[52].mxu1 }
 0xaca   : > { %v1808_v26 = vpop.f32.mrb[53].mxu1  ;;  %v1817_v30 = vadd.f32 %v2652_v24, %v2390_v22 }
 0xacb   : > { %v1809_v40 = vadd.f32 %v2390_v22, %v1808_v26  ;;  %v2653_v27 = vpop.f32.mrb[54].mxu1 }
 0xacc   : > { %v1811_v44 = vpop.f32.mrb[55].mxu1  ;;  %v1824_v37 = vadd.f32 %v1817_v30, %v3264_v12  ;;  %v2400_v30 = vld [vmem:[#allocation7 + $0x4] ss:$0 sm:$0xff] }
 0xacd   : > { %v1812_v32 = vadd.f32 %v2390_v22, %v1811_v44  ;;  %v1822_v48 = vadd.f32 %v1809_v40, %v3266_v14 }
 0xace   : > { %v1831_v25 = vsel %vm316_vm1, %v1824_v37, 0.0 }
 0xacf   : > { %v1825_v34 = vsel %vm316_vm1, %v1822_v48, 0.0  ;;  %v1823_v60 = vadd.f32 %v1812_v32, %v3268_v15 }
 0xad0   : > { %1826 = vadd.xlane.f32.xlu1 %v1825_v34 }
 0xad1   : > { %v1828_v36 = vsel %vm316_vm1, %v1823_v60, 0.0 }
 0xad2   : > { %1829 = vadd.xlane.f32.xlu0 %v1828_v36 }
 0xad6   : > { %1832 = vadd.xlane.f32.xlu0 %v1831_v25 }
 0xb5d   : > { %v1827_v29 = vpop.xlane.xlu1 %1826 }
 0xb5e   : > { %v1835_v52 = vmul.f32 0.0625, %v1827_v29 }
 0xb5f   : > { %v1830_v10 = vpop.xlane.xlu0 %1829 }
 0xb60   : > { %v1838_v56 = vsub.f32 %v1822_v48, %v1835_v52  ;;  %v1836_v38 = vmul.f32 0.0625, %v1830_v10 }
 0xb62   : > { %v1839_v28 = vsub.f32 %v1823_v60, %v1836_v38  ;;  %v1841_v14 = vmul.f32 %v1838_v56, %v1838_v56 }
 0xb63   : > { %v1833_v42 = vpop.xlane.xlu0 %1832 }
 0xb64   : > { %v1837_v43 = vmul.f32 0.0625, %v1833_v42  ;;  %v1844_v15 = vsel %vm316_vm1, %v1841_v14, 0.0  ;;  %v1842_v41 = vmul.f32 %v1839_v28, %v1839_v28 }
 0xb65   : > { %1845 = vadd.xlane.f32.xlu1 %v1844_v15 }
 0xb66   : > { %v1840_v45 = vsub.f32 %v1824_v37, %v1837_v43  ;;  %v1847_v12 = vsel %vm316_vm1, %v1842_v41, 0.0 }
 0xb67   : > { %1848 = vadd.xlane.f32.xlu0 %v1847_v12 }
 0xb68   : > { %v1843_v46 = vmul.f32 %v1840_v45, %v1840_v45 }
 0xb6a   : > { %v1850_v19 = vsel %vm316_vm1, %v1843_v46, 0.0 }
 0xb6b   : > { %1851 = vadd.xlane.f32.xlu1 %v1850_v19 }
 0xbf2   : > { %v1846_v23 = vpop.xlane.xlu1 %1845 }
 0xbf3   : > { %v1853_v49 = vmul.f32 0.0625, %v1846_v23 }
 0xbf4   : > { %v1849_v50 = vpop.xlane.xlu0 %1848 }
 0xbf5   : > { %v1856_v33 = vadd.f32 1e-05, %v1853_v49  ;;  %v1854_v51 = vmul.f32 0.0625, %v1849_v50 }
 0xbf7   : > { %2842 = vrsqrt.f32 %v1856_v33  ;;  %v1857_v53 = vadd.f32 1e-05, %v1854_v51 }
 0xbf8   : > { %v1852_v54 = vpop.xlane.xlu1 %1851 }
 0xbf9   : > { %2844 = vrsqrt.f32 %v1857_v53  ;;  %v1855_v55 = vmul.f32 0.0625, %v1852_v54  ;;  %v2791_v53 = vld [vmem:[#allocation5 + $0x50] sm:$0xff]   ;;  %v2792_v54 = vld [vmem:[#allocation5 + $0x60] sm:$0xff]  }
 0xbfa   : > { %2666 = vmatprep.subr.bf16.mxu0 %v2791_v53 }
 0xbfb   : > { %v1858_v57 = vadd.f32 1e-05, %v1855_v55 }
 0xbfd   : > { %2846 = vrsqrt.f32 %v1858_v57 }
 0xc01   : > { %v2843_v58 = vpop.eup %2842 }
 0xc02   : > { %v1862_v61 = vmul.f32 %v2843_v58, %v1838_v56 }
 0xc03   : > { %v2845_v62 = vpop.eup %2844 }
 0xc04   : > { %v1863_v63 = vmul.f32 %v2845_v62, %v1839_v28  ;;  %v1870_v0 = vmul.f32 %v2394_v59, %v1862_v61 }
 0xc06   : > { %v1871_v2 = vmul.f32 %v2394_v59, %v1863_v63  ;;  %v1878_v4 = vadd.f32 %v2395_v1, %v1870_v0 }
 0xc07   : > { %v2847_v3 = vpop.eup %2846 }
 0xc08   : > { %v1864_v5 = vmul.f32 %v2847_v3, %v1840_v45  ;;  %v1879_v6 = vadd.f32 %v2395_v1, %v1871_v2  ;;  %v2404_v3 = vld [vmem:[#allocation7 + $0x7] ss:$0 sm:$0xff] }
 0xc0a   : > { %v1884_v7 = vpack.c.bf16 %v1879_v6, %v1878_v4  ;;  %v1872_v8 = vmul.f32 %v2394_v59, %v1864_v5 }
 0xc0c   : > { %2656 = vmatprep.mubr.msk.bf16.mxu0 %vm316_vm1, %v1884_v7  ;;  %v1880_v16 = vadd.f32 %v2395_v1, %v1872_v8 }
 0xc0e   : > { %v1885_v9 = vpack.c.bf16 %v1880_v16, %v1880_v16 }
 0xc10   : > { %2657 = vmatmul.mubr.msk.bf16.vlgmr.msra.gmra.mrb[52].mxu0 %vm316_vm1, %v1885_v9 }
 0xc11   : > { %2667 = vmatpush3.bf16.msra.mxu0 %v2791_v53 }
 0xce3   : > { %v2658_v13 = vpop.f32.mrb[52].mxu0 }
 0xce4   : > { %v1946_v31 = vadd.f32 %v2658_v13, %v2396_v11  ;;  %v1937_v17 = vpop.f32.mrb[53].mxu0 }
 0xce5   : > { %v1938_v35 = vadd.f32 %v2396_v11, %v1937_v17  ;;  %v2659_v20 = vpop.f32.mrb[54].mxu0 }
 0xce6   : > { %v1940_v21 = vpop.f32.mrb[55].mxu0  ;;  %v1953_v24 = vmax.f32 %v1946_v31, 0.0  ;;  %v2793_v20 = vld [vmem:[#allocation5 + $0x68] sm:$0xff]  }
 0xce7   : > { %v1941_v22 = vadd.f32 %v2396_v11, %v1940_v21  ;;  %v1951_v26 = vmax.f32 %v1938_v35, 0.0  ;;  %v2406_v21 = vld [vmem:[#allocation7 + $0x9] ss:$0 sm:$0xff] }
 0xce8   : > { %v1958_v44 = vpack.c.bf16 %v1953_v24, %v1953_v24 }
 0xce9   : > { %v1952_v40 = vmax.f32 %v1941_v22, 0.0 }
 0xceb   : > { %v1957_v27 = vpack.c.bf16 %v1952_v40, %v1951_v26 }
 0xced   : > { %2662 = vmatprep.mubr.msk.bf16.mxu1 %vm316_vm1, %v1957_v27 }
 0xcee   : > { %2663 = vmatmul.mubr.msk.bf16.vlgmr.msra.gmra.mrb[56].mxu1 %vm316_vm1, %v1958_v44 }
 0xcef   : > { %2676 = vmatprep.mubr.msk.bf16.mxu1 %vm3031_vm2, %v3030_v18  ;;  %2673 = vmatpush3.bf16.msra.mxu1 %v2792_v54 }
 0xcf0   : > { %2674 = vmatprep.subr.bf16.mxu1 %v3030_v18  ;;  %v2405_v18 = vld [vmem:[#allocation7 + $0x8] ss:$0 sm:$0xff] }
 0xcf3   : > { %2675 = vmatpush3.bf16.msra.mxu1 %v2793_v20 }
 0xdc1   : > { %v2664_v32 = vpop.f32.mrb[56].mxu1 }
 0xdc2   : > { %v2010_v48 = vpop.f32.mrb[57].mxu1  ;;  %v2019_v34 = vadd.f32 %v2664_v32, %v2400_v30 }
 0xdc3   : > { %v2011_v60 = vadd.f32 %v2400_v30, %v2010_v48  ;;  %v2665_v36 = vpop.f32.mrb[58].mxu1 }
 0xdc4   : > { %v2013_v37 = vpop.f32.mrb[59].mxu1  ;;  %v2026_v56 = vadd.f32 %v2019_v34, %v1880_v16  ;;  %v2410_v34 = vld [vmem:[#allocation7 + $0xa] ss:$0 sm:$0xff] }
 0xdc5   : > { %v2014_v25 = vadd.f32 %v2400_v30, %v2013_v37  ;;  %v2024_v29 = vadd.f32 %v2011_v60, %v1878_v4  ;;  %v2862_v30 = vld [vmem:[%s3249_s8] sm:$0xff] }
 0xdc6   : > { %v2033_v28 = vsel %vm316_vm1, %v2026_v56, 0.0 }
 0xdc7   : > { %v2027_v52 = vsel %vm316_vm1, %v2024_v29, 0.0  ;;  %v2025_v10 = vadd.f32 %v2014_v25, %v1879_v6 }
 0xdc8   : > { %2028 = vadd.xlane.f32.xlu0 %v2027_v52 }
 0xdc9   : > { %v2030_v38 = vsel %vm316_vm1, %v2025_v10, 0.0 }
 0xdca   : > { %2031 = vadd.xlane.f32.xlu1 %v2030_v38 }
 0xdcc   : > { %2034 = vadd.xlane.f32.xlu0 %v2033_v28 }
 0xe55   : > { %v2029_v14 = vpop.xlane.xlu0 %2028 }
 0xe56   : > { %v2036_v42 = vmul.f32 0.0625, %v2029_v14 }
 0xe57   : > { %v2032_v43 = vpop.xlane.xlu1 %2031 }
 0xe58   : > { %v2039_v15 = vsub.f32 %v2024_v29, %v2036_v42  ;;  %v2037_v41 = vmul.f32 0.0625, %v2032_v43 }
 0xe59   : > { %v2035_v45 = vpop.xlane.xlu0 %2034 }
 0xe5a   : > { %v2040_v12 = vsub.f32 %v2025_v10, %v2037_v41  ;;  %v2038_v46 = vmul.f32 0.0625, %v2035_v45  ;;  %v2042_v19 = vmul.f32 %v2039_v15, %v2039_v15  ;;  %v2863_v41 = vld [vmem:[%s3249_s8 + $0x8] sm:$0xff] }
 0xe5c   : > { %v2041_v47 = vsub.f32 %v2026_v56, %v2038_v46  ;;  %v2045_v23 = vsel %vm316_vm1, %v2042_v19, 0.0  ;;  %v2043_v49 = vmul.f32 %v2040_v12, %v2040_v12 }
 0xe5d   : > { %2046 = vadd.xlane.f32.xlu1 %v2045_v23 }
 0xe5e   : > { %v2048_v50 = vsel %vm316_vm1, %v2043_v49, 0.0  ;;  %v2044_v33 = vmul.f32 %v2041_v47, %v2041_v47 }
 0xe5f   : > { %2049 = vadd.xlane.f32.xlu0 %v2048_v50 }
 0xe60   : > { %v2051_v51 = vsel %vm316_vm1, %v2044_v33, 0.0 }
 0xe61   : > { %2052 = vadd.xlane.f32.xlu1 %v2051_v51 }
 0xeea   : > { %v2047_v55 = vpop.xlane.xlu1 %2046 }
 0xeeb   : > { %v2054_v57 = vmul.f32 0.0625, %v2047_v55 }
 0xeec   : > { %v2050_v58 = vpop.xlane.xlu0 %2049 }
 0xeed   : > { %v2057_v59 = vadd.f32 1e-05, %v2054_v57  ;;  %v2055_v61 = vmul.f32 0.0625, %v2050_v58 }
 0xeee   : > { %v2053_v62 = vpop.xlane.xlu1 %2052 }
 0xeef   : > { %2848 = vrsqrt.f32 %v2057_v59  ;;  %v2058_v63 = vadd.f32 1e-05, %v2055_v61  ;;  %v2056_v0 = vmul.f32 0.0625, %v2053_v62 }
 0xef1   : > { %2850 = vrsqrt.f32 %v2058_v63  ;;  %v2059_v1 = vadd.f32 1e-05, %v2056_v0 }
 0xef3   : > { %2852 = vrsqrt.f32 %v2059_v1 }
 0xef9   : > { %v2849_v2 = vpop.eup %2848 }
 0xefa   : > { %v2063_v5 = vmul.f32 %v2849_v2, %v2039_v15 }
 0xefb   : > { %v2851_v4 = vpop.eup %2850 }
 0xefc   : > { %v2064_v6 = vmul.f32 %v2851_v4, %v2040_v12  ;;  %v2071_v7 = vmul.f32 %v2404_v3, %v2063_v5 }
 0xefd   : > { %v2853_v8 = vpop.eup %2852 }
 0xefe   : > { %v2065_v16 = vmul.f32 %v2853_v8, %v2041_v47  ;;  %v2072_v9 = vmul.f32 %v2404_v3, %v2064_v6  ;;  %v2079_v11 = vadd.f32 %v2405_v18, %v2071_v7  ;;  %v2864_v47 = vld [vmem:[%s3249_s8 + $0x10] sm:$0xff]  ;;  %s2245_s8 = scalar_lea.sflag [#allocation4], %s3245_s4 }
 0xf00   : > { %v2073_v39 = vmul.f32 %v2404_v3, %v2065_v16  ;;  %v2080_v13 = vadd.f32 %v2405_v18, %v2072_v9 }
 0xf02   : > { %v2085_v31 = vpack.c.bf16 %v2080_v13, %v2079_v11  ;;  %v2081_v17 = vadd.f32 %v2405_v18, %v2073_v39 }
 0xf04   : > { %2668 = vmatprep.mubr.msk.bf16.mxu0 %vm316_vm1, %v2085_v31  ;;  %v2086_v35 = vpack.c.bf16 %v2081_v17, %v2081_v17 }
 0xf06   : > { %2669 = vmatmul.mubr.msk.bf16.vlgmr.msra.gmra.mrb[56].mxu0 %vm316_vm1, %v2086_v35 }
 0xfd9   : > { %v2670_v22 = vpop.f32.mrb[56].mxu0 }
 0xfda   : > { %v2147_v24 = vadd.f32 %v2670_v22, %v2406_v21  ;;  %v2138_v26 = vpop.f32.mrb[57].mxu0 }
 0xfdb   : > { %v2139_v40 = vadd.f32 %v2406_v21, %v2138_v26  ;;  %v2671_v27 = vpop.f32.mrb[58].mxu0 }
 0xfdc   : > { %v2141_v44 = vpop.f32.mrb[59].mxu0 }
 0xfdd   : > { %v2157_v32 = vpack.c.bf16 %v2139_v40, %v2862_v30  ;;  %v2142_v48 = vadd.f32 %v2406_v21, %v2141_v44 }
 0xfdf   : > { %2677 = vmatmul.mubr.msk.bf16.vlgmr.msra.gmra.mrb[60].mxu1 %vm245_vm0, %v2157_v32 }
0x10b2   : > { %v2212_v60 = vpop.f32.mrb[60].mxu1 }
0x10b3   : > { %v2213_v36 = vadd.f32 %v2410_v34, %v2212_v60  ;;  %v2678_v37 = vpop.f32.mrb[61].mxu1 }
0x10b4   : > { %v2215_v25 = vpop.f32.mrb[62].mxu1 }
0x10b5   : > { %v2414_v29 = vmul.f32 -1.442695, %v2213_v36  ;;  %v2216_v52 = vadd.f32 %v2410_v34, %v2215_v25  ;;  %v2679_v10 = vpop.f32.mrb[63].mxu1 }
0x10b7   : > { %2854 = vpow2.f32 %v2414_v29  ;;  %v2415_v56 = vmul.f32 -1.442695, %v2216_v52 }
0x10b9   : > { %2856 = vpow2.f32 %v2415_v56 }
0x10c1   : > { %v2855_v38 = vpop.eup %2854 }
0x10c2   : > { %v2225_v28 = vadd.f32 1.0, %v2855_v38 }
0x10c3   : > { %v2857_v14 = vpop.eup %2856 }
0x10c4   : > { %2858 = vrcp.f32 %v2225_v28  ;;  %v2226_v42 = vadd.f32 1.0, %v2857_v14 }
0x10c6   : > { %2860 = vrcp.f32 %v2226_v42 }
0x10ce   : > { %v2859_v43 = vpop.eup %2858 }
0x10cf   : > { %v2231_v45 = vmul.f32 %v2863_v41, %v2859_v43  ;;  %v2234_v23 = vmul.f32 %v2864_v47, %v2859_v43 }
0x10d0   : > { %v2861_v15 = vpop.eup %2860 }
0x10d1   : > { %2236 = vrot.lane.b32.xlu0 %v2861_v15, %s3033_s20  ;;  %v2232_v12 = vmul.f32 %v2861_v15, %v2142_v48  ;;  %s3589_s20 = scalar_lea.hbm %s3637_s3, %s2417_s7 }
0x10d3   : > { %v2233_v46 = vadd.f32 %v2232_v12, %v2231_v45 }
0x10d5   : > { %v2241_v33 = vadd.f32 %v2862_v30, %v2233_v46 }
0x1143   : > { %v2237_v19 = vpop.permute.xlu0 %2236 }
0x1144   : > { %v2239_v49 = vmul.f32 %v2237_v19, %v2147_v24 }
0x1146   : > { %v2240_v50 = vadd.f32 %v2239_v49, %v2234_v23 }
0x1148   : > { %v2242_v51 = vadd.f32 %v2241_v33, %v2240_v50 }
0x114a   : > { %2243 = vst.msk [vmem:[%s217_s18] sm:$0xff] %vm245_vm0, %v2242_v51 }
0x114b   : > { %2964 = shalt.err (!%p2961_p2)
}
0x114c   : > { %s2965_s4 = scalar_lea.hbm %s3589_s20, 128  ;;  %s2969_s10 = scalar_lea.hbm %s3637_s3, 256 }
0x114d   : > { %p2966_p13 = scmp.ne.s32.totalorder %s3589_s20, %s2965_s4  ;;  %p2970_p4 = scmp.lt.u32.totalorder %s3589_s20, %s3637_s3 }
0x114e   : > { %p2971_p7 = scmp.lt.u32.totalorder %s2969_s10, %s2965_s4  ;;  %p2973_p11 = scmp.lt.u32.totalorder %s2965_s4, %s3589_s20 }
0x114f   : > { %p2967_p6 = pnand %p2966_p13, %p3651_p0 }
0x1150   : > { %p2972_p8 = por %p2971_p7, %p2970_p4 }
0x1151   : > { %p2968_p10 = pneg %p2967_p6 }
0x1152   : > { %p2974_p1 = por %p2973_p11, %p2972_p8 }
0x1154   : > { %p2975_p3 = pnand %p2974_p1, %p2968_p10 }
0x1156   : > { %2978 = shalt.err (!%p2975_p3)
}
0x1157   : > { %2693 = dma.vmem_to_hbm [thread:$0]  (%p3651_p0), %s3591_s29, 128, %s3589_s20, %s2245_s8  }
0x1158 PF: > { %s2270_s27 = sand.u32 1, %s3009_s12   ;;  %p3652_p5 = scmp.ne.s32.totalorder %s3642_s19, 0 }
0x1159   : > { %p3653_p9 = scmp.ge.s32.totalorder %s3021_s15, 2  ;;  %s2271_s5 = scalar_lea.sflag [#allocation4], %s2270_s27 }
0x115b   : > { %p2707_p12 = pnand %p3653_p9, %p3652_p5 }
0x115d   : > { %3004 = dma.done.wait (!%p2707_p12), %s2271_s5, 128  }
0x115e   : > { %3006 = vsyncadd (!%p2707_p12), %s2271_s5, 4294967168  ;;  %p17_p2 = scmp.ge.s32.totalorder %s3180_s6, 4   ;;  %s3654_s12 = smov %s3013_s13 }
0x115f   : > { %s3655_s13 = smov %s3017_s14  ;;  %s3656_s14 = smov %s3189_s9 }
0x1160   : > { %s3657_s15 = smov %s3180_s6  ;;  %19 = sbr.rel (!%p17_p2) target bundleno = 6 (0x6), region = 91 }
0x1167   :  { %2276 = vsyncpa [#allocation3], 1 }
0x1168   :  { %2278 = vsyncpa [#allocation3 + $0x1], 1 }
0x1169   :  { %2279 = vsyncpa [#allocation6], 1 }
0x116a   :  { %2280 = vsyncpa [#allocation4], 1 }
0x116b   :  { %2282 = vsyncpa [#allocation4 + $0x1], 1 }

// kernel: tpu_custom_call.1
= control target key start
LH: loop header
LB: loop body
LE: loop exit
PB: predicated region body
PF: predicated region fallthrough
CT: control target
= control target key end

     0   :  { %8 = vsyncpa [#allocation3], 0  ;;  %s3634_s0 = inlined_call_operand.hbm [shape: f32[2,3,8,32], index: 0, kind: input, shape index: {}]   ;;  %s3635_s1 = inlined_call_operand.hbm [shape: bf16[7,32,64], index: 1, kind: input, shape index: {}]   ;;  %s3636_s2 = inlined_call_operand.hbm [shape: f32[11,64], index: 2, kind: input, shape index: {}]   ;;  %s3637_s3 = inlined_call_operand.hbm [shape: f32[2,8,32], index: 3, kind: output, shape index: {}]  }
   0x1   :  { %10 = vsyncpa [#allocation3 + $0x1], 0 }
   0x2   :  { %11 = vsyncpa [#allocation6], 0 }
   0x3   :  { %12 = vsyncpa [#allocation4], 0 }
   0x4   :  { %14 = vsyncpa [#allocation4 + $0x1], 0  ;;  %s3067_s12 = smov 0   ;;  %s3069_s13 = smov 0  }
   0x5   :  { %s3071_s14 = smov 0   ;;  %s3073_s15 = smov 0  }
   0x6 LB: > { %s3088_s16 = sadd.s32 4294967295, %s3021_s15   ;;  %s2347_s17 = sadd.s32 4294967294, %s3021_s15   ;;  %s3021_s15 = sphi %s3073_s15, %s3657_s15   ;;  %s3017_s14 = sphi %s3071_s14, %s3656_s14   ;;  %s3013_s13 = sphi %s3069_s13, %s3655_s13   ;;  %s3009_s12 = sphi %s3067_s12, %s3654_s12  }
   0x7   : > { %p40_p0 = scmp.ne.s32.totalorder %s3013_s13, %s3009_s12  ;;  %p3638_p1 = scmp.eq.s32.totalorder %s3088_s16, 0 }
   0x8   : > { %p112_p3 = scmp.eq.s32.totalorder %s2347_s17, 1  ;;  %p2348_p5 = scmp.ge.s32.totalorder %s3021_s15, 1 }
   0x9   : > { %p3097_p4 = por %p3638_p1, %p40_p0  ;;  %p119_p7 = scmp.lt.s32.totalorder %s3021_s15, 3 }
   0xa   : > { %p3102_p6 = por %p112_p3, %p40_p0  ;;  %s3023_s21 = smov [#allocation5]  }
   0xb   : > { %s3641_s18 = scalar_select %p3097_p4, 1, 0 }
   0xc   : > { %s3642_s19 = scalar_select %p3102_p6, 1, 0 }
   0xd   : > { %p3107_p8 = pnand %p2348_p5, %p119_p7  ;;  %s131_s22 = sshll.u32 %s3023_s21, 4  ;;  %s3111_s22 = int_to_ptr.vmem [resolvable:$true] %s131_s22 }
   0xe   : > { %s3024_s24 = smov [#allocation7]   ;;  %s2865_s28 = scalar_lea.hbm %s3635_s1, 1792 }
   0xf   : > { %p2695_p9 = pneg %p3107_p8  ;;  %s144_s25 = sshll.u32 %s3024_s24, 4  ;;  %s3122_s25 = int_to_ptr.vmem [resolvable:$true] %s144_s25 }
  0x10   : > { %p2866_p12 = scmp.ne.s32.totalorder %s3635_s1, %s2865_s28  ;;  %p2872_p5 = scmp.lt.u32.totalorder %s2865_s28, %s3635_s1 }
  0x11   : > { %p3118_p11 = pnand %p2695_p9, %p3638_p1 }
  0x13   : > { %p2867_p13 = pneg %p3118_p11 }
  0x15   : > { %p2868_p0 = pnand %p2867_p13, %p2866_p12 }
  0x17   : > { %p2869_p3 = pneg %p2868_p0 }
  0x19   : > { %p2874_p7 = pnand %p2872_p5, %p2869_p3 }
  0x1b   : > { %2877 = shalt.err (!%p2874_p7)
}
  0x1c   : > { %s2878_s6 = scalar_lea.vmem %s3111_s22, 1792  ;;  %p2886_p2 = scmp.lt.s32.totalorder %s3111_s22, %s3111_s22 }
  0x1d   : > { %p2879_p9 = scmp.ne.s32.totalorder %s3111_s22, %s2878_s6  ;;  %p2887_p12 = scmp.lt.s32.totalorder %s2878_s6, %s2878_s6 }
  0x1f   : > { %p2881_p10 = pnand %p2879_p9, %p2867_p13  ;;  %p2888_p0 = por %p2887_p12, %p2886_p2 }
  0x21   : > { %p2882_p1 = pneg %p2881_p10 }
  0x23   : > { %p2889_p6 = pnand %p2888_p0, %p2882_p1 }
  0x25   : > { %2892 = shalt.err (!%p2889_p6)
}
  0x26   : > { %s3025_s7 = smov 64   ;;  %s3026_s8 = smov 4  }
  0x27   : > { %2698 = dma.hbm_to_vmem [thread:$0]  (!%p3118_p11), %s3635_s1, 1792, %s3111_s22, [#allocation6], %s3025_s7, %s3025_s7, %s3026_s8  }
  0x28   : > { %s2893_s21 = scalar_lea.hbm %s3636_s2, 256 }
  0x29   : > { %p2894_p2 = scmp.ne.s32.totalorder %s3636_s2, %s2893_s21  ;;  %p2900_p10 = scmp.lt.u32.totalorder %s2893_s21, %s3636_s2 }
  0x2b   : > { %p2896_p1 = pnand %p2894_p2, %p2867_p13 }
  0x2d   : > { %p2897_p6 = pneg %p2896_p1 }
  0x2f   : > { %p2902_p3 = pnand %p2900_p10, %p2897_p6 }
  0x31   : > { %2905 = shalt.err (!%p2902_p3)
}
  0x32   : > { %s2906_s22 = scalar_lea.vmem %s3122_s25, 256  ;;  %p2914_p12 = scmp.lt.s32.totalorder %s3122_s25, %s3122_s25 }
  0x33   : > { %p2907_p5 = scmp.ne.s32.totalorder %s3122_s25, %s2906_s22  ;;  %p2915_p0 = scmp.lt.s32.totalorder %s2906_s22, %s2906_s22 }
  0x35   : > { %p2909_p7 = pnand %p2907_p5, %p2867_p13  ;;  %p2916_p2 = por %p2915_p0, %p2914_p12 }
  0x37   : > { %p2910_p9 = pneg %p2909_p7 }
  0x39   : > { %p2917_p1 = pnand %p2916_p2, %p2910_p9 }
  0x3b   : > { %2920 = shalt.err (!%p2917_p1)
}
  0x3c   : > { %s3027_s29 = smov 128   ;;  %s3028_s30 = smov 8  }
  0x3d   : > { %2701 = dma.hbm_to_vmem [thread:$0]  (!%p3118_p11), %s3636_s2, 256, %s3122_s25, [#allocation6], %s3027_s29, %s3027_s29, %s3028_s30  }
  0x3e   : > { %s3180_s6 = sadd.s32 1, %s3021_s15   ;;  %s27_s8 = sadd.s32 1, %s3017_s14 }
  0x3f   : > { %s24_s7 = ssub.s32 %s3021_s15, %s3180_s6  ;;  %p34_p6 = scmp.ne.s32.totalorder %s3017_s14, %s3013_s13 }
  0x40   : > { %p25_p13 = scmp.eq.s32.totalorder %s24_s7, 0  ;;  %p35_p10 = scmp.eq.s32.totalorder %s3021_s15, 0 }
  0x41   : > { %p3645_p5 = scmp.eq.s32.totalorder %s3088_s16, 1  ;;  %p2712_p9 = scmp.lt.s32.totalorder %s3021_s15, 2 }
  0x42   : > { %s3189_s9 = scalar_select %p25_p13, %s3017_s14, %s27_s8  }
  0x43   : > { %p36_p3 = por %p35_p10, %p34_p6  ;;  %p3193_p7 = por %p3645_p5, %p34_p6 }
  0x44   : > { %s158_s10 = sand.u32 1, %s3017_s14   ;;  %s2681_s25 = smul.u32 384, %s3021_s15 }
  0x45   : > { %s3646_s23 = scalar_select %p3193_p7, 1, 0 }
  0x46   : > { %s2680_s11 = smul.u32 24, %s158_s10  ;;  %p3200_p11 = pnand %p2712_p9, %p36_p3 }
  0x47   : > { %s3207_s26 = scalar_lea.hbm %s3634_s0, %s2681_s25  ;;  %s3211_s22 = scalar_lea.sflag [#allocation3], %s158_s10 }
  0x48   : > { %s162_s27 = scalar_lea.vmem [#allocation2], %s2680_s11  ;;  %s2921_s4 = scalar_lea.hbm %s3207_s26, 384 }
  0x49   : > { %s169_s28 = sshll.u32 %s162_s27, 4  ;;  %p2922_p12 = scmp.ne.s32.totalorder %s3207_s26, %s2921_s4  ;;  %s3209_s28 = int_to_ptr.vmem [resolvable:$true] %s169_s28 }
  0x4a   : > { %p2923_p0 = pneg %p3200_p11  ;;  %s2926_s8 = scalar_lea.hbm %s3634_s0, 768 }
  0x4b   : > { %p2927_p13 = scmp.lt.u32.totalorder %s3207_s26, %s3634_s0  ;;  %p2928_p6 = scmp.lt.u32.totalorder %s2926_s8, %s2921_s4 }
  0x4c   : > { %p2924_p2 = pnand %p2923_p0, %p2922_p12  ;;  %p2930_p3 = scmp.lt.u32.totalorder %s2921_s4, %s3207_s26 }
  0x4d   : > { %p2929_p10 = por %p2928_p6, %p2927_p13 }
  0x4e   : > { %p2925_p1 = pneg %p2924_p2 }
  0x4f   : > { %p2931_p5 = por %p2930_p3, %p2929_p10 }
  0x51   : > { %p2932_p9 = pnand %p2931_p5, %p2925_p1 }
  0x53   : > { %2935 = shalt.err (!%p2932_p9)
}
  0x54   : > { %s2936_s10 = scalar_lea.vmem %s3209_s28, 384  ;;  %s3029_s11 = smov [#allocation2]  }
  0x55   : > { %p2937_p12 = scmp.ne.s32.totalorder %s3209_s28, %s2936_s10  ;;  %s2941_s24 = sshll.u32 %s3029_s11, 4  ;;  %s2942_s24 = int_to_ptr.vmem [resolvable:$false] %s2941_s24 }
  0x56   : > { %s2943_s27 = scalar_lea.vmem %s2942_s24, 768  ;;  %p2944_p4 = scmp.lt.s32.totalorder %s3209_s28, %s2942_s24 }
  0x57   : > { %p2939_p2 = pnand %p2937_p12, %p2923_p0  ;;  %p2945_p13 = scmp.lt.s32.totalorder %s2943_s27, %s2936_s10 }
  0x59   : > { %p2940_p7 = pneg %p2939_p2  ;;  %p2946_p6 = por %p2945_p13, %p2944_p4 }
  0x5b   : > { %p2947_p10 = pnand %p2946_p6, %p2940_p7 }
  0x5d   : > { %2950 = shalt.err (!%p2947_p10)
}
  0x5e   : > { %2705 = dma.hbm_to_vmem [thread:$0]  (!%p3200_p11), %s3207_s26, 384, %s3209_s28, %s3211_s22, %s3027_s29, %s3027_s29, %s3028_s30  }
  0x5f   : > { %181 = sbr.rel (%p3107_p8) target bundleno = 4440 (0x1158), region = 32  ;;  %s3245_s4 = sand.u32 (!%p3107_p8), 1, %s3013_s13  }
  0x60   : > { %s2682_s5 = smul.u32 (!%p3107_p8), 24, %s3245_s4  ;;  %s184_s7 = scalar_lea.sflag (!%p3107_p8), [#allocation3], %s3245_s4 }
  0x61   : > { %p3648_p4 = scmp.ne.s32.totalorder (!%p3107_p8), %s3641_s18, 0 }
  0x62   : > { %s3249_s8 = scalar_lea.vmem (!%p3107_p8), [#allocation2], %s2682_s5 }
  0x66   : > { %2996 = dma.done.wait (%p3648_p4), %s184_s7, 384  }
  0x67   : > { %2998 = vsyncadd (%p3648_p4), %s184_s7, 4294966912  ;;  %p3649_p7 = scmp.eq.s32.totalorder %s3088_s16, 0 }
  0x69   : > { %3000 = dma.done.wait (%p3649_p7), [#allocation6], 2048   ;;  %p3650_p8 = pmov %p3649_p7 }
  0x6a   : > { %v2785_v0 = vld [vmem:[#allocation5] sm:$0xff]   ;;  %v2786_v1 = vld [vmem:[#allocation5 + $0x8] sm:$0xff]   ;;  %v220_v3 = vld [vmem:[%s3249_s8 + $0x8] sm:$0xff]  ;;  %vm245_vm0 = vcmask 261120   ;;  %vm316_vm1 = vcmask 130048   ;;  %v3030_v18 = vmov 0.0  }
  0x6b   : > { %3002 = vsyncadd (%p3650_p8), [#allocation6], 4294965248  ;;  %2490 = vmatprep.subr.bf16.mxu0 %v2785_v0  ;;  %v219_v2 = vld [vmem:[%s3249_s8] sm:$0xff]  ;;  %v221_v4 = vld [vmem:[%s3249_s8 + $0x10] sm:$0xff]  ;;  %vm3031_vm2 = vmmov 0   ;;  %s3032_s18 = smov 112  }
  0x6c   : > { %2491 = vmatpush3.bf16.msra.mxu0 %v2785_v0  ;;  %v226_v5 = vpack.c.bf16 %v220_v3, %v219_v2  ;;  %v227_v6 = vpack.c.bf16 %v221_v4, %v221_v4  ;;  %v2787_v7 = vld [vmem:[#allocation5 + $0x10] sm:$0xff]   ;;  %s3033_s20 = smov 96   ;;  %vm377_vm3 = vcmask 31744   ;;  %vm564_vm4 = vcmask 1043456   ;;  %s3034_s29 = smov 108  }
  0x6d   : > { %2492 = vmatprep.subr.bf16.mxu0 %v2786_v1  ;;  %2498 = vmatprep.subr.bf16.mxu1 %v2787_v7  ;;  %v2357_v9 = vld [vmem:[#allocation7] ss:$0 sm:$0xff]  ;;  %v2362_v19 = vld [vmem:[#allocation7 + $0x1] ss:$0 sm:$0xff]  ;;  %vm525_vm5 = vcmask 64512   ;;  %s3035_s30 = smov 124  }
  0x6e   : > { %2494 = vmatprep.mubr.msk.bf16.mxu0 %vm245_vm0, %v226_v5  ;;  %2499 = vmatpush3.bf16.msra.mxu1 %v2787_v7  ;;  %s3036_s17 = smov 92   ;;  %s3037_s26 = smov 104   ;;  %vm1748_vm6 = vcmask 97280  }
  0x6f   : > { %2504 = vmatprep.subr.bf16.mxu1 %v3030_v18  ;;  %s3038_s28 = smov 120   ;;  %s3039_s22 = smov 88  }
  0x70   : > { %2493 = vmatpush3.bf16.msra.mxu0 %v2786_v1  ;;  %s3040_s25 = smov 100   ;;  %s3041_s21 = smov 116  }
  0x71   : > { %2510 = vmatprep.subr.bf16.mxu0 %v3030_v18  ;;  %s3042_s10 = smov 84   ;;  %s3043_s11 = smov 4  }
  0x72   : > { %s3044_s24 = smov 8   ;;  %s3045_s27 = smov 12  }
  0x73   : > { %2495 = vmatmul.mubr.msk.bf16.vlgmr.msra.gmra.mrb[0].mxu0 %vm245_vm0, %v227_v6  ;;  %s2356_s5 = sshll.u32 %s3245_s4, 3  ;;  %s2417_s7 = sshll.u32 %s3088_s16, 7 }
  0x74   : > { %2512 = vmatprep.mubr.msk.bf16.mxu0 %vm3031_vm2, %v3030_v18  ;;  %p3651_p0 = scmp.ne.s32.totalorder %s3646_s23, 0  ;;  %s3046_s16 = smov [#allocation8]  }
 0x146   : > { %v2496_v8 = vpop.f32.mrb[0].mxu0 }
 0x147   : > { %v286_v10 = vpop.f32.mrb[1].mxu0  ;;  %v3264_v12 = vadd.f32 %v2496_v8, %v2357_v9 }
 0x148   : > { %v2497_v11 = vpop.f32.mrb[2].mxu0  ;;  %v3266_v14 = vadd.f32 %v2357_v9, %v286_v10 }
 0x149   : > { %v289_v13 = vpop.f32.mrb[3].mxu0  ;;  %v304_v17 = vpack.c.bf16 %v3264_v12, %v3264_v12 }
 0x14a   : > { %v3268_v15 = vadd.f32 %v2357_v9, %v289_v13 }
 0x14c   : > { %v303_v16 = vpack.c.bf16 %v3268_v15, %v3266_v14 }
 0x14e   : > { %2500 = vmatprep.mubr.msk.bf16.mxu1 %vm316_vm1, %v303_v16 }
 0x14f   : > { %2501 = vmatmul.mubr.msk.bf16.vlgmr.msra.gmra.mrb[0].mxu1 %vm316_vm1, %v304_v17 }
 0x150   : > { %2506 = vmatprep.mubr.msk.bf16.mxu1 %vm3031_vm2, %v3030_v18 }
 0x222   : > { %v2502_v20 = vpop.f32.mrb[0].mxu1 }
 0x223   : > { %v366_v21 = vadd.f32 %v2502_v20, %v2362_v19  ;;  %v357_v22 = vpop.f32.mrb[1].mxu1 }
 0x224   : > { %v358_v23 = vadd.f32 %v2362_v19, %v357_v22  ;;  %v2503_v24 = vpop.f32.mrb[2].mxu1 }
 0x225   : > { %v3282_v25 = vpack.c.bf16 %v366_v21, %v366_v21  ;;  %v360_v26 = vpop.f32.mrb[3].mxu1 }
 0x226   : > { %v3284_v27 = vpack.c.bf16 %v358_v23, %v358_v23  ;;  %v361_v28 = vadd.f32 %v2362_v19, %v360_v26 }
 0x227   : > { %474 = vrot.lane.b32.xlu1 %v3282_v25, %s3032_s18 }
 0x228   : > { %375 = vrot.lane.b32.xlu0 %v3284_v27, %s3032_s18  ;;  %v3288_v29 = vpack.c.bf16 %v361_v28, %v361_v28 }
 0x22b   : > { %656 = vrot.lane.b32.xlu1 %v3282_v25, %s3033_s20 }
 0x22c   : > { %425 = vrot.lane.b32.xlu0 %v3288_v29, %s3032_s18  ;;  %s217_s18 = scalar_lea.vmem [#allocation8], %s2356_s5 }
 0x22f   : > { %608 = vrot.lane.b32.xlu1 %v3288_v29, %s3033_s20 }
 0x230   : > { %559 = vrot.lane.b32.xlu0 %v3284_v27, %s3033_s20 }
 0x299   : > { %v475_v32 = vpop.permute.xlu1 %474 }
 0x29a   : > { %v376_v30 = vpop.permute.xlu0 %375  ;;  %v480_v36 = vsel %vm377_vm3, %v475_v32, 0 }
 0x29b   : > { %v382_v31 = vsel %vm377_vm3, %v376_v30, 0 }
 0x29c   : > { %2505 = vmatpush3.bf16.xpose.msra.mxu1 %v382_v31 }
 0x29d   : > { %2516 = vmatprep.subr.bf16.mxu1 %v3030_v18  ;;  %v3301_v35 = vpop.permute.xlu1 %656 }
 0x29e   : > { %v426_v33 = vpop.permute.xlu0 %425  ;;  %v662_v8 = vsel %vm564_vm4, %v3301_v35, 0 }
 0x29f   : > { %v431_v34 = vsel %vm377_vm3, %v426_v33, 0 }
 0x2a0   : > { %2511 = vmatpush3.bf16.xpose.msra.mxu0 %v431_v34 }
 0x2a1   : > { %2522 = vmatprep.subr.bf16.mxu0 %v3030_v18  ;;  %v609_v39 = vpop.permute.xlu1 %608 }
 0x2a2   : > { %v560_v37 = vpop.permute.xlu0 %559  ;;  %v614_v40 = vsel %vm564_vm4, %v609_v39, 0 }
 0x2a3   : > { %2507 = vmatmul.mubr.msk.bf16.vlgmr.msra.gmra.mrb[4].mxu1 %vm377_vm3, %v3284_v27  ;;  %v566_v38 = vsel %vm564_vm4, %v560_v37, 0 }
 0x2a4   : > { %2517 = vmatpush3.bf16.xpose.msra.mxu1 %v480_v36  ;;  %2518 = vmatprep.mubr.msk.bf16.mxu1 %vm3031_vm2, %v3030_v18 }
 0x2a5   : > { %2528 = vmatprep.subr.bf16.mxu1 %v3030_v18 }
 0x2a7   : > { %2513 = vmatmul.mubr.msk.bf16.vlgmr.msra.gmra.mrb[4].mxu0 %vm377_vm3, %v3288_v29 }
 0x2a8   : > { %2523 = vmatpush3.bf16.msra.mxu0 %v566_v38  ;;  %2524 = vmatprep.mubr.msk.bf16.mxu0 %vm3031_vm2, %v3030_v18 }
 0x2a9   : > { %2534 = vmatprep.subr.bf16.mxu0 %v3030_v18 }
 0x2ab   : > { %2519 = vmatmul.mubr.msk.bf16.vlgmr.msra.gmra.mrb[8].mxu1 %vm377_vm3, %v3282_v25 }
 0x2ac   : > { %2529 = vmatpush3.bf16.msra.mxu1 %v614_v40  ;;  %2530 = vmatprep.mubr.msk.bf16.mxu1 %vm3031_vm2, %v3030_v18 }
 0x2ad   : > { %2540 = vmatprep.subr.bf16.mxu1 %v3030_v18 }
 0x376   : > { %v418_v41 = vpop.f32.mrb[4].mxu1 }
 0x377   : > { %v522_v42 = vmul.f32 0.5, %v418_v41  ;;  %v2508_v43 = vpop.f32.mrb[5].mxu1 }
 0x378   : > { %v421_v44 = vpop.f32.mrb[6].mxu1 }
 0x379   : > { %v2509_v45 = vpop.f32.mrb[7].mxu1  ;;  %v526_v46 = vsel %vm525_vm5, %v522_v42, -inf }
 0x37a   : > { %527 = vmax.xlane.f32.xlu1 %v526_v46  ;;  %v467_v47 = vpop.f32.mrb[4].mxu0 }
 0x37b   : > { %v523_v48 = vmul.f32 0.5, %v467_v47  ;;  %v2514_v49 = vpop.f32.mrb[5].mxu0 }
 0x37c   : > { %v470_v50 = vpop.f32.mrb[6].mxu0 }
 0x37d   : > { %v2515_v51 = vpop.f32.mrb[7].mxu0  ;;  %v529_v52 = vsel %vm525_vm5, %v523_v48, -inf }
 0x37e   : > { %v516_v53 = vpop.f32.mrb[8].mxu1  ;;  %530 = vmax.xlane.f32.xlu0 %v529_v52 }
 0x37f   : > { %v524_v54 = vmul.f32 0.5, %v516_v53  ;;  %v2520_v55 = vpop.f32.mrb[9].mxu1 }
 0x380   : > { %v519_v56 = vpop.f32.mrb[10].mxu1 }
 0x381   : > { %v2521_v57 = vpop.f32.mrb[11].mxu1  ;;  %v532_v58 = vsel %vm525_vm5, %v524_v54, -inf }
 0x382   : > { %533 = vmax.xlane.f32.xlu0 %v532_v58 }
 0x38b   : > { %709 = vrot.lane.b32.xlu1 %v3284_v27, %s3034_s29 }
 0x38f   : > { %707 = vrot.lane.b32.xlu1 %v3284_v27, %s3035_s30 }
 0x393   : > { %757 = vrot.lane.b32.xlu1 %v3288_v29, %s3035_s30 }
 0x397   : > { %893 = vrot.lane.b32.xlu1 %v3284_v27, %s3036_s17 }
 0x398   : > { %759 = vrot.lane.b32.xlu0 %v3288_v29, %s3034_s29 }
 0x39c   : > { %809 = vrot.lane.b32.xlu0 %v3282_v25, %s3034_s29  ;;  %s2258_s29 = sshll.u32 %s217_s18, 4  ;;  %s3591_s29 = int_to_ptr.vmem [resolvable:$true] %s2258_s29 }
 0x3a0   : > { %807 = vrot.lane.b32.xlu0 %v3282_v25, %s3035_s30 }
 0x3a4   : > { %941 = vrot.lane.b32.xlu0 %v3288_v29, %s3036_s17 }
 0x407   : > { %v528_v59 = vpop.xlane.xlu1 %527 }
 0x408   : > { %v535_v60 = vsub.f32 %v522_v42, %v528_v59 }
 0x40a   : > { %v538_v61 = vmul.f32 1.442695, %v535_v60 }
 0x40b   : > { %v531_v62 = vpop.xlane.xlu0 %530  ;;  %v710_v4 = vpop.permute.xlu1 %709 }
 0x40c   : > { %2794 = vpow2.f32 %v538_v61  ;;  %v536_v63 = vsub.f32 %v523_v48, %v531_v62  ;;  %v715_v13 = vsel %vm377_vm3, %v710_v4, 0 }
 0x40e   : > { %v540_v0 = vmul.f32 1.442695, %v536_v63 }
 0x40f   : > { %v534_v1 = vpop.xlane.xlu0 %533  ;;  %v708_v10 = vpop.permute.xlu1 %707 }
 0x410   : > { %2796 = vpow2.f32 %v540_v0  ;;  %v537_v2 = vsub.f32 %v524_v54, %v534_v1 }
 0x412   : > { %v542_v3 = vmul.f32 1.442695, %v537_v2 }
 0x413   : > { %v760_v7 = vpop.permute.xlu0 %759  ;;  %v758_v20 = vpop.permute.xlu1 %757 }
 0x414   : > { %2798 = vpow2.f32 %v542_v3  ;;  %v765_v21 = vsel %vm377_vm3, %v760_v7, 0 }
 0x416   : > { %v3334_v5 = vpop.eup %2794 }
 0x417   : > { %v556_v6 = vpack.c.bf16 %v3334_v5, %v3334_v5  ;;  %v810_v17 = vpop.permute.xlu0 %809  ;;  %v894_v24 = vpop.permute.xlu1 %893 }
 0x418   : > { %v815_v23 = vsel %vm377_vm3, %v810_v17, 0  ;;  %v899_v26 = vsel %vm564_vm4, %v894_v24, 0 }
 0x419   : > { %2525 = vmatmul.mubr.msk.bf16.vlgmr.msra.gmra.mrb[8].mxu0 %vm525_vm5, %v556_v6 }
 0x41a   : > { %v3341_v9 = vpop.eup %2796  ;;  %2535 = vmatpush3.bf16.msra.mxu0 %v662_v8  ;;  %2536 = vmatprep.mubr.msk.bf16.mxu0 %vm3031_vm2, %v3030_v18 }
 0x41b   : > { %v557_v11 = vpack.c.bf16 %v3341_v9, %v3341_v9  ;;  %2546 = vmatprep.subr.bf16.mxu0 %v3030_v18  ;;  %v808_v22 = vpop.permute.xlu0 %807 }
 0x41d   : > { %2531 = vmatmul.mubr.msk.bf16.vlgmr.msra.gmra.mrb[12].mxu1 %vm525_vm5, %v557_v11 }
 0x41e   : > { %v3350_v16 = vpop.eup %2798  ;;  %2541 = vmatpush3.bf16.xpose.msra.mxu1 %v715_v13  ;;  %2542 = vmatprep.mubr.msk.bf16.mxu1 %vm3031_vm2, %v3030_v18 }
 0x41f   : > { %v558_v19 = vpack.c.bf16 %v3350_v16, %v3350_v16  ;;  %2552 = vmatprep.subr.bf16.mxu1 %v3030_v18  ;;  %v942_v28 = vpop.permute.xlu0 %941 }
 0x420   : > { %v947_v30 = vsel %vm564_vm4, %v942_v28, 0 }
 0x421   : > { %2537 = vmatmul.mubr.msk.bf16.vlgmr.msra.gmra.mrb[12].mxu0 %vm525_vm5, %v558_v19 }
 0x422   : > { %2548 = vmatprep.mubr.msk.bf16.mxu0 %vm3031_vm2, %v3030_v18 }
 0x423   : > { %2547 = vmatpush3.bf16.xpose.msra.mxu0 %v765_v21 }
 0x424   : > { %2558 = vmatprep.subr.bf16.mxu0 %v3030_v18 }
 0x425   : > { %2543 = vmatmul.mubr.msk.bf16.vlgmr.msra.gmra.mrb[16].mxu1 %vm377_vm3, %v708_v10 }
 0x426   : > { %2553 = vmatpush3.bf16.xpose.msra.mxu1 %v815_v23  ;;  %2554 = vmatprep.mubr.msk.bf16.mxu1 %vm3031_vm2, %v3030_v18 }
 0x427   : > { %2564 = vmatprep.subr.bf16.mxu1 %v3030_v18 }
 0x42a   : > { %2549 = vmatmul.mubr.msk.bf16.vlgmr.msra.gmra.mrb[16].mxu0 %vm377_vm3, %v758_v20 }
 0x42b   : > { %2559 = vmatpush3.bf16.msra.mxu0 %v899_v26  ;;  %2560 = vmatprep.mubr.msk.bf16.mxu0 %vm3031_vm2, %v3030_v18 }
 0x42c   : > { %2570 = vmatprep.subr.bf16.mxu0 %v3030_v18 }
 0x42d   : > { %2555 = vmatmul.mubr.msk.bf16.vlgmr.msra.gmra.mrb[20].mxu1 %vm377_vm3, %v808_v22 }
 0x42e   : > { %2565 = vmatpush3.bf16.msra.mxu1 %v947_v30  ;;  %2566 = vmatprep.mubr.msk.bf16.mxu1 %vm3031_vm2, %v3030_v18 }
 0x42f   : > { %2576 = vmatprep.subr.bf16.mxu1 %v3030_v18 }
 0x4ec   : > { %v3377_v31 = vpop.f32.mrb[8].mxu0 }
 0x4ed   : > { %v2526_v32 = vpop.f32.mrb[9].mxu0 }
 0x4ee   : > { %v605_v33 = vpop.f32.mrb[10].mxu0 }
 0x4ef   : > { %v2527_v34 = vpop.f32.mrb[11].mxu0 }
 0x4f0   : > { %v3379_v35 = vpop.f32.mrb[12].mxu1 }
 0x4f1   : > { %v2532_v36 = vpop.f32.mrb[13].mxu1 }
 0x4f2   : > { %v653_v37 = vpop.f32.mrb[14].mxu1 }
 0x4f3   : > { %v2533_v38 = vpop.f32.mrb[15].mxu1 }
 0x4f4   : > { %v3381_v39 = vpop.f32.mrb[12].mxu0 }
 0x4f5   : > { %v2538_v40 = vpop.f32.mrb[13].mxu0 }
 0x4f6   : > { %v701_v41 = vpop.f32.mrb[14].mxu0 }
 0x4f7   : > { %v2539_v42 = vpop.f32.mrb[15].mxu0 }
 0x4f8   : > { %v751_v43 = vpop.f32.mrb[16].mxu1 }
 0x4f9   : > { %v857_v44 = vmul.f32 0.5, %v751_v43  ;;  %v2544_v45 = vpop.f32.mrb[17].mxu1 }
 0x4fa   : > { %v754_v46 = vpop.f32.mrb[18].mxu1 }
 0x4fb   : > { %v2545_v47 = vpop.f32.mrb[19].mxu1  ;;  %v860_v48 = vsel %vm525_vm5, %v857_v44, -inf }
 0x4fc   : > { %861 = vmax.xlane.f32.xlu1 %v860_v48 }
 0x4fd   : > { %v801_v49 = vpop.f32.mrb[16].mxu0 }
 0x4fe   : > { %v858_v50 = vmul.f32 0.5, %v801_v49  ;;  %v2550_v51 = vpop.f32.mrb[17].mxu0 }
 0x4ff   : > { %v804_v52 = vpop.f32.mrb[18].mxu0 }
 0x500   : > { %v2551_v53 = vpop.f32.mrb[19].mxu0  ;;  %v863_v54 = vsel %vm525_vm5, %v858_v50, -inf  ;;  %v851_v55 = vpop.f32.mrb[20].mxu1 }
 0x501   : > { %864 = vmax.xlane.f32.xlu0 %v863_v54  ;;  %v859_v56 = vmul.f32 0.5, %v851_v55  ;;  %v2556_v57 = vpop.f32.mrb[21].mxu1 }
 0x502   : > { %v854_v58 = vpop.f32.mrb[22].mxu1 }
 0x503   : > { %v2557_v59 = vpop.f32.mrb[23].mxu1  ;;  %v866_v60 = vsel %vm525_vm5, %v859_v56, -inf }
 0x505   : > { %867 = vmax.xlane.f32.xlu0 %v866_v60 }
 0x50d   : > { %989 = vrot.lane.b32.xlu1 %v3282_v25, %s3036_s17 }
 0x511   : > { %1042 = vrot.lane.b32.xlu1 %v3284_v27, %s3037_s26 }
 0x515   : > { %1040 = vrot.lane.b32.xlu1 %v3284_v27, %s3038_s28 }
 0x519   : > { %1090 = vrot.lane.b32.xlu1 %v3288_v29, %s3038_s28 }
 0x51b   : > { %1092 = vrot.lane.b32.xlu0 %v3288_v29, %s3037_s26 }
 0x51d   : > { %1274 = vrot.lane.b32.xlu1 %v3288_v29, %s3039_s22 }
 0x51f   : > { %1142 = vrot.lane.b32.xlu0 %v3282_v25, %s3037_s26  ;;  %s2951_s26 = scalar_lea.vmem %s3591_s29, 128 }
 0x520   : > { %p2952_p11 = scmp.ne.s32.totalorder %s3591_s29, %s2951_s26 }
 0x521   : > { %1322 = vrot.lane.b32.xlu1 %v3282_v25, %s3039_s22 }
 0x522   : > { %p2953_p1 = pnand %p2952_p11, %p3651_p0 }
 0x523   : > { %1140 = vrot.lane.b32.xlu0 %v3282_v25, %s3038_s28  ;;  %s2955_s28 = sshll.u32 %s3046_s16, 4  ;;  %s2956_s28 = int_to_ptr.vmem [resolvable:$false] %s2955_s28 }
 0x524   : > { %p2954_p3 = pneg %p2953_p1  ;;  %p2958_p5 = scmp.lt.s32.totalorder %s3591_s29, %s2956_s28 }
 0x527   : > { %1226 = vrot.lane.b32.xlu0 %v3284_v27, %s3039_s22  ;;  %s2957_s22 = scalar_lea.vmem %s2956_s28, 256 }
 0x528   : > { %p2959_p9 = scmp.lt.s32.totalorder %s2957_s22, %s2951_s26 }
 0x52a   : > { %p2960_p12 = por %p2959_p9, %p2958_p5 }
 0x52c   : > { %p2961_p2 = pnand %p2960_p12, %p2954_p3 }
 0x589   : > { %v862_v61 = vpop.xlane.xlu1 %861 }
 0x58a   : > { %v869_v62 = vsub.f32 %v857_v44, %v862_v61 }
 0x58c   : > { %v872_v63 = vmul.f32 1.442695, %v869_v62 }
 0x58d   : > { %v990_v6 = vpop.permute.xlu1 %989 }
 0x58e   : > { %2800 = vpow2.f32 %v872_v63  ;;  %v865_v0 = vpop.xlane.xlu0 %864  ;;  %v995_v13 = vsel %vm564_vm4, %v990_v6, 0 }
 0x58f   : > { %v870_v1 = vsub.f32 %v858_v50, %v865_v0 }
 0x591   : > { %v874_v2 = vmul.f32 1.442695, %v870_v1  ;;  %v1043_v17 = vpop.permute.xlu1 %1042 }
 0x592   : > { %v868_v3 = vpop.xlane.xlu0 %867  ;;  %v1048_v22 = vsel %vm377_vm3, %v1043_v17, 0 }
 0x593   : > { %2802 = vpow2.f32 %v874_v2  ;;  %v871_v4 = vsub.f32 %v859_v56, %v868_v3 }
 0x595   : > { %v876_v7 = vmul.f32 1.442695, %v871_v4  ;;  %v1041_v24 = vpop.permute.xlu1 %1040 }
 0x596   : > { %v1093_v8 = vpop.permute.xlu0 %1092 }
 0x597   : > { %2804 = vpow2.f32 %v876_v7  ;;  %v1098_v30 = vsel %vm377_vm3, %v1093_v8, 0 }
 0x598   : > { %v3397_v10 = vpop.eup %2800 }
 0x599   : > { %v890_v11 = vpack.c.bf16 %v3397_v10, %v3397_v10  ;;  %v1091_v32 = vpop.permute.xlu1 %1090 }
 0x59a   : > { %v1143_v20 = vpop.permute.xlu0 %1142 }
 0x59b   : > { %2561 = vmatmul.mubr.msk.bf16.vlgmr.msra.gmra.mrb[20].mxu0 %vm525_vm5, %v890_v11  ;;  %v1148_v33 = vsel %vm377_vm3, %v1143_v20, 0 }
 0x59c   : > { %2571 = vmatpush3.bf16.msra.mxu0 %v995_v13  ;;  %2572 = vmatprep.mubr.msk.bf16.mxu0 %vm3031_vm2, %v3030_v18 }
 0x59d   : > { %v3405_v19 = vpop.eup %2802  ;;  %2582 = vmatprep.subr.bf16.mxu0 %v3030_v18  ;;  %v1275_v37 = vpop.permute.xlu1 %1274 }
 0x59e   : > { %v891_v21 = vpack.c.bf16 %v3405_v19, %v3405_v19  ;;  %v1141_v28 = vpop.permute.xlu0 %1140  ;;  %v1280_v38 = vsel %vm564_vm4, %v1275_v37, 0 }
 0x5a0   : > { %2567 = vmatmul.mubr.msk.bf16.vlgmr.msra.gmra.mrb[24].mxu1 %vm525_vm5, %v891_v21 }
 0x5a1   : > { %v3412_v23 = vpop.eup %2804  ;;  %2577 = vmatpush3.bf16.xpose.msra.mxu1 %v1048_v22  ;;  %2578 = vmatprep.mubr.msk.bf16.mxu1 %vm3031_vm2, %v3030_v18  ;;  %v1323_v7 = vpop.permute.xlu1 %1322 }
 0x5a2   : > { %v892_v26 = vpack.c.bf16 %v3412_v23, %v3412_v23  ;;  %2588 = vmatprep.subr.bf16.mxu1 %v3030_v18  ;;  %v1227_v34 = vpop.permute.xlu0 %1226 }
 0x5a3   : > { %v1232_v36 = vsel %vm564_vm4, %v1227_v34, 0 }
 0x5a4   : > { %2573 = vmatmul.mubr.msk.bf16.vlgmr.msra.gmra.mrb[24].mxu0 %vm525_vm5, %v892_v26 }
 0x5a5   : > { %2583 = vmatpush3.bf16.xpose.msra.mxu0 %v1098_v30  ;;  %2584 = vmatprep.mubr.msk.bf16.mxu0 %vm3031_vm2, %v3030_v18 }
 0x5a6   : > { %2594 = vmatprep.subr.bf16.mxu0 %v3030_v18 }
 0x5a8   : > { %2579 = vmatmul.mubr.msk.bf16.vlgmr.msra.gmra.mrb[28].mxu1 %vm377_vm3, %v1041_v24 }
 0x5a9   : > { %2589 = vmatpush3.bf16.xpose.msra.mxu1 %v1148_v33  ;;  %2590 = vmatprep.mubr.msk.bf16.mxu1 %vm3031_vm2, %v3030_v18 }
 0x5aa   : > { %2600 = vmatprep.subr.bf16.mxu1 %v3030_v18 }
 0x5ac   : > { %2585 = vmatmul.mubr.msk.bf16.vlgmr.msra.gmra.mrb[28].mxu0 %vm377_vm3, %v1091_v32  ;;  %v1328_v32 = vsel %vm564_vm4, %v1323_v7, 0 }
 0x5ad   : > { %2595 = vmatpush3.bf16.msra.mxu0 %v1232_v36  ;;  %2596 = vmatprep.mubr.msk.bf16.mxu0 %vm3031_vm2, %v3030_v18 }
 0x5ae   : > { %2606 = vmatprep.subr.bf16.mxu0 %v3030_v18 }
 0x5b0   : > { %2591 = vmatmul.mubr.msk.bf16.vlgmr.msra.gmra.mrb[32].mxu1 %vm377_vm3, %v1141_v28 }
 0x5b1   : > { %2601 = vmatpush3.bf16.msra.mxu1 %v1280_v38  ;;  %2602 = vmatprep.mubr.msk.bf16.mxu1 %vm3031_vm2, %v3030_v18 }
 0x5b2   : > { %2612 = vmatprep.subr.bf16.mxu1 %v3030_v18 }
 0x66e   : > { %v3439_v40 = vpop.f32.mrb[20].mxu0 }
 0x66f   : > { %v2562_v41 = vpop.f32.mrb[21].mxu0 }
 0x670   : > { %v938_v42 = vpop.f32.mrb[22].mxu0 }
 0x671   : > { %v2563_v43 = vpop.f32.mrb[23].mxu0 }
 0x673   : > { %v3441_v44 = vpop.f32.mrb[24].mxu1 }
 0x674   : > { %v2568_v45 = vpop.f32.mrb[25].mxu1 }
 0x675   : > { %v986_v46 = vpop.f32.mrb[26].mxu1 }
 0x676   : > { %v2569_v47 = vpop.f32.mrb[27].mxu1 }
 0x677   : > { %v3443_v48 = vpop.f32.mrb[24].mxu0 }
 0x678   : > { %v2574_v49 = vpop.f32.mrb[25].mxu0 }
 0x679   : > { %v1034_v50 = vpop.f32.mrb[26].mxu0 }
 0x67a   : > { %v2575_v51 = vpop.f32.mrb[27].mxu0 }
 0x67b   : > { %v1084_v52 = vpop.f32.mrb[28].mxu1 }
 0x67c   : > { %v1190_v53 = vmul.f32 0.5, %v1084_v52  ;;  %v2580_v54 = vpop.f32.mrb[29].mxu1 }
 0x67d   : > { %v1087_v55 = vpop.f32.mrb[30].mxu1 }
 0x67e   : > { %v2581_v56 = vpop.f32.mrb[31].mxu1  ;;  %v1193_v57 = vsel %vm525_vm5, %v1190_v53, -inf }
 0x67f   : > { %1194 = vmax.xlane.f32.xlu1 %v1193_v57  ;;  %v1134_v58 = vpop.f32.mrb[28].mxu0 }
 0x680   : > { %v1191_v59 = vmul.f32 0.5, %v1134_v58  ;;  %v2586_v60 = vpop.f32.mrb[29].mxu0 }
 0x681   : > { %v1137_v61 = vpop.f32.mrb[30].mxu0 }
 0x682   : > { %v2587_v62 = vpop.f32.mrb[31].mxu0  ;;  %v1196_v63 = vsel %vm525_vm5, %v1191_v59, -inf }
 0x683   : > { %1197 = vmax.xlane.f32.xlu0 %v1196_v63  ;;  %v1184_v0 = vpop.f32.mrb[32].mxu1 }
 0x684   : > { %v1192_v1 = vmul.f32 0.5, %v1184_v0  ;;  %v2592_v2 = vpop.f32.mrb[33].mxu1 }
 0x685   : > { %v1187_v3 = vpop.f32.mrb[34].mxu1 }
 0x686   : > { %v2593_v4 = vpop.f32.mrb[35].mxu1  ;;  %v1199_v6 = vsel %vm525_vm5, %v1192_v1, -inf }
 0x687   : > { %1200 = vmax.xlane.f32.xlu0 %v1199_v6 }
 0x690   : > { %1375 = vrot.lane.b32.xlu1 %v3284_v27, %s3040_s25 }
 0x694   : > { %1373 = vrot.lane.b32.xlu1 %v3284_v27, %s3041_s21 }
 0x698   : > { %1423 = vrot.lane.b32.xlu1 %v3288_v29, %s3041_s21 }
 0x69c   : > { %1559 = vrot.lane.b32.xlu1 %v3284_v27, %s3042_s10 }
 0x69d   : > { %1425 = vrot.lane.b32.xlu0 %v3288_v29, %s3040_s25 }
 0x6a1   : > { %1475 = vrot.lane.b32.xlu0 %v3282_v25, %s3040_s25 }
 0x6a5   : > { %1473 = vrot.lane.b32.xlu0 %v3282_v25, %s3041_s21 }
 0x70c   : > { %v1195_v8 = vpop.xlane.xlu1 %1194 }
 0x70d   : > { %v1202_v11 = vsub.f32 %v1190_v53, %v1195_v8 }
 0x70f   : > { %v1205_v13 = vmul.f32 1.442695, %v1202_v11 }
 0x710   : > { %v1198_v17 = vpop.xlane.xlu0 %1197  ;;  %v1376_v27 = vpop.permute.xlu1 %1375 }
 0x711   : > { %2806 = vpow2.f32 %v1205_v13  ;;  %v1203_v20 = vsub.f32 %v1191_v59, %v1198_v17  ;;  %v1381_v38 = vsel %vm377_vm3, %v1376_v27, 0 }
 0x713   : > { %v1207_v21 = vmul.f32 1.442695, %v1203_v20 }
 0x714   : > { %v1201_v22 = vpop.xlane.xlu0 %1200  ;;  %v1374_v34 = vpop.permute.xlu1 %1373 }
 0x715   : > { %2808 = vpow2.f32 %v1207_v21  ;;  %v1204_v24 = vsub.f32 %v1192_v1, %v1201_v22 }
 0x717   : > { %v1209_v26 = vmul.f32 1.442695, %v1204_v24 }
 0x718   : > { %v1426_v37 = vpop.permute.xlu0 %1425  ;;  %v1424_v43 = vpop.permute.xlu1 %1423 }
 0x719   : > { %2810 = vpow2.f32 %v1209_v26  ;;  %v1431_v45 = vsel %vm377_vm3, %v1426_v37, 0  ;;  %v881_v37 = vsel %vm525_vm5, %v3405_v19, 0.0 }
 0x71b   : > { %v3456_v28 = vpop.eup %2806 }
 0x71c   : > { %v1223_v30 = vpack.c.bf16 %v3456_v28, %v3456_v28  ;;  %v1476_v46 = vpop.permute.xlu0 %1475  ;;  %v1560_v49 = vpop.permute.xlu1 %1559 }
 0x71d   : > { %v1481_v47 = vsel %vm377_vm3, %v1476_v46, 0  ;;  %v1565_v50 = vsel %vm564_vm4, %v1560_v49, 0 }
 0x71e   : > { %2597 = vmatmul.mubr.msk.bf16.vlgmr.msra.gmra.mrb[32].mxu0 %vm525_vm5, %v1223_v30 }
 0x71f   : > { %v3462_v33 = vpop.eup %2808  ;;  %2607 = vmatpush3.bf16.msra.mxu0 %v1328_v32  ;;  %2608 = vmatprep.mubr.msk.bf16.mxu0 %vm3031_vm2, %v3030_v18  ;;  %v878_v32 = vsel %vm525_vm5, %v3397_v10, 0.0 }
 0x720   : > { %v1224_v36 = vpack.c.bf16 %v3462_v33, %v3462_v33  ;;  %2618 = vmatprep.subr.bf16.mxu0 %v3030_v18  ;;  %v1474_v51 = vpop.permute.xlu0 %1473 }
 0x722   : > { %2603 = vmatmul.mubr.msk.bf16.vlgmr.msra.gmra.mrb[36].mxu1 %vm525_vm5, %v1224_v36 }
 0x723   : > { %v3471_v41 = vpop.eup %2810  ;;  %2613 = vmatpush3.bf16.xpose.msra.mxu1 %v1381_v38  ;;  %2614 = vmatprep.mubr.msk.bf16.mxu1 %vm3031_vm2, %v3030_v18 }
 0x724   : > { %v1225_v42 = vpack.c.bf16 %v3471_v41, %v3471_v41  ;;  %2624 = vmatprep.subr.bf16.mxu1 %v3030_v18  ;;  %v1217_v36 = vsel %vm525_vm5, %v3471_v41, 0.0 }
 0x726   : > { %2609 = vmatmul.mubr.msk.bf16.vlgmr.msra.gmra.mrb[36].mxu0 %vm525_vm5, %v1225_v42 }
 0x727   : > { %2620 = vmatprep.mubr.msk.bf16.mxu0 %vm3031_vm2, %v3030_v18 }
 0x728   : > { %2619 = vmatpush3.bf16.xpose.msra.mxu0 %v1431_v45 }
 0x729   : > { %2630 = vmatprep.subr.bf16.mxu0 %v3030_v18 }
 0x72a   : > { %2615 = vmatmul.mubr.msk.bf16.vlgmr.msra.gmra.mrb[40].mxu1 %vm377_vm3, %v1374_v34  ;;  %v1211_v34 = vsel %vm525_vm5, %v3456_v28, 0.0 }
 0x72b   : > { %2625 = vmatpush3.bf16.xpose.msra.mxu1 %v1481_v47  ;;  %2626 = vmatprep.mubr.msk.bf16.mxu1 %vm3031_vm2, %v3030_v18 }
 0x72c   : > { %2636 = vmatprep.subr.bf16.mxu1 %v3030_v18 }
 0x72f   : > { %2621 = vmatmul.mubr.msk.bf16.vlgmr.msra.gmra.mrb[40].mxu0 %vm377_vm3, %v1424_v43 }
 0x730   : > { %2631 = vmatpush3.bf16.msra.mxu0 %v1565_v50  ;;  %2632 = vmatprep.mubr.msk.bf16.mxu0 %vm3031_vm2, %v3030_v18 }
 0x731   : > { %2642 = vmatprep.subr.bf16.mxu0 %v3030_v18 }
 0x732   : > { %2627 = vmatmul.mubr.msk.bf16.vlgmr.msra.gmra.mrb[44].mxu1 %vm377_vm3, %v1474_v51 }
 0x733   : > { %2638 = vmatprep.mubr.msk.bf16.mxu1 %vm3031_vm2, %v3030_v18 }
 0x7f1   : > { %v3496_v52 = vpop.f32.mrb[32].mxu0 }
 0x7f2   : > { %v2598_v53 = vpop.f32.mrb[33].mxu0 }
 0x7f3   : > { %v1271_v54 = vpop.f32.mrb[34].mxu0 }
 0x7f4   : > { %v2599_v55 = vpop.f32.mrb[35].mxu0 }
 0x7f5   : > { %v3498_v56 = vpop.f32.mrb[36].mxu1 }
 0x7f6   : > { %v2604_v57 = vpop.f32.mrb[37].mxu1 }
 0x7f7   : > { %v1319_v58 = vpop.f32.mrb[38].mxu1 }
 0x7f8   : > { %v2605_v59 = vpop.f32.mrb[39].mxu1 }
 0x7f9   : > { %v3500_v60 = vpop.f32.mrb[36].mxu0  ;;  %v544_v59 = vsel %vm525_vm5, %v3334_v5, 0.0 }
 0x7fa   : > { %v2610_v61 = vpop.f32.mrb[37].mxu0 }
 0x7fb   : > { %v1367_v62 = vpop.f32.mrb[38].mxu0 }
 0x7fc   : > { %v2611_v63 = vpop.f32.mrb[39].mxu0 }
 0x7fd   : > { %v1417_v0 = vpop.f32.mrb[40].mxu1  ;;  %v550_v63 = vsel %vm525_vm5, %v3350_v16, 0.0 }
 0x7fe   : > { %v1523_v1 = vmul.f32 0.5, %v1417_v0  ;;  %v2616_v2 = vpop.f32.mrb[41].mxu1  ;;  %v547_v0 = vsel %vm525_vm5, %v3341_v9, 0.0 }
 0x7ff   : > { %v1420_v3 = vpop.f32.mrb[42].mxu1 }
 0x800   : > { %v2617_v4 = vpop.f32.mrb[43].mxu1  ;;  %v1526_v6 = vsel %vm525_vm5, %v1523_v1, -inf }
 0x801   : > { %1527 = vmax.xlane.f32.xlu1 %v1526_v6 }
 0x802   : > { %v1467_v7 = vpop.f32.mrb[40].mxu0 }
 0x803   : > { %v1524_v8 = vmul.f32 0.5, %v1467_v7  ;;  %v2622_v11 = vpop.f32.mrb[41].mxu0 }
 0x804   : > { %v1470_v13 = vpop.f32.mrb[42].mxu0 }
 0x805   : > { %v2623_v17 = vpop.f32.mrb[43].mxu0  ;;  %v1529_v20 = vsel %vm525_vm5, %v1524_v8, -inf  ;;  %v1517_v21 = vpop.f32.mrb[44].mxu1 }
 0x806   : > { %1530 = vmax.xlane.f32.xlu0 %v1529_v20  ;;  %v1525_v22 = vmul.f32 0.5, %v1517_v21  ;;  %v2628_v24 = vpop.f32.mrb[45].mxu1 }
 0x807   : > { %v1520_v26 = vpop.f32.mrb[46].mxu1 }
 0x808   : > { %v2629_v27 = vpop.f32.mrb[47].mxu1  ;;  %v1532_v30 = vsel %vm525_vm5, %v1525_v22, -inf }
 0x80a   : > { %1533 = vmax.xlane.f32.xlu0 %v1532_v30 }
 0x812   : > { %1655 = vrot.lane.b32.xlu1 %v3282_v25, %s3042_s10  ;;  %v884_v25 = vsel %vm525_vm5, %v3412_v23, 0.0 }
 0x820   : > { %1607 = vrot.lane.b32.xlu0 %v3288_v29, %s3042_s10  ;;  %v1214_v29 = vsel %vm525_vm5, %v3462_v33, 0.0 }
 0x836   : > { %879 = vadd.xlane.f32.xlu1 %v878_v32 }
 0x83a   : > { %1212 = vadd.xlane.f32.xlu1 %v1211_v34 }
 0x83e   : > { %1218 = vadd.xlane.f32.xlu1 %v1217_v36 }
 0x83f   : > { %882 = vadd.xlane.f32.xlu0 %v881_v37 }
 0x843   : > { %885 = vadd.xlane.f32.xlu0 %v884_v25 }
 0x847   : > { %1215 = vadd.xlane.f32.xlu0 %v1214_v29 }
 0x88e   : > { %v1528_v10 = vpop.xlane.xlu1 %1527 }
 0x88f   : > { %v1535_v38 = vsub.f32 %v1523_v1, %v1528_v10 }
 0x891   : > { %v1538_v28 = vmul.f32 1.442695, %v1535_v38 }
 0x892   : > { %v1656_v50 = vpop.permute.xlu1 %1655 }
 0x893   : > { %2812 = vpow2.f32 %v1538_v28  ;;  %v1531_v42 = vpop.xlane.xlu0 %1530  ;;  %v1661_v53 = vsel %vm564_vm4, %v1656_v50, 0 }
 0x894   : > { %v1536_v43 = vsub.f32 %v1524_v8, %v1531_v42 }
 0x896   : > { %v1540_v41 = vmul.f32 1.442695, %v1536_v43 }
 0x897   : > { %v1534_v45 = vpop.xlane.xlu0 %1533 }
 0x898   : > { %2814 = vpow2.f32 %v1540_v41  ;;  %v1537_v46 = vsub.f32 %v1525_v22, %v1534_v45 }
 0x89a   : > { %v1542_v19 = vmul.f32 1.442695, %v1537_v46 }
 0x89b   : > { %v1608_v47 = vpop.permute.xlu0 %1607 }
 0x89c   : > { %2816 = vpow2.f32 %v1542_v19  ;;  %v1613_v23 = vsel %vm564_vm4, %v1608_v47, 0 }
 0x89d   : > { %v2813_v49 = vpop.eup %2812  ;;  %2637 = vmatpush3.bf16.msra.mxu1 %v1613_v23 }
 0x89e   : > { %v1544_v33 = vsel %vm525_vm5, %v2813_v49, 0.0  ;;  %v1556_v51 = vpack.c.bf16 %v2813_v49, %v2813_v49 }
 0x89f   : > { %1545 = vadd.xlane.f32.xlu0 %v1544_v33 }
 0x8a0   : > { %2633 = vmatmul.mubr.msk.bf16.vlgmr.msra.gmra.mrb[44].mxu0 %vm525_vm5, %v1556_v51 }
 0x8a1   : > { %2643 = vmatpush3.bf16.msra.mxu0 %v1661_v53  ;;  %2644 = vmatprep.mubr.msk.bf16.mxu0 %vm3031_vm2, %v3030_v18 }
 0x8a2   : > { %v2815_v54 = vpop.eup %2814 }
 0x8a3   : > { %v1547_v55 = vsel %vm525_vm5, %v2815_v54, 0.0  ;;  %v1557_v57 = vpack.c.bf16 %v2815_v54, %v2815_v54 }
 0x8a4   : > { %1548 = vadd.xlane.f32.xlu1 %v1547_v55 }
 0x8a5   : > { %2639 = vmatmul.mubr.msk.bf16.vlgmr.msra.gmra.mrb[48].mxu1 %vm525_vm5, %v1557_v57 }
 0x8a6   : > { %v2817_v58 = vpop.eup %2816 }
 0x8a7   : > { %v1550_v61 = vsel %vm525_vm5, %v2817_v58, 0.0  ;;  %v1558_v62 = vpack.c.bf16 %v2817_v58, %v2817_v58 }
 0x8a8   : > { %545 = vadd.xlane.f32.xlu1 %v544_v59  ;;  %1551 = vadd.xlane.f32.xlu0 %v1550_v61 }
 0x8a9   : > { %2645 = vmatmul.mubr.msk.bf16.vlgmr.msra.gmra.mrb[48].mxu0 %vm525_vm5, %v1558_v62 }
 0x8ac   : > { %551 = vadd.xlane.f32.xlu1 %v550_v63  ;;  %548 = vadd.xlane.f32.xlu0 %v547_v0 }
 0x8c3   : > { %v880_v1 = vpop.xlane.xlu1 %879 }
 0x8c4   : > { %2818 = vrcp.f32 %v880_v1 }
 0x8c7   : > { %v1213_v2 = vpop.xlane.xlu1 %1212 }
 0x8cb   : > { %v1219_v5 = vpop.xlane.xlu1 %1218 }
 0x8cc   : > { %v883_v3 = vpop.xlane.xlu0 %882 }
 0x8cd   : > { %2820 = vrcp.f32 %v883_v3 }
 0x8ce   : > { %2822 = vrcp.f32 %v1219_v5  ;;  %v2819_v7 = vpop.eup %2818 }
 0x8cf   : > { %v1037_v16 = vmul.f32 %v2819_v7, %v3439_v40 }
 0x8d0   : > { %v886_v4 = vpop.xlane.xlu0 %885 }
 0x8d1   : > { %2824 = vrcp.f32 %v886_v4 }
 0x8d2   : > { %2826 = vrcp.f32 %v1213_v2 }
 0x8d4   : > { %v1216_v6 = vpop.xlane.xlu0 %1215 }
 0x8d5   : > { %2828 = vrcp.f32 %v1216_v6 }
 0x8d7   : > { %v2821_v8 = vpop.eup %2820 }
 0x8d8   : > { %v1038_v9 = vmul.f32 %v2821_v8, %v3441_v44  ;;  %v2823_v11 = vpop.eup %2822  ;;  %v2788_v44 = vld [vmem:[#allocation5 + $0x20] sm:$0xff]  }
 0x8d9   : > { %v1372_v22 = vmul.f32 %v2823_v11, %v3500_v60  ;;  %2648 = vmatprep.subr.bf16.mxu1 %v2788_v44 }
 0x8da   : > { %v2770_v13 = vpack.i.bf16 %v1038_v9, %v1037_v16  ;;  %2649 = vmatpush3.bf16.msra.mxu1 %v2788_v44 }
 0x8db   : > { %v2825_v17 = vpop.eup %2824 }
 0x8dc   : > { %2771 = vrot.lane.b32.xlu0 %v2770_v13, %s3043_s11  ;;  %v1039_v20 = vmul.f32 %v2825_v17, %v3443_v48  ;;  %v2827_v21 = vpop.eup %2826 }
 0x8dd   : > { %v1370_v26 = vmul.f32 %v2827_v21, %v3496_v52 }
 0x8de   : > { %1713 = vrot.lane.b32.xlu1 %v1039_v20, %s3043_s11 }
 0x8df   : > { %v2829_v24 = vpop.eup %2828 }
 0x8e0   : > { %1725 = vrot.lane.b32.xlu0 %v1372_v22, %s3044_s24  ;;  %v1371_v40 = vmul.f32 %v2829_v24, %v3498_v56  ;;  %v2390_v22 = vld [vmem:[#allocation7 + $0x2] ss:$0 sm:$0xff] }
 0x8e2   : > { %v2775_v27 = vpack.i.bf16 %v1371_v40, %v1370_v26 }
 0x8e4   : > { %2776 = vrot.lane.b32.xlu1 %v2775_v27, %s3044_s24 }
 0x92c   : > { %v1546_v30 = vpop.xlane.xlu0 %1545 }
 0x92d   : > { %2830 = vrcp.f32 %v1546_v30 }
 0x931   : > { %v1549_v32 = vpop.xlane.xlu1 %1548 }
 0x932   : > { %2832 = vrcp.f32 %v1549_v32 }
 0x935   : > { %v1552_v48 = vpop.xlane.xlu0 %1551  ;;  %v546_v49 = vpop.xlane.xlu1 %545 }
 0x936   : > { %2834 = vrcp.f32 %v1552_v48 }
 0x937   : > { %v2831_v25 = vpop.eup %2830 }
 0x939   : > { %v552_v50 = vpop.xlane.xlu1 %551  ;;  %v549_v33 = vpop.xlane.xlu0 %548 }
 0x93a   : > { %2836 = vrcp.f32 %v552_v50 }
 0x93b   : > { %2838 = vrcp.f32 %v546_v49 }
 0x93c   : > { %v2833_v29 = vpop.eup %2832  ;;  %2840 = vrcp.f32 %v549_v33 }
 0x940   : > { %v2835_v41 = vpop.eup %2834 }
 0x944   : > { %v2837_v54 = vpop.eup %2836 }
 0x945   : > { %v2839_v55 = vpop.eup %2838  ;;  %v706_v62 = vmul.f32 %v2837_v54, %v3381_v39 }
 0x946   : > { %v2841_v58 = vpop.eup %2840  ;;  %v704_v2 = vmul.f32 %v2839_v55, %v3377_v31 }
 0x947   : > { %v705_v3 = vmul.f32 %v2841_v58, %v3379_v35 }
 0x94e   : > { %v2772_v53 = vpop.permute.xlu0 %2771 }
 0x94f   : > { %v2774_v59 = vunpack.i.h.bf16 %v2772_v53  ;;  %v2773_v61 = vunpack.i.l.bf16 %v2772_v53 }
 0x950   : > { %v1714_v51 = vpop.permute.xlu1 %1713 }
 0x951   : > { %v1744_v5 = vsel %vm377_vm3, %v706_v62, %v1714_v51  ;;  %v1743_v6 = vsel %vm377_vm3, %v705_v3, %v2774_v59  ;;  %v1742_v7 = vsel %vm377_vm3, %v704_v2, %v2773_v61  ;;  %v2394_v59 = vld [vmem:[#allocation7 + $0x5] ss:$0 sm:$0xff] }
 0x952   : > { %v1726_v63 = vpop.permute.xlu0 %1725 }
 0x953   : > { %v1747_v9 = vsel %vm525_vm5, %v1744_v5, %v1726_v63 }
 0x956   : > { %v2777_v57 = vpop.permute.xlu1 %2776 }
 0x957   : > { %v2779_v0 = vunpack.i.h.bf16 %v2777_v57  ;;  %v2778_v1 = vunpack.i.l.bf16 %v2777_v57 }
 0x959   : > { %v1745_v39 = vsel %vm525_vm5, %v1742_v7, %v2778_v1  ;;  %v1746_v11 = vsel %vm525_vm5, %v1743_v6, %v2779_v0  ;;  %v2395_v1 = vld [vmem:[#allocation7 + $0x6] ss:$0 sm:$0xff] }
 0x973   : > { %v1601_v34 = vpop.f32.mrb[44].mxu0 }
 0x974   : > { %v2634_v60 = vpop.f32.mrb[45].mxu0  ;;  %v1703_v10 = vmul.f32 %v2831_v25, %v1601_v34 }
 0x975   : > { %v1604_v36 = vpop.f32.mrb[46].mxu0 }
 0x976   : > { %v2635_v37 = vpop.f32.mrb[47].mxu0 }
 0x978   : > { %v1649_v52 = vpop.f32.mrb[48].mxu1 }
 0x979   : > { %v1704_v56 = vmul.f32 %v2833_v29, %v1649_v52  ;;  %v2640_v38 = vpop.f32.mrb[49].mxu1 }
 0x97a   : > { %v1652_v28 = vpop.f32.mrb[50].mxu1 }
 0x97b   : > { %v2780_v42 = vpack.i.bf16 %v1704_v56, %v1703_v10  ;;  %v2641_v43 = vpop.f32.mrb[51].mxu1 }
 0x97c   : > { %v1697_v45 = vpop.f32.mrb[48].mxu0 }
 0x97d   : > { %v1705_v46 = vmul.f32 %v2835_v41, %v1697_v45  ;;  %v2646_v19 = vpop.f32.mrb[49].mxu0  ;;  %2781 = vrot.lane.b32.xlu1 %v2780_v42, %s3045_s27 }
 0x97e   : > { %v1700_v47 = vpop.f32.mrb[50].mxu0 }
 0x97f   : > { %v2647_v23 = vpop.f32.mrb[51].mxu0  ;;  %1737 = vrot.lane.b32.xlu0 %v1705_v46, %s3045_s27  ;;  %v2789_v47 = vld [vmem:[#allocation5 + $0x30] sm:$0xff]  }
 0x980   : > { %2654 = vmatprep.subr.bf16.mxu0 %v2789_v47 }
 0x981   : > { %2655 = vmatpush3.bf16.msra.mxu0 %v2789_v47 }
 0x9ef   : > { %v2782_v4 = vpop.permute.xlu1 %2781 }
 0x9f0   : > { %v2784_v8 = vunpack.i.h.bf16 %v2782_v4  ;;  %v2783_v16 = vunpack.i.l.bf16 %v2782_v4 }
 0x9f1   : > { %v1738_v13 = vpop.permute.xlu0 %1737 }
 0x9f2   : > { %v1749_v31 = vsel %vm1748_vm6, %v1745_v39, %v2783_v16  ;;  %v1750_v17 = vsel %vm1748_vm6, %v1746_v11, %v2784_v8  ;;  %v1751_v35 = vsel %vm1748_vm6, %v1747_v9, %v1738_v13  ;;  %v2790_v39 = vld [vmem:[#allocation5 + $0x40] sm:$0xff]   ;;  %v2396_v11 = vld [vmem:[#allocation7 + $0x3] ss:$0 sm:$0xff] }
 0x9f3   : > { %v1755_v20 = vpack.c.bf16 %v1750_v17, %v1749_v31  ;;  %v1756_v21 = vpack.c.bf16 %v1751_v35, %v1751_v35  ;;  %2660 = vmatprep.subr.bf16.mxu1 %v2790_v39 }
 0x9f5   : > { %2650 = vmatprep.mubr.msk.bf16.mxu1 %vm316_vm1, %v1755_v20 }
 0x9f6   : > { %2651 = vmatmul.mubr.msk.bf16.vlgmr.msra.gmra.mrb[52].mxu1 %vm316_vm1, %v1756_v21 }
 0x9f7   : > { %2661 = vmatpush3.bf16.msra.mxu1 %v2790_v39 }
 0x9f8   : > { %2672 = vmatprep.subr.bf16.mxu1 %v3030_v18 }
 0xac9   : > { %v2652_v24 = vpop.f32.mrb[52].mxu1 }
 0xaca   : > { %v1808_v26 = vpop.f32.mrb[53].mxu1  ;;  %v1817_v30 = vadd.f32 %v2652_v24, %v2390_v22 }
 0xacb   : > { %v1809_v40 = vadd.f32 %v2390_v22, %v1808_v26  ;;  %v2653_v27 = vpop.f32.mrb[54].mxu1 }
 0xacc   : > { %v1811_v44 = vpop.f32.mrb[55].mxu1  ;;  %v1824_v37 = vadd.f32 %v1817_v30, %v3264_v12  ;;  %v2400_v30 = vld [vmem:[#allocation7 + $0x4] ss:$0 sm:$0xff] }
 0xacd   : > { %v1812_v32 = vadd.f32 %v2390_v22, %v1811_v44  ;;  %v1822_v48 = vadd.f32 %v1809_v40, %v3266_v14 }
 0xace   : > { %v1831_v25 = vsel %vm316_vm1, %v1824_v37, 0.0 }
 0xacf   : > { %v1825_v34 = vsel %vm316_vm1, %v1822_v48, 0.0  ;;  %v1823_v60 = vadd.f32 %v1812_v32, %v3268_v15 }
 0xad0   : > { %1826 = vadd.xlane.f32.xlu1 %v1825_v34 }
 0xad1   : > { %v1828_v36 = vsel %vm316_vm1, %v1823_v60, 0.0 }
 0xad2   : > { %1829 = vadd.xlane.f32.xlu0 %v1828_v36 }
 0xad6   : > { %1832 = vadd.xlane.f32.xlu0 %v1831_v25 }
 0xb5d   : > { %v1827_v29 = vpop.xlane.xlu1 %1826 }
 0xb5e   : > { %v1835_v52 = vmul.f32 0.0625, %v1827_v29 }
 0xb5f   : > { %v1830_v10 = vpop.xlane.xlu0 %1829 }
 0xb60   : > { %v1838_v56 = vsub.f32 %v1822_v48, %v1835_v52  ;;  %v1836_v38 = vmul.f32 0.0625, %v1830_v10 }
 0xb62   : > { %v1839_v28 = vsub.f32 %v1823_v60, %v1836_v38  ;;  %v1841_v14 = vmul.f32 %v1838_v56, %v1838_v56 }
 0xb63   : > { %v1833_v42 = vpop.xlane.xlu0 %1832 }
 0xb64   : > { %v1837_v43 = vmul.f32 0.0625, %v1833_v42  ;;  %v1844_v15 = vsel %vm316_vm1, %v1841_v14, 0.0  ;;  %v1842_v41 = vmul.f32 %v1839_v28, %v1839_v28 }
 0xb65   : > { %1845 = vadd.xlane.f32.xlu1 %v1844_v15 }
 0xb66   : > { %v1840_v45 = vsub.f32 %v1824_v37, %v1837_v43  ;;  %v1847_v12 = vsel %vm316_vm1, %v1842_v41, 0.0 }
 0xb67   : > { %1848 = vadd.xlane.f32.xlu0 %v1847_v12 }
 0xb68   : > { %v1843_v46 = vmul.f32 %v1840_v45, %v1840_v45 }
 0xb6a   : > { %v1850_v19 = vsel %vm316_vm1, %v1843_v46, 0.0 }
 0xb6b   : > { %1851 = vadd.xlane.f32.xlu1 %v1850_v19 }
 0xbf2   : > { %v1846_v23 = vpop.xlane.xlu1 %1845 }
 0xbf3   : > { %v1853_v49 = vmul.f32 0.0625, %v1846_v23 }
 0xbf4   : > { %v1849_v50 = vpop.xlane.xlu0 %1848 }
 0xbf5   : > { %v1856_v33 = vadd.f32 1e-05, %v1853_v49  ;;  %v1854_v51 = vmul.f32 0.0625, %v1849_v50 }
 0xbf7   : > { %2842 = vrsqrt.f32 %v1856_v33  ;;  %v1857_v53 = vadd.f32 1e-05, %v1854_v51 }
 0xbf8   : > { %v1852_v54 = vpop.xlane.xlu1 %1851 }
 0xbf9   : > { %2844 = vrsqrt.f32 %v1857_v53  ;;  %v1855_v55 = vmul.f32 0.0625, %v1852_v54  ;;  %v2791_v53 = vld [vmem:[#allocation5 + $0x50] sm:$0xff]   ;;  %v2792_v54 = vld [vmem:[#allocation5 + $0x60] sm:$0xff]  }
 0xbfa   : > { %2666 = vmatprep.subr.bf16.mxu0 %v2791_v53 }
 0xbfb   : > { %v1858_v57 = vadd.f32 1e-05, %v1855_v55 }
 0xbfd   : > { %2846 = vrsqrt.f32 %v1858_v57 }
 0xc01   : > { %v2843_v58 = vpop.eup %2842 }
 0xc02   : > { %v1862_v61 = vmul.f32 %v2843_v58, %v1838_v56 }
 0xc03   : > { %v2845_v62 = vpop.eup %2844 }
 0xc04   : > { %v1863_v63 = vmul.f32 %v2845_v62, %v1839_v28  ;;  %v1870_v0 = vmul.f32 %v2394_v59, %v1862_v61 }
 0xc06   : > { %v1871_v2 = vmul.f32 %v2394_v59, %v1863_v63  ;;  %v1878_v4 = vadd.f32 %v2395_v1, %v1870_v0 }
 0xc07   : > { %v2847_v3 = vpop.eup %2846 }
 0xc08   : > { %v1864_v5 = vmul.f32 %v2847_v3, %v1840_v45  ;;  %v1879_v6 = vadd.f32 %v2395_v1, %v1871_v2  ;;  %v2404_v3 = vld [vmem:[#allocation7 + $0x7] ss:$0 sm:$0xff] }
 0xc0a   : > { %v1884_v7 = vpack.c.bf16 %v1879_v6, %v1878_v4  ;;  %v1872_v8 = vmul.f32 %v2394_v59, %v1864_v5 }
 0xc0c   : > { %2656 = vmatprep.mubr.msk.bf16.mxu0 %vm316_vm1, %v1884_v7  ;;  %v1880_v16 = vadd.f32 %v2395_v1, %v1872_v8 }
 0xc0e   : > { %v1885_v9 = vpack.c.bf16 %v1880_v16, %v1880_v16 }
 0xc10   : > { %2657 = vmatmul.mubr.msk.bf16.vlgmr.msra.gmra.mrb[52].mxu0 %vm316_vm1, %v1885_v9 }
 0xc11   : > { %2667 = vmatpush3.bf16.msra.mxu0 %v2791_v53 }
 0xce3   : > { %v2658_v13 = vpop.f32.mrb[52].mxu0 }
 0xce4   : > { %v1946_v31 = vadd.f32 %v2658_v13, %v2396_v11  ;;  %v1937_v17 = vpop.f32.mrb[53].mxu0 }
 0xce5   : > { %v1938_v35 = vadd.f32 %v2396_v11, %v1937_v17  ;;  %v2659_v20 = vpop.f32.mrb[54].mxu0 }
 0xce6   : > { %v1940_v21 = vpop.f32.mrb[55].mxu0  ;;  %v1953_v24 = vmax.f32 %v1946_v31, 0.0  ;;  %v2793_v20 = vld [vmem:[#allocation5 + $0x68] sm:$0xff]  }
 0xce7   : > { %v1941_v22 = vadd.f32 %v2396_v11, %v1940_v21  ;;  %v1951_v26 = vmax.f32 %v1938_v35, 0.0  ;;  %v2406_v21 = vld [vmem:[#allocation7 + $0x9] ss:$0 sm:$0xff] }
 0xce8   : > { %v1958_v44 = vpack.c.bf16 %v1953_v24, %v1953_v24 }
 0xce9   : > { %v1952_v40 = vmax.f32 %v1941_v22, 0.0 }
 0xceb   : > { %v1957_v27 = vpack.c.bf16 %v1952_v40, %v1951_v26 }
 0xced   : > { %2662 = vmatprep.mubr.msk.bf16.mxu1 %vm316_vm1, %v1957_v27 }
 0xcee   : > { %2663 = vmatmul.mubr.msk.bf16.vlgmr.msra.gmra.mrb[56].mxu1 %vm316_vm1, %v1958_v44 }
 0xcef   : > { %2676 = vmatprep.mubr.msk.bf16.mxu1 %vm3031_vm2, %v3030_v18  ;;  %2673 = vmatpush3.bf16.msra.mxu1 %v2792_v54 }
 0xcf0   : > { %2674 = vmatprep.subr.bf16.mxu1 %v3030_v18  ;;  %v2405_v18 = vld [vmem:[#allocation7 + $0x8] ss:$0 sm:$0xff] }
 0xcf3   : > { %2675 = vmatpush3.bf16.msra.mxu1 %v2793_v20 }
 0xdc1   : > { %v2664_v32 = vpop.f32.mrb[56].mxu1 }
 0xdc2   : > { %v2010_v48 = vpop.f32.mrb[57].mxu1  ;;  %v2019_v34 = vadd.f32 %v2664_v32, %v2400_v30 }
 0xdc3   : > { %v2011_v60 = vadd.f32 %v2400_v30, %v2010_v48  ;;  %v2665_v36 = vpop.f32.mrb[58].mxu1 }
 0xdc4   : > { %v2013_v37 = vpop.f32.mrb[59].mxu1  ;;  %v2026_v56 = vadd.f32 %v2019_v34, %v1880_v16  ;;  %v2410_v34 = vld [vmem:[#allocation7 + $0xa] ss:$0 sm:$0xff] }
 0xdc5   : > { %v2014_v25 = vadd.f32 %v2400_v30, %v2013_v37  ;;  %v2024_v29 = vadd.f32 %v2011_v60, %v1878_v4  ;;  %v2862_v30 = vld [vmem:[%s3249_s8] sm:$0xff] }
 0xdc6   : > { %v2033_v28 = vsel %vm316_vm1, %v2026_v56, 0.0 }
 0xdc7   : > { %v2027_v52 = vsel %vm316_vm1, %v2024_v29, 0.0  ;;  %v2025_v10 = vadd.f32 %v2014_v25, %v1879_v6 }
 0xdc8   : > { %2028 = vadd.xlane.f32.xlu0 %v2027_v52 }
 0xdc9   : > { %v2030_v38 = vsel %vm316_vm1, %v2025_v10, 0.0 }
 0xdca   : > { %2031 = vadd.xlane.f32.xlu1 %v2030_v38 }
 0xdcc   : > { %2034 = vadd.xlane.f32.xlu0 %v2033_v28 }
 0xe55   : > { %v2029_v14 = vpop.xlane.xlu0 %2028 }
 0xe56   : > { %v2036_v42 = vmul.f32 0.0625, %v2029_v14 }
 0xe57   : > { %v2032_v43 = vpop.xlane.xlu1 %2031 }
 0xe58   : > { %v2039_v15 = vsub.f32 %v2024_v29, %v2036_v42  ;;  %v2037_v41 = vmul.f32 0.0625, %v2032_v43 }
 0xe59   : > { %v2035_v45 = vpop.xlane.xlu0 %2034 }
 0xe5a   : > { %v2040_v12 = vsub.f32 %v2025_v10, %v2037_v41  ;;  %v2038_v46 = vmul.f32 0.0625, %v2035_v45  ;;  %v2042_v19 = vmul.f32 %v2039_v15, %v2039_v15  ;;  %v2863_v41 = vld [vmem:[%s3249_s8 + $0x8] sm:$0xff] }
 0xe5c   : > { %v2041_v47 = vsub.f32 %v2026_v56, %v2038_v46  ;;  %v2045_v23 = vsel %vm316_vm1, %v2042_v19, 0.0  ;;  %v2043_v49 = vmul.f32 %v2040_v12, %v2040_v12 }
 0xe5d   : > { %2046 = vadd.xlane.f32.xlu1 %v2045_v23 }
 0xe5e   : > { %v2048_v50 = vsel %vm316_vm1, %v2043_v49, 0.0  ;;  %v2044_v33 = vmul.f32 %v2041_v47, %v2041_v47 }
 0xe5f   : > { %2049 = vadd.xlane.f32.xlu0 %v2048_v50 }
 0xe60   : > { %v2051_v51 = vsel %vm316_vm1, %v2044_v33, 0.0 }
 0xe61   : > { %2052 = vadd.xlane.f32.xlu1 %v2051_v51 }
 0xeea   : > { %v2047_v55 = vpop.xlane.xlu1 %2046 }
 0xeeb   : > { %v2054_v57 = vmul.f32 0.0625, %v2047_v55 }
 0xeec   : > { %v2050_v58 = vpop.xlane.xlu0 %2049 }
 0xeed   : > { %v2057_v59 = vadd.f32 1e-05, %v2054_v57  ;;  %v2055_v61 = vmul.f32 0.0625, %v2050_v58 }
 0xeee   : > { %v2053_v62 = vpop.xlane.xlu1 %2052 }
 0xeef   : > { %2848 = vrsqrt.f32 %v2057_v59  ;;  %v2058_v63 = vadd.f32 1e-05, %v2055_v61  ;;  %v2056_v0 = vmul.f32 0.0625, %v2053_v62 }
 0xef1   : > { %2850 = vrsqrt.f32 %v2058_v63  ;;  %v2059_v1 = vadd.f32 1e-05, %v2056_v0 }
 0xef3   : > { %2852 = vrsqrt.f32 %v2059_v1 }
 0xef9   : > { %v2849_v2 = vpop.eup %2848 }
 0xefa   : > { %v2063_v5 = vmul.f32 %v2849_v2, %v2039_v15 }
 0xefb   : > { %v2851_v4 = vpop.eup %2850 }
 0xefc   : > { %v2064_v6 = vmul.f32 %v2851_v4, %v2040_v12  ;;  %v2071_v7 = vmul.f32 %v2404_v3, %v2063_v5 }
 0xefd   : > { %v2853_v8 = vpop.eup %2852 }
 0xefe   : > { %v2065_v16 = vmul.f32 %v2853_v8, %v2041_v47  ;;  %v2072_v9 = vmul.f32 %v2404_v3, %v2064_v6  ;;  %v2079_v11 = vadd.f32 %v2405_v18, %v2071_v7  ;;  %v2864_v47 = vld [vmem:[%s3249_s8 + $0x10] sm:$0xff]  ;;  %s2245_s8 = scalar_lea.sflag [#allocation4], %s3245_s4 }
 0xf00   : > { %v2073_v39 = vmul.f32 %v2404_v3, %v2065_v16  ;;  %v2080_v13 = vadd.f32 %v2405_v18, %v2072_v9 }
 0xf02   : > { %v2085_v31 = vpack.c.bf16 %v2080_v13, %v2079_v11  ;;  %v2081_v17 = vadd.f32 %v2405_v18, %v2073_v39 }
 0xf04   : > { %2668 = vmatprep.mubr.msk.bf16.mxu0 %vm316_vm1, %v2085_v31  ;;  %v2086_v35 = vpack.c.bf16 %v2081_v17, %v2081_v17 }
 0xf06   : > { %2669 = vmatmul.mubr.msk.bf16.vlgmr.msra.gmra.mrb[56].mxu0 %vm316_vm1, %v2086_v35 }
 0xfd9   : > { %v2670_v22 = vpop.f32.mrb[56].mxu0 }
 0xfda   : > { %v2147_v24 = vadd.f32 %v2670_v22, %v2406_v21  ;;  %v2138_v26 = vpop.f32.mrb[57].mxu0 }
 0xfdb   : > { %v2139_v40 = vadd.f32 %v2406_v21, %v2138_v26  ;;  %v2671_v27 = vpop.f32.mrb[58].mxu0 }
 0xfdc   : > { %v2141_v44 = vpop.f32.mrb[59].mxu0 }
 0xfdd   : > { %v2157_v32 = vpack.c.bf16 %v2139_v40, %v2862_v30  ;;  %v2142_v48 = vadd.f32 %v2406_v21, %v2141_v44 }
 0xfdf   : > { %2677 = vmatmul.mubr.msk.bf16.vlgmr.msra.gmra.mrb[60].mxu1 %vm245_vm0, %v2157_v32 }
0x10b2   : > { %v2212_v60 = vpop.f32.mrb[60].mxu1 }
0x10b3   : > { %v2213_v36 = vadd.f32 %v2410_v34, %v2212_v60  ;;  %v2678_v37 = vpop.f32.mrb[61].mxu1 }
0x10b4   : > { %v2215_v25 = vpop.f32.mrb[62].mxu1 }
0x10b5   : > { %v2414_v29 = vmul.f32 -1.442695, %v2213_v36  ;;  %v2216_v52 = vadd.f32 %v2410_v34, %v2215_v25  ;;  %v2679_v10 = vpop.f32.mrb[63].mxu1 }
0x10b7   : > { %2854 = vpow2.f32 %v2414_v29  ;;  %v2415_v56 = vmul.f32 -1.442695, %v2216_v52 }
0x10b9   : > { %2856 = vpow2.f32 %v2415_v56 }
0x10c1   : > { %v2855_v38 = vpop.eup %2854 }
0x10c2   : > { %v2225_v28 = vadd.f32 1.0, %v2855_v38 }
0x10c3   : > { %v2857_v14 = vpop.eup %2856 }
0x10c4   : > { %2858 = vrcp.f32 %v2225_v28  ;;  %v2226_v42 = vadd.f32 1.0, %v2857_v14 }
0x10c6   : > { %2860 = vrcp.f32 %v2226_v42 }
0x10ce   : > { %v2859_v43 = vpop.eup %2858 }
0x10cf   : > { %v2231_v45 = vmul.f32 %v2863_v41, %v2859_v43  ;;  %v2234_v23 = vmul.f32 %v2864_v47, %v2859_v43 }
0x10d0   : > { %v2861_v15 = vpop.eup %2860 }
0x10d1   : > { %2236 = vrot.lane.b32.xlu0 %v2861_v15, %s3033_s20  ;;  %v2232_v12 = vmul.f32 %v2861_v15, %v2142_v48  ;;  %s3589_s20 = scalar_lea.hbm %s3637_s3, %s2417_s7 }
0x10d3   : > { %v2233_v46 = vadd.f32 %v2232_v12, %v2231_v45 }
0x10d5   : > { %v2241_v33 = vadd.f32 %v2862_v30, %v2233_v46 }
0x1143   : > { %v2237_v19 = vpop.permute.xlu0 %2236 }
0x1144   : > { %v2239_v49 = vmul.f32 %v2237_v19, %v2147_v24 }
0x1146   : > { %v2240_v50 = vadd.f32 %v2239_v49, %v2234_v23 }
0x1148   : > { %v2242_v51 = vadd.f32 %v2241_v33, %v2240_v50 }
0x114a   : > { %2243 = vst.msk [vmem:[%s217_s18] sm:$0xff] %vm245_vm0, %v2242_v51 }
0x114b   : > { %2964 = shalt.err (!%p2961_p2)
}
0x114c   : > { %s2965_s4 = scalar_lea.hbm %s3589_s20, 128  ;;  %s2969_s10 = scalar_lea.hbm %s3637_s3, 256 }
0x114d   : > { %p2966_p13 = scmp.ne.s32.totalorder %s3589_s20, %s2965_s4  ;;  %p2970_p4 = scmp.lt.u32.totalorder %s3589_s20, %s3637_s3 }
0x114e   : > { %p2971_p7 = scmp.lt.u32.totalorder %s2969_s10, %s2965_s4  ;;  %p2973_p11 = scmp.lt.u32.totalorder %s2965_s4, %s3589_s20 }
0x114f   : > { %p2967_p6 = pnand %p2966_p13, %p3651_p0 }
0x1150   : > { %p2972_p8 = por %p2971_p7, %p2970_p4 }
0x1151   : > { %p2968_p10 = pneg %p2967_p6 }
0x1152   : > { %p2974_p1 = por %p2973_p11, %p2972_p8 }
0x1154   : > { %p2975_p3 = pnand %p2974_p1, %p2968_p10 }
0x1156   : > { %2978 = shalt.err (!%p2975_p3)
}
0x1157   : > { %2693 = dma.vmem_to_hbm [thread:$0]  (%p3651_p0), %s3591_s29, 128, %s3589_s20, %s2245_s8  }
0x1158 PF: > { %s2270_s27 = sand.u32 1, %s3009_s12   ;;  %p3652_p5 = scmp.ne.s32.totalorder %s3642_s19, 0 }
0x1159   : > { %p3653_p9 = scmp.ge.s32.totalorder %s3021_s15, 2  ;;  %s2271_s5 = scalar_lea.sflag [#allocation4], %s2270_s27 }
0x115b   : > { %p2707_p12 = pnand %p3653_p9, %p3652_p5 }
0x115d   : > { %3004 = dma.done.wait (!%p2707_p12), %s2271_s5, 128  }
0x115e   : > { %3006 = vsyncadd (!%p2707_p12), %s2271_s5, 4294967168  ;;  %p17_p2 = scmp.ge.s32.totalorder %s3180_s6, 4   ;;  %s3654_s12 = smov %s3013_s13 }
0x115f   : > { %s3655_s13 = smov %s3017_s14  ;;  %s3656_s14 = smov %s3189_s9 }
0x1160   : > { %s3657_s15 = smov %s3180_s6  ;;  %19 = sbr.rel (!%p17_p2) target bundleno = 6 (0x6), region = 91 }
0x1167   :  { %2276 = vsyncpa [#allocation3], 1 }
0x1168   :  { %2278 = vsyncpa [#allocation3 + $0x1], 1 }
0x1169   :  { %2279 = vsyncpa [#allocation6], 1 }
0x116a   :  { %2280 = vsyncpa [#allocation4], 1 }
0x116b   :  { %2282 = vsyncpa [#allocation4 + $0x1], 1 }

</bundles_post_ra>
